<compile_context>
chip_gen: v7x
topology: tpu7x:2x2x1
jax: 0.10.0
libtpu: 0.0.40
codegen_flags: <defaults>
</compile_context>

<pallas_src>
import math

import jax
import jax.numpy as jnp
from jax import lax
from jax.experimental import pallas as pl
from jax.experimental.pallas import tpu as pltpu

# ----------------------------- model dims (small, consistent with module) ---
IN_CH = 4            # image channels
IMG_HW = 16          # spatial size (H == W)
NUM_FEATURES = 128   # backbone feature width (real resnet50 would be 2048)
EMBED_DIM = 64       # embed_dim (module default 512), divisible by num_heads
NUM_HEADS = 4
HEAD_DIM = EMBED_DIM // NUM_HEADS
FF_DIM = 4 * EMBED_DIM
NUM_LAYERS = 2
LN_EPS = 1e-5
NEG_BIG = -1e30      # finite "minus infinity" for key padding

VMEM = pltpu.MemorySpace.VMEM


def _layer_norm(x, g, b, eps=LN_EPS):
    mu = jnp.mean(x, axis=-1, keepdims=True)
    var = jnp.mean((x - mu) ** 2, axis=-1, keepdims=True)
    return (x - mu) * lax.rsqrt(var + eps) * g + b


def _erf(x):
    # Abramowitz & Stegun 7.1.26 polynomial (max abs err ~1.5e-7).  Uses only
    # mul/add/abs/exp/where, all of which lower cleanly in Mosaic.
    a1, a2, a3, a4, a5 = 0.254829592, -0.284496736, 1.421413741, -1.453152027, 1.061405429
    p = 0.3275911
    ax = jnp.abs(x)
    t = 1.0 / (1.0 + p * ax)
    poly = ((((a5 * t + a4) * t + a3) * t + a2) * t + a1) * t
    y = 1.0 - poly * jnp.exp(-ax * ax)
    return jnp.where(x >= 0, y, -y)


def _gelu_exact(x):
    return 0.5 * x * (1.0 + _erf(x * 0.7071067811865476))


def _softmax_last(x):
    m = jnp.max(x, axis=-1, keepdims=True)
    e = jnp.exp(x - m)
    return e / jnp.sum(e, axis=-1, keepdims=True)


# =============================================================================
# Single fused kernel
# =============================================================================
def fused_forward_kernel(
        # data
        x_ref,            # [B*S, C, H*W]  (row b*S + 0 is an all-zero cls slot)
        attn_mask_ref,    # [B, S]   1.0 = padded key
        orig_mask_ref,    # [B, N]   1.0 = real image
        # feature path (stem + embedding Linears pre-folded into one)
        feat_w_ref, feat_b_ref, fln_g_ref, fln_b_ref, cls_ref,
        # encoder layers, stacked along a leading NUM_LAYERS axis
        wqkv_ref, bqkv_ref, wo_ref, bo_ref,
        ln1g_ref, ln1b_ref, ln2g_ref, ln2b_ref,
        w1_ref, b1_ref, w2_ref, b2_ref,
        # study classifier
        cw1_ref, cb1_ref, clg_ref, clb_ref, cw2_ref, cb2_ref,
        # image classifier
        iw1_ref, ib1_ref, ilg_ref, ilb_ref, iw2_ref, ib2_ref,
        # outputs
        study_ref, img_ref, attn_ref):
    B, S = attn_mask_ref.shape
    N = S - 1
    BS = B * S
    E = EMBED_DIM
    Dh = HEAD_DIM
    scale = 1.0 / math.sqrt(Dh)

    # ---- backbone GAP (lane-dense H*W reduce) + folded stem+embedding Linear
    # TODO(synk): pretrained torchvision ResNet50 trunk weights cannot be
    # reproduced in-script; stand-in backbone = GAP + Linear(C -> NUM_FEATURES),
    # algebraically folded with the embedding Linear into one [C, E] matmul.
    pooled = jnp.mean(x_ref[...], axis=-1)                      # [BS, C]
    emb = jnp.dot(pooled, feat_w_ref[...],
                  preferred_element_type=jnp.float32) + feat_b_ref[...]
    emb = jnp.maximum(_layer_norm(emb, fln_g_ref[...], fln_b_ref[...]), 0.0)

    # splice the learned cls token into row 0 of each study (no concat needed)
    row = lax.broadcasted_iota(jnp.int32, (BS, 1), 0)
    x2d = jnp.where(row % S == 0, cls_ref[...], emb)            # [BS, E]

    # finite key-padding bias (never produces inf/NaN in softmax)
    neg = (attn_mask_ref[...] * NEG_BIG)[:, None, :]            # [B, 1, S]

    # ---- transformer encoder: NUM_LAYERS pre-norm layers, statically unrolled
    for l in range(NUM_LAYERS):
        # self-attention block (norm_first)
        h = _layer_norm(x2d, ln1g_ref[l], ln1b_ref[l])
        qkv = jnp.dot(h, wqkv_ref[l],
                      preferred_element_type=jnp.float32) + bqkv_ref[l]   # [BS,3E]
        wo_l = wo_ref[l]                                        # [E, E]

        attn2d = jnp.zeros((BS, E), jnp.float32)
        for hd in range(NUM_HEADS):
            lo = hd * Dh
            qh = qkv[:, lo:lo + Dh].reshape(B, S, Dh)
            kh = qkv[:, E + lo:E + lo + Dh].reshape(B, S, Dh)
            vh = qkv[:, 2 * E + lo:2 * E + lo + Dh].reshape(B, S, Dh)
            sc = jnp.einsum('bqd,bkd->bqk', qh, kh,
                            preferred_element_type=jnp.float32) * scale + neg
            p = _softmax_last(sc)
            ctx = jnp.einsum('bqk,bkd->bqd', p, vh,
                             preferred_element_type=jnp.float32)
            # head-concat folded into the output projection
            attn2d = attn2d + jnp.dot(ctx.reshape(BS, Dh),
                                      wo_l[lo:lo + Dh, :],
                                      preferred_element_type=jnp.float32)
        x2d = x2d + attn2d + bo_ref[l]

        # feed-forward block (norm_first, exact GELU)
        hf = _layer_norm(x2d, ln2g_ref[l], ln2b_ref[l])
        f = jnp.dot(hf, w1_ref[l], preferred_element_type=jnp.float32) + b1_ref[l]
        f = _gelu_exact(f)
        f = jnp.dot(f, w2_ref[l], preferred_element_type=jnp.float32) + b2_ref[l]
        x2d = x2d + f

    # ---- heads ----
    x3 = x2d.reshape(B, S, E)
    cls_out = x3[:, 0, :]                                       # [B, E]
    img = x3[:, 1:, :]                                          # [B, N, E]
    omask = orig_mask_ref[...]                                  # [B, N]

    # study classifier: Linear -> LN -> ReLU -> Linear
    hs = jnp.dot(cls_out, cw1_ref[...],
                 preferred_element_type=jnp.float32) + cb1_ref[...]
    hs = jnp.maximum(_layer_norm(hs, clg_ref[...], clb_ref[...]), 0.0)
    study_ref[...] = jnp.dot(hs, cw2_ref[...],
                             preferred_element_type=jnp.float32) + cb2_ref[...]

    # image classifier: Linear -> LN -> ReLU -> Linear
    img2d = img.reshape(B * N, E)
    hi = jnp.dot(img2d, iw1_ref[...],
                 preferred_element_type=jnp.float32) + ib1_ref[...]
    hi = jnp.maximum(_layer_norm(hi, ilg_ref[...], ilb_ref[...]), 0.0)
    il = (jnp.dot(hi, iw2_ref[...],
                  preferred_element_type=jnp.float32)
          + ib2_ref[...]).reshape(B, N, 1)

    # attention pooling: bmm(image_emb, cls) -> softmax over images -> mask+renorm
    scores = jnp.sum(img * cls_out[:, None, :], axis=-1)        # [B, N]
    w = _softmax_last(scores) * omask
    s = jnp.maximum(jnp.sum(w, axis=-1, keepdims=True), 1e-6)
    w = w / s

    attn_ref[...] = w[..., None]
    img_ref[...] = il * omask[..., None]


# =============================================================================
# Parameter packing (folding / fusing / stacking done in plain JAX, once)
# =============================================================================
def _row(v):
    return v.reshape(1, -1)


def _pack_params(p):
    feat_w = jnp.dot(p['stem_w'], p['emb_w'])                           # [C, E]
    feat_b = jnp.dot(p['stem_b'][None, :], p['emb_w']) + p['emb_b'][None, :]  # [1, E]
    ls = p['layers']
    stack_w = lambda k: jnp.stack([lp[k] for lp in ls], axis=0)           # [L, in, out]
    stack_v = lambda k: jnp.stack([lp[k].reshape(1, -1) for lp in ls], 0)  # [L, 1, n]
    wqkv = jnp.stack([jnp.concatenate([lp['wq'], lp['wk'], lp['wv']], axis=1)
                      for lp in ls], axis=0)                             # [L, E, 3E]
    bqkv = jnp.stack([jnp.concatenate([lp['bq'], lp['bk'], lp['bv']],
                                      axis=0).reshape(1, -1)
                      for lp in ls], axis=0)                             # [L, 1, 3E]
    return (feat_w, feat_b, _row(p['emb_ln_g']), _row(p['emb_ln_b']),
            p['cls_token'].reshape(1, EMBED_DIM),
            wqkv, bqkv, stack_w('wo'), stack_v('bo'),
            stack_v('ln1_g'), stack_v('ln1_b'), stack_v('ln2_g'), stack_v('ln2_b'),
            stack_w('w1'), stack_v('b1'), stack_w('w2'), stack_v('b2'),
            p['cw1'], _row(p['cb1']), _row(p['cln_g']), _row(p['cln_b']),
            p['cw2'], _row(p['cb2']),
            p['iw1'], _row(p['ib1']), _row(p['iln_g']), _row(p['iln_b']),
            p['iw2'], _row(p['ib2']))


# =============================================================================
# Parameter init (deterministic, mirroring the PyTorch _init_weights)
# =============================================================================
def _xavier(key, out_f, in_f):
    bound = math.sqrt(6.0 / (in_f + out_f))
    return jax.random.uniform(key, (out_f, in_f), jnp.float32, -bound, bound)


def init_params(key):
    keys = iter(jax.random.split(key, 64))
    nxt = lambda: next(keys)
    z = lambda n: jnp.zeros((n,), jnp.float32)
    o = lambda n: jnp.ones((n,), jnp.float32)

    p = {}
    # stand-in backbone stem (see TODO(synk) in fused_forward_kernel)
    p['stem_w'] = _xavier(nxt(), NUM_FEATURES, IN_CH).T         # [C, F]
    p['stem_b'] = z(NUM_FEATURES)
    # feature_embedding
    p['emb_w'] = _xavier(nxt(), EMBED_DIM, NUM_FEATURES).T      # [F, E]
    p['emb_b'] = z(EMBED_DIM)
    p['emb_ln_g'] = o(EMBED_DIM)
    p['emb_ln_b'] = z(EMBED_DIM)
    # cls token ~ N(0, 0.02)
    p['cls_token'] = 0.02 * jax.random.normal(nxt(), (1, 1, EMBED_DIM), jnp.float32)

    layers = []
    for _ in range(NUM_LAYERS):
        in_proj = _xavier(nxt(), 3 * EMBED_DIM, EMBED_DIM)      # [3E, E]
        layers.append({
            'wq': in_proj[:EMBED_DIM].T,
            'wk': in_proj[EMBED_DIM:2 * EMBED_DIM].T,
            'wv': in_proj[2 * EMBED_DIM:].T,
            'bq': z(EMBED_DIM), 'bk': z(EMBED_DIM), 'bv': z(EMBED_DIM),
            'wo': _xavier(nxt(), EMBED_DIM, EMBED_DIM).T,
            'bo': z(EMBED_DIM),
            'ln1_g': o(EMBED_DIM), 'ln1_b': z(EMBED_DIM),
            'ln2_g': o(EMBED_DIM), 'ln2_b': z(EMBED_DIM),
            'w1': _xavier(nxt(), FF_DIM, EMBED_DIM).T,          # [E, FF]
            'b1': z(FF_DIM),
            'w2': _xavier(nxt(), EMBED_DIM, FF_DIM).T,          # [FF, E]
            'b2': z(EMBED_DIM),
        })
    p['layers'] = layers

    # study classifier: E -> 128 -> 1
    p['cw1'] = _xavier(nxt(), 128, EMBED_DIM).T
    p['cb1'] = z(128)
    p['cln_g'] = o(128)
    p['cln_b'] = z(128)
    p['cw2'] = _xavier(nxt(), 1, 128).T
    p['cb2'] = z(1)
    # image classifier: E -> 64 -> 1
    p['iw1'] = _xavier(nxt(), 64, EMBED_DIM).T
    p['ib1'] = z(64)
    p['iln_g'] = o(64)
    p['iln_b'] = z(64)
    p['iw2'] = _xavier(nxt(), 1, 64).T
    p['ib2'] = z(1)
    return p


# =============================================================================
# Forward (mirrors TransformerMURAClassifier.forward)
# =============================================================================
def forward(x_list, params):
    B = len(x_list)
    N = max(x.shape[0] for x in x_list)
    C, H, W = x_list[0].shape[1:]
    S = N + 1

    padded, attn_mask_l, orig_mask_l = [], [], []
    for imgs in x_list:
        n = imgs.shape[0]
        if n < N:
            pad = jnp.zeros((N - n, C, H, W), jnp.float32)
            imgs = jnp.concatenate([imgs, pad], axis=0)
        padded.append(imgs[None])
        m = jnp.ones((S,), jnp.float32).at[:n + 1].set(0.0)     # 1.0 = padded key
        attn_mask_l.append(m[None])
        om = jnp.zeros((N,), jnp.float32).at[:n].set(1.0)       # 1.0 = real image
        orig_mask_l.append(om[None])

    padded_batch = jnp.concatenate(padded, axis=0)              # [B, N, C, H, W]
    attn_masks = jnp.concatenate(attn_mask_l, axis=0)           # [B, S]
    orig_masks = jnp.concatenate(orig_mask_l, axis=0)           # [B, N]

    # lane-dense spatial layout for the in-kernel GAP; prepend one zero "cls
    # slot" row per study so the whole sequence lives in one [B*S, ...] slab.
    imgs_flat = padded_batch.reshape(B, N, C, H * W)
    rows = jnp.concatenate(
        [jnp.zeros((B, 1, C, H * W), jnp.float32), imgs_flat], axis=1)
    rows = rows.reshape(B * S, C, H * W)

    packed = _pack_params(params)
    n_in = 3 + len(packed)

    study, image_logits, attn_weights = pl.pallas_call(
        fused_forward_kernel,
        out_shape=(jax.ShapeDtypeStruct((B, 1), jnp.float32),
                   jax.ShapeDtypeStruct((B, N, 1), jnp.float32),
                   jax.ShapeDtypeStruct((B, N, 1), jnp.float32)),
        in_specs=[pl.BlockSpec(memory_space=VMEM)] * n_in,
        out_specs=(pl.BlockSpec(memory_space=VMEM),) * 3,
    )(rows, attn_masks, orig_masks, *packed)

    return study, image_logits, attn_weights, orig_masks[..., None]


if __name__ == "__main__":
    key = jax.random.PRNGKey(0)
    kp, k1, k2 = jax.random.split(key, 3)
    params = init_params(kp)

    # batch of 2 studies: 3 and 2 images, each image [C=4, H=16, W=16] (NCHW)
    x1 = jax.random.normal(k1, (3, IN_CH, IMG_HW, IMG_HW), jnp.float32)
    x2 = jax.random.normal(k2, (2, IN_CH, IMG_HW, IMG_HW), jnp.float32)

    study_logits, image_logits, attn_weights, masks = forward([x1, x2], params)
    jax.block_until_ready((study_logits, image_logits, attn_weights, masks))

    assert study_logits.shape == (2, 1)
    assert image_logits.shape == (2, 3, 1)
    assert attn_weights.shape == (2, 3, 1)
    assert masks.shape == (2, 3, 1)
    assert bool(jnp.all(jnp.isfinite(study_logits)))
    assert bool(jnp.all(jnp.isfinite(image_logits)))
    assert bool(jnp.all(jnp.isfinite(attn_weights)))
    print("KERNEL_OK")
</pallas_src>

<mosaic_0001>
module attributes {stable_mosaic.version = 11 : i64} {
  func.func @fused_forward_kernel(%arg0: memref<8x4x256xf32, #tpu.memory_space<vmem>>, %arg1: memref<2x4xf32, #tpu.memory_space<vmem>>, %arg2: memref<2x3xf32, #tpu.memory_space<vmem>>, %arg3: memref<4x64xf32, #tpu.memory_space<vmem>>, %arg4: memref<1x64xf32, #tpu.memory_space<vmem>>, %arg5: memref<1x64xf32, #tpu.memory_space<vmem>>, %arg6: memref<1x64xf32, #tpu.memory_space<vmem>>, %arg7: memref<1x64xf32, #tpu.memory_space<vmem>>, %arg8: memref<2x64x192xf32, #tpu.memory_space<vmem>>, %arg9: memref<2x1x192xf32, #tpu.memory_space<vmem>>, %arg10: memref<2x64x64xf32, #tpu.memory_space<vmem>>, %arg11: memref<2x1x64xf32, #tpu.memory_space<vmem>>, %arg12: memref<2x1x64xf32, #tpu.memory_space<vmem>>, %arg13: memref<2x1x64xf32, #tpu.memory_space<vmem>>, %arg14: memref<2x1x64xf32, #tpu.memory_space<vmem>>, %arg15: memref<2x1x64xf32, #tpu.memory_space<vmem>>, %arg16: memref<2x64x256xf32, #tpu.memory_space<vmem>>, %arg17: memref<2x1x256xf32, #tpu.memory_space<vmem>>, %arg18: memref<2x256x64xf32, #tpu.memory_space<vmem>>, %arg19: memref<2x1x64xf32, #tpu.memory_space<vmem>>, %arg20: memref<64x128xf32, #tpu.memory_space<vmem>>, %arg21: memref<1x128xf32, #tpu.memory_space<vmem>>, %arg22: memref<1x128xf32, #tpu.memory_space<vmem>>, %arg23: memref<1x128xf32, #tpu.memory_space<vmem>>, %arg24: memref<128x1xf32, #tpu.memory_space<vmem>>, %arg25: memref<1x1xf32, #tpu.memory_space<vmem>>, %arg26: memref<64x64xf32, #tpu.memory_space<vmem>>, %arg27: memref<1x64xf32, #tpu.memory_space<vmem>>, %arg28: memref<1x64xf32, #tpu.memory_space<vmem>>, %arg29: memref<1x64xf32, #tpu.memory_space<vmem>>, %arg30: memref<64x1xf32, #tpu.memory_space<vmem>>, %arg31: memref<1x1xf32, #tpu.memory_space<vmem>>, %arg32: memref<2x1xf32, #tpu.memory_space<vmem>>, %arg33: memref<2x3x1xf32, #tpu.memory_space<vmem>>, %arg34: memref<2x3x1xf32, #tpu.memory_space<vmem>>) attributes {dimension_semantics = [], scalar_prefetch = 0 : i64, scratch_operands = 0 : i64, tpu.core_type = #tpu.core_type<tc>} {
    %c0 = arith.constant 0 : index
    %c0_0 = arith.constant 0 : index
    %c0_1 = arith.constant 0 : index
    %0 = vector.load %arg0[%c0, %c0_0, %c0_1] : memref<8x4x256xf32, #tpu.memory_space<vmem>>, vector<8x4x256xf32>
    %cst = arith.constant dense<0.000000e+00> : vector<8x4xf32>
    %1 = vector.multi_reduction <add>, %0, %cst [2] : vector<8x4x256xf32> to vector<8x4xf32>
    %cst_2 = arith.constant 2.560000e+02 : f32
    %2 = vector.broadcast %cst_2 : f32 to vector<8x4xf32>
    %3 = arith.divf %1, %2 : vector<8x4xf32>
    %c0_3 = arith.constant 0 : index
    %c0_4 = arith.constant 0 : index
    %4 = vector.load %arg3[%c0_3, %c0_4] : memref<4x64xf32, #tpu.memory_space<vmem>>, vector<4x64xf32>
    %cst_5 = arith.constant dense<0.000000e+00> : vector<8x64xf32>
    %5 = tpu.matmul %3, %4, %cst_5 {dimension_numbers = #tpu.dot_dimension_numbers<[1], [0], [0], [1], [0, 0, 1, 1], [], []>} : vector<8x4xf32>, vector<4x64xf32>, vector<8x64xf32> -> vector<8x64xf32>
    %c0_6 = arith.constant 0 : index
    %c0_7 = arith.constant 0 : index
    %6 = vector.load %arg4[%c0_6, %c0_7] : memref<1x64xf32, #tpu.memory_space<vmem>>, vector<1x64xf32>
    %7 = vector.broadcast %6 : vector<1x64xf32> to vector<8x64xf32>
    %8 = arith.addf %5, %7 : vector<8x64xf32>
    %c0_8 = arith.constant 0 : index
    %c0_9 = arith.constant 0 : index
    %9 = vector.load %arg5[%c0_8, %c0_9] : memref<1x64xf32, #tpu.memory_space<vmem>>, vector<1x64xf32>
    %c0_10 = arith.constant 0 : index
    %c0_11 = arith.constant 0 : index
    %10 = vector.load %arg6[%c0_10, %c0_11] : memref<1x64xf32, #tpu.memory_space<vmem>>, vector<1x64xf32>
    %cst_12 = arith.constant dense<0.000000e+00> : vector<8xf32>
    %11 = vector.multi_reduction <add>, %8, %cst_12 [1] : vector<8x64xf32> to vector<8xf32>
    %12 = vector.shape_cast %11 : vector<8xf32> to vector<8x1xf32>
    %cst_13 = arith.constant 6.400000e+01 : f32
    %13 = vector.broadcast %cst_13 : f32 to vector<8x1xf32>
    %14 = arith.divf %12, %13 : vector<8x1xf32>
    %15 = vector.broadcast %14 : vector<8x1xf32> to vector<8x64xf32>
    %16 = arith.subf %8, %15 : vector<8x64xf32>
    %17 = arith.mulf %16, %16 : vector<8x64xf32>
    %cst_14 = arith.constant dense<0.000000e+00> : vector<8xf32>
    %18 = vector.multi_reduction <add>, %17, %cst_14 [1] : vector<8x64xf32> to vector<8xf32>
    %19 = vector.shape_cast %18 : vector<8xf32> to vector<8x1xf32>
    %cst_15 = arith.constant 6.400000e+01 : f32
    %20 = vector.broadcast %cst_15 : f32 to vector<8x1xf32>
    %21 = arith.divf %19, %20 : vector<8x1xf32>
    %22 = vector.broadcast %14 : vector<8x1xf32> to vector<8x64xf32>
    %23 = arith.subf %8, %22 : vector<8x64xf32>
    %cst_16 = arith.constant 9.99999974E-6 : f32
    %24 = vector.broadcast %cst_16 : f32 to vector<8x1xf32>
    %25 = arith.addf %21, %24 : vector<8x1xf32>
    %26 = math.rsqrt %25 : vector<8x1xf32>
    %27 = vector.broadcast %26 : vector<8x1xf32> to vector<8x64xf32>
    %28 = arith.mulf %23, %27 : vector<8x64xf32>
    %29 = vector.broadcast %9 : vector<1x64xf32> to vector<8x64xf32>
    %30 = arith.mulf %28, %29 : vector<8x64xf32>
    %31 = vector.broadcast %10 : vector<1x64xf32> to vector<8x64xf32>
    %32 = arith.addf %30, %31 : vector<8x64xf32>
    %cst_17 = arith.constant 0.000000e+00 : f32
    %33 = vector.broadcast %cst_17 : f32 to vector<8x64xf32>
    %34 = arith.maximumf %32, %33 : vector<8x64xf32>
    %35 = tpu.iota {dimensions = array<i32: 0>} : vector<8x1xi32>
    %c4_i32 = arith.constant 4 : i32
    %c0_i32 = arith.constant 0 : i32
    %36 = arith.cmpi eq, %c4_i32, %c0_i32 : i32
    %c1_i32 = arith.constant 1 : i32
    %37 = arith.select %36, %c1_i32, %c4_i32 : i32
    %38 = vector.broadcast %37 : i32 to vector<8x1xi32>
    %39 = arith.remsi %35, %38 : vector<8x1xi32>
    %c0_i32_18 = arith.constant 0 : i32
    %40 = vector.broadcast %c0_i32_18 : i32 to vector<8x1xi32>
    %41 = arith.cmpi ne, %39, %40 : vector<8x1xi32>
    %c0_i32_19 = arith.constant 0 : i32
    %42 = vector.broadcast %c0_i32_19 : i32 to vector<8x1xi32>
    %43 = arith.cmpi slt, %39, %42 : vector<8x1xi32>
    %c0_i32_20 = arith.constant 0 : i32
    %44 = arith.cmpi slt, %37, %c0_i32_20 : i32
    %45 = vector.broadcast %44 : i1 to vector<8x1xi1>
    %46 = vector.broadcast %45 : vector<8x1xi1> to vector<8x1xi1>
    %47 = arith.xori %43, %46 : vector<8x1xi1>
    %48 = arith.andi %47, %41 : vector<8x1xi1>
    %49 = vector.broadcast %37 : i32 to vector<8x1xi32>
    %50 = arith.addi %39, %49 : vector<8x1xi32>
    %51 = arith.select %48, %50, %39 : vector<8x1xi1>, vector<8x1xi32>
    %c0_i32_21 = arith.constant 0 : i32
    %52 = vector.broadcast %c0_i32_21 : i32 to vector<8x1xi32>
    %53 = arith.cmpi eq, %51, %52 : vector<8x1xi32>
    %c0_22 = arith.constant 0 : index
    %c0_23 = arith.constant 0 : index
    %54 = vector.load %arg7[%c0_22, %c0_23] : memref<1x64xf32, #tpu.memory_space<vmem>>, vector<1x64xf32>
    %55 = vector.shape_cast %53 : vector<8x1xi1> to vector<8x1xi1>
    %56 = vector.broadcast %55 : vector<8x1xi1> to vector<8x64xi1>
    %57 = vector.shape_cast %54 : vector<1x64xf32> to vector<1x64xf32>
    %58 = vector.broadcast %57 : vector<1x64xf32> to vector<8x64xf32>
    %59 = arith.select %56, %58, %34 : vector<8x64xi1>, vector<8x64xf32>
    %c0_24 = arith.constant 0 : index
    %c0_25 = arith.constant 0 : index
    %60 = vector.load %arg1[%c0_24, %c0_25] : memref<2x4xf32, #tpu.memory_space<vmem>>, vector<2x4xf32>
    %cst_26 = arith.constant -1.000000e+30 : f32
    %61 = vector.broadcast %cst_26 : f32 to vector<2x4xf32>
    %62 = arith.mulf %60, %61 : vector<2x4xf32>
    %63 = vector.shape_cast %62 : vector<2x4xf32> to vector<2x1x4xf32>
    %c0_27 = arith.constant 0 : index
    %c0_28 = arith.constant 0 : index
    %c0_29 = arith.constant 0 : index
    %64 = vector.load %arg12[%c0_27, %c0_28, %c0_29] : memref<2x1x64xf32, #tpu.memory_space<vmem>>, vector<1x1x64xf32>
    %65 = vector.shape_cast %64 : vector<1x1x64xf32> to vector<1x64xf32>
    %c0_30 = arith.constant 0 : index
    %c0_31 = arith.constant 0 : index
    %c0_32 = arith.constant 0 : index
    %66 = vector.load %arg13[%c0_30, %c0_31, %c0_32] : memref<2x1x64xf32, #tpu.memory_space<vmem>>, vector<1x1x64xf32>
    %67 = vector.shape_cast %66 : vector<1x1x64xf32> to vector<1x64xf32>
    %cst_33 = arith.constant dense<0.000000e+00> : vector<8xf32>
    %68 = vector.multi_reduction <add>, %59, %cst_33 [1] : vector<8x64xf32> to vector<8xf32>
    %69 = vector.shape_cast %68 : vector<8xf32> to vector<8x1xf32>
    %cst_34 = arith.constant 6.400000e+01 : f32
    %70 = vector.broadcast %cst_34 : f32 to vector<8x1xf32>
    %71 = arith.divf %69, %70 : vector<8x1xf32>
    %72 = vector.broadcast %71 : vector<8x1xf32> to vector<8x64xf32>
    %73 = arith.subf %59, %72 : vector<8x64xf32>
    %74 = arith.mulf %73, %73 : vector<8x64xf32>
    %cst_35 = arith.constant dense<0.000000e+00> : vector<8xf32>
    %75 = vector.multi_reduction <add>, %74, %cst_35 [1] : vector<8x64xf32> to vector<8xf32>
    %76 = vector.shape_cast %75 : vector<8xf32> to vector<8x1xf32>
    %cst_36 = arith.constant 6.400000e+01 : f32
    %77 = vector.broadcast %cst_36 : f32 to vector<8x1xf32>
    %78 = arith.divf %76, %77 : vector<8x1xf32>
    %79 = vector.broadcast %71 : vector<8x1xf32> to vector<8x64xf32>
    %80 = arith.subf %59, %79 : vector<8x64xf32>
    %cst_37 = arith.constant 9.99999974E-6 : f32
    %81 = vector.broadcast %cst_37 : f32 to vector<8x1xf32>
    %82 = arith.addf %78, %81 : vector<8x1xf32>
    %83 = math.rsqrt %82 : vector<8x1xf32>
    %84 = vector.broadcast %83 : vector<8x1xf32> to vector<8x64xf32>
    %85 = arith.mulf %80, %84 : vector<8x64xf32>
    %86 = vector.broadcast %65 : vector<1x64xf32> to vector<8x64xf32>
    %87 = arith.mulf %85, %86 : vector<8x64xf32>
    %88 = vector.broadcast %67 : vector<1x64xf32> to vector<8x64xf32>
    %89 = arith.addf %87, %88 : vector<8x64xf32>
    %c0_38 = arith.constant 0 : index
    %c0_39 = arith.constant 0 : index
    %c0_40 = arith.constant 0 : index
    %90 = vector.load %arg8[%c0_38, %c0_39, %c0_40] : memref<2x64x192xf32, #tpu.memory_space<vmem>>, vector<1x64x192xf32>
    %91 = vector.shape_cast %90 : vector<1x64x192xf32> to vector<64x192xf32>
    %cst_41 = arith.constant dense<0.000000e+00> : vector<8x192xf32>
    %92 = tpu.matmul %89, %91, %cst_41 {dimension_numbers = #tpu.dot_dimension_numbers<[1], [0], [0], [1], [0, 0, 1, 1], [], []>} : vector<8x64xf32>, vector<64x192xf32>, vector<8x192xf32> -> vector<8x192xf32>
    %c0_42 = arith.constant 0 : index
    %c0_43 = arith.constant 0 : index
    %c0_44 = arith.constant 0 : index
    %93 = vector.load %arg9[%c0_42, %c0_43, %c0_44] : memref<2x1x192xf32, #tpu.memory_space<vmem>>, vector<1x1x192xf32>
    %94 = vector.shape_cast %93 : vector<1x1x192xf32> to vector<1x192xf32>
    %95 = vector.broadcast %94 : vector<1x192xf32> to vector<8x192xf32>
    %96 = arith.addf %92, %95 : vector<8x192xf32>
    %c0_45 = arith.constant 0 : index
    %c0_46 = arith.constant 0 : index
    %c0_47 = arith.constant 0 : index
    %97 = vector.load %arg10[%c0_45, %c0_46, %c0_47] : memref<2x64x64xf32, #tpu.memory_space<vmem>>, vector<1x64x64xf32>
    %98 = vector.shape_cast %97 : vector<1x64x64xf32> to vector<64x64xf32>
    %cst_48 = arith.constant 0.000000e+00 : f32
    %99 = vector.broadcast %cst_48 : f32 to vector<8x64xf32>
    %100 = vector.extract_strided_slice %96 {offsets = [0, 0], sizes = [8, 16], strides = [1, 1]} : vector<8x192xf32> to vector<8x16xf32>
    %101 = vector.shape_cast %100 : vector<8x16xf32> to vector<2x4x16xf32>
    %102 = vector.extract_strided_slice %96 {offsets = [0, 64], sizes = [8, 16], strides = [1, 1]} : vector<8x192xf32> to vector<8x16xf32>
    %103 = vector.shape_cast %102 : vector<8x16xf32> to vector<2x4x16xf32>
    %104 = vector.extract_strided_slice %96 {offsets = [0, 128], sizes = [8, 16], strides = [1, 1]} : vector<8x192xf32> to vector<8x16xf32>
    %105 = vector.shape_cast %104 : vector<8x16xf32> to vector<2x4x16xf32>
    "tpu.trace_start"() <{level = 10 : i32, message = "bqd,bkd->bqk"}> : () -> ()
    %cst_49 = arith.constant dense<0.000000e+00> : vector<2x4x4xf32>
    %106 = tpu.matmul %101, %103, %cst_49 {dimension_numbers = #tpu.dot_dimension_numbers<[2], [2], [1], [1], [0, 0, 0, 1, 1, 1], [0], [0]>} : vector<2x4x16xf32>, vector<2x4x16xf32>, vector<2x4x4xf32> -> vector<2x4x4xf32>
    "tpu.trace_stop"() : () -> ()
    %cst_50 = arith.constant 2.500000e-01 : f32
    %107 = vector.broadcast %cst_50 : f32 to vector<2x4x4xf32>
    %108 = arith.mulf %106, %107 : vector<2x4x4xf32>
    %109 = vector.broadcast %63 : vector<2x1x4xf32> to vector<2x4x4xf32>
    %110 = arith.addf %108, %109 : vector<2x4x4xf32>
    %cst_51 = arith.constant dense<0xFF800000> : vector<2x4xf32>
    %111 = vector.multi_reduction <maximumf>, %110, %cst_51 [2] : vector<2x4x4xf32> to vector<2x4xf32>
    %112 = vector.shape_cast %111 : vector<2x4xf32> to vector<2x4x1xf32>
    %113 = vector.broadcast %112 : vector<2x4x1xf32> to vector<2x4x4xf32>
    %114 = arith.subf %110, %113 : vector<2x4x4xf32>
    %115 = math.exp %114 : vector<2x4x4xf32>
    %cst_52 = arith.constant dense<0.000000e+00> : vector<2x4xf32>
    %116 = vector.multi_reduction <add>, %115, %cst_52 [2] : vector<2x4x4xf32> to vector<2x4xf32>
    %117 = vector.shape_cast %116 : vector<2x4xf32> to vector<2x4x1xf32>
    %118 = vector.broadcast %117 : vector<2x4x1xf32> to vector<2x4x4xf32>
    %119 = arith.divf %115, %118 : vector<2x4x4xf32>
    "tpu.trace_start"() <{level = 10 : i32, message = "bqk,bkd->bqd"}> : () -> ()
    %cst_53 = arith.constant dense<0.000000e+00> : vector<2x4x16xf32>
    %120 = tpu.matmul %119, %105, %cst_53 {dimension_numbers = #tpu.dot_dimension_numbers<[2], [1], [1], [2], [0, 0, 0, 1, 1, 2], [0], [0]>} : vector<2x4x4xf32>, vector<2x4x16xf32>, vector<2x4x16xf32> -> vector<2x4x16xf32>
    "tpu.trace_stop"() : () -> ()
    %121 = vector.shape_cast %120 : vector<2x4x16xf32> to vector<8x16xf32>
    %122 = vector.extract_strided_slice %98 {offsets = [0, 0], sizes = [16, 64], strides = [1, 1]} : vector<64x64xf32> to vector<16x64xf32>
    %cst_54 = arith.constant dense<0.000000e+00> : vector<8x64xf32>
    %123 = tpu.matmul %121, %122, %cst_54 {dimension_numbers = #tpu.dot_dimension_numbers<[1], [0], [0], [1], [0, 0, 1, 1], [], []>} : vector<8x16xf32>, vector<16x64xf32>, vector<8x64xf32> -> vector<8x64xf32>
    %124 = arith.addf %99, %123 : vector<8x64xf32>
    %125 = vector.extract_strided_slice %96 {offsets = [0, 16], sizes = [8, 16], strides = [1, 1]} : vector<8x192xf32> to vector<8x16xf32>
    %126 = vector.shape_cast %125 : vector<8x16xf32> to vector<2x4x16xf32>
    %127 = vector.extract_strided_slice %96 {offsets = [0, 80], sizes = [8, 16], strides = [1, 1]} : vector<8x192xf32> to vector<8x16xf32>
    %128 = vector.shape_cast %127 : vector<8x16xf32> to vector<2x4x16xf32>
    %129 = vector.extract_strided_slice %96 {offsets = [0, 144], sizes = [8, 16], strides = [1, 1]} : vector<8x192xf32> to vector<8x16xf32>
    %130 = vector.shape_cast %129 : vector<8x16xf32> to vector<2x4x16xf32>
    "tpu.trace_start"() <{level = 10 : i32, message = "bqd,bkd->bqk"}> : () -> ()
    %cst_55 = arith.constant dense<0.000000e+00> : vector<2x4x4xf32>
    %131 = tpu.matmul %126, %128, %cst_55 {dimension_numbers = #tpu.dot_dimension_numbers<[2], [2], [1], [1], [0, 0, 0, 1, 1, 1], [0], [0]>} : vector<2x4x16xf32>, vector<2x4x16xf32>, vector<2x4x4xf32> -> vector<2x4x4xf32>
    "tpu.trace_stop"() : () -> ()
    %cst_56 = arith.constant 2.500000e-01 : f32
    %132 = vector.broadcast %cst_56 : f32 to vector<2x4x4xf32>
    %133 = arith.mulf %131, %132 : vector<2x4x4xf32>
    %134 = vector.broadcast %63 : vector<2x1x4xf32> to vector<2x4x4xf32>
    %135 = arith.addf %133, %134 : vector<2x4x4xf32>
    %cst_57 = arith.constant dense<0xFF800000> : vector<2x4xf32>
    %136 = vector.multi_reduction <maximumf>, %135, %cst_57 [2] : vector<2x4x4xf32> to vector<2x4xf32>
    %137 = vector.shape_cast %136 : vector<2x4xf32> to vector<2x4x1xf32>
    %138 = vector.broadcast %137 : vector<2x4x1xf32> to vector<2x4x4xf32>
    %139 = arith.subf %135, %138 : vector<2x4x4xf32>
    %140 = math.exp %139 : vector<2x4x4xf32>
    %cst_58 = arith.constant dense<0.000000e+00> : vector<2x4xf32>
    %141 = vector.multi_reduction <add>, %140, %cst_58 [2] : vector<2x4x4xf32> to vector<2x4xf32>
    %142 = vector.shape_cast %141 : vector<2x4xf32> to vector<2x4x1xf32>
    %143 = vector.broadcast %142 : vector<2x4x1xf32> to vector<2x4x4xf32>
    %144 = arith.divf %140, %143 : vector<2x4x4xf32>
    "tpu.trace_start"() <{level = 10 : i32, message = "bqk,bkd->bqd"}> : () -> ()
    %cst_59 = arith.constant dense<0.000000e+00> : vector<2x4x16xf32>
    %145 = tpu.matmul %144, %130, %cst_59 {dimension_numbers = #tpu.dot_dimension_numbers<[2], [1], [1], [2], [0, 0, 0, 1, 1, 2], [0], [0]>} : vector<2x4x4xf32>, vector<2x4x16xf32>, vector<2x4x16xf32> -> vector<2x4x16xf32>
    "tpu.trace_stop"() : () -> ()
    %146 = vector.shape_cast %145 : vector<2x4x16xf32> to vector<8x16xf32>
    %147 = vector.extract_strided_slice %98 {offsets = [16, 0], sizes = [16, 64], strides = [1, 1]} : vector<64x64xf32> to vector<16x64xf32>
    %cst_60 = arith.constant dense<0.000000e+00> : vector<8x64xf32>
    %148 = tpu.matmul %146, %147, %cst_60 {dimension_numbers = #tpu.dot_dimension_numbers<[1], [0], [0], [1], [0, 0, 1, 1], [], []>} : vector<8x16xf32>, vector<16x64xf32>, vector<8x64xf32> -> vector<8x64xf32>
    %149 = arith.addf %124, %148 : vector<8x64xf32>
    %150 = vector.extract_strided_slice %96 {offsets = [0, 32], sizes = [8, 16], strides = [1, 1]} : vector<8x192xf32> to vector<8x16xf32>
    %151 = vector.shape_cast %150 : vector<8x16xf32> to vector<2x4x16xf32>
    %152 = vector.extract_strided_slice %96 {offsets = [0, 96], sizes = [8, 16], strides = [1, 1]} : vector<8x192xf32> to vector<8x16xf32>
    %153 = vector.shape_cast %152 : vector<8x16xf32> to vector<2x4x16xf32>
    %154 = vector.extract_strided_slice %96 {offsets = [0, 160], sizes = [8, 16], strides = [1, 1]} : vector<8x192xf32> to vector<8x16xf32>
    %155 = vector.shape_cast %154 : vector<8x16xf32> to vector<2x4x16xf32>
    "tpu.trace_start"() <{level = 10 : i32, message = "bqd,bkd->bqk"}> : () -> ()
    %cst_61 = arith.constant dense<0.000000e+00> : vector<2x4x4xf32>
    %156 = tpu.matmul %151, %153, %cst_61 {dimension_numbers = #tpu.dot_dimension_numbers<[2], [2], [1], [1], [0, 0, 0, 1, 1, 1], [0], [0]>} : vector<2x4x16xf32>, vector<2x4x16xf32>, vector<2x4x4xf32> -> vector<2x4x4xf32>
    "tpu.trace_stop"() : () -> ()
    %cst_62 = arith.constant 2.500000e-01 : f32
    %157 = vector.broadcast %cst_62 : f32 to vector<2x4x4xf32>
    %158 = arith.mulf %156, %157 : vector<2x4x4xf32>
    %159 = vector.broadcast %63 : vector<2x1x4xf32> to vector<2x4x4xf32>
    %160 = arith.addf %158, %159 : vector<2x4x4xf32>
    %cst_63 = arith.constant dense<0xFF800000> : vector<2x4xf32>
    %161 = vector.multi_reduction <maximumf>, %160, %cst_63 [2] : vector<2x4x4xf32> to vector<2x4xf32>
    %162 = vector.shape_cast %161 : vector<2x4xf32> to vector<2x4x1xf32>
    %163 = vector.broadcast %162 : vector<2x4x1xf32> to vector<2x4x4xf32>
    %164 = arith.subf %160, %163 : vector<2x4x4xf32>
    %165 = math.exp %164 : vector<2x4x4xf32>
    %cst_64 = arith.constant dense<0.000000e+00> : vector<2x4xf32>
    %166 = vector.multi_reduction <add>, %165, %cst_64 [2] : vector<2x4x4xf32> to vector<2x4xf32>
    %167 = vector.shape_cast %166 : vector<2x4xf32> to vector<2x4x1xf32>
    %168 = vector.broadcast %167 : vector<2x4x1xf32> to vector<2x4x4xf32>
    %169 = arith.divf %165, %168 : vector<2x4x4xf32>
    "tpu.trace_start"() <{level = 10 : i32, message = "bqk,bkd->bqd"}> : () -> ()
    %cst_65 = arith.constant dense<0.000000e+00> : vector<2x4x16xf32>
    %170 = tpu.matmul %169, %155, %cst_65 {dimension_numbers = #tpu.dot_dimension_numbers<[2], [1], [1], [2], [0, 0, 0, 1, 1, 2], [0], [0]>} : vector<2x4x4xf32>, vector<2x4x16xf32>, vector<2x4x16xf32> -> vector<2x4x16xf32>
    "tpu.trace_stop"() : () -> ()
    %171 = vector.shape_cast %170 : vector<2x4x16xf32> to vector<8x16xf32>
    %172 = vector.extract_strided_slice %98 {offsets = [32, 0], sizes = [16, 64], strides = [1, 1]} : vector<64x64xf32> to vector<16x64xf32>
    %cst_66 = arith.constant dense<0.000000e+00> : vector<8x64xf32>
    %173 = tpu.matmul %171, %172, %cst_66 {dimension_numbers = #tpu.dot_dimension_numbers<[1], [0], [0], [1], [0, 0, 1, 1], [], []>} : vector<8x16xf32>, vector<16x64xf32>, vector<8x64xf32> -> vector<8x64xf32>
    %174 = arith.addf %149, %173 : vector<8x64xf32>
    %175 = vector.extract_strided_slice %96 {offsets = [0, 48], sizes = [8, 16], strides = [1, 1]} : vector<8x192xf32> to vector<8x16xf32>
    %176 = vector.shape_cast %175 : vector<8x16xf32> to vector<2x4x16xf32>
    %177 = vector.extract_strided_slice %96 {offsets = [0, 112], sizes = [8, 16], strides = [1, 1]} : vector<8x192xf32> to vector<8x16xf32>
    %178 = vector.shape_cast %177 : vector<8x16xf32> to vector<2x4x16xf32>
    %179 = vector.extract_strided_slice %96 {offsets = [0, 176], sizes = [8, 16], strides = [1, 1]} : vector<8x192xf32> to vector<8x16xf32>
    %180 = vector.shape_cast %179 : vector<8x16xf32> to vector<2x4x16xf32>
    "tpu.trace_start"() <{level = 10 : i32, message = "bqd,bkd->bqk"}> : () -> ()
    %cst_67 = arith.constant dense<0.000000e+00> : vector<2x4x4xf32>
    %181 = tpu.matmul %176, %178, %cst_67 {dimension_numbers = #tpu.dot_dimension_numbers<[2], [2], [1], [1], [0, 0, 0, 1, 1, 1], [0], [0]>} : vector<2x4x16xf32>, vector<2x4x16xf32>, vector<2x4x4xf32> -> vector<2x4x4xf32>
    "tpu.trace_stop"() : () -> ()
    %cst_68 = arith.constant 2.500000e-01 : f32
    %182 = vector.broadcast %cst_68 : f32 to vector<2x4x4xf32>
    %183 = arith.mulf %181, %182 : vector<2x4x4xf32>
    %184 = vector.broadcast %63 : vector<2x1x4xf32> to vector<2x4x4xf32>
    %185 = arith.addf %183, %184 : vector<2x4x4xf32>
    %cst_69 = arith.constant dense<0xFF800000> : vector<2x4xf32>
    %186 = vector.multi_reduction <maximumf>, %185, %cst_69 [2] : vector<2x4x4xf32> to vector<2x4xf32>
    %187 = vector.shape_cast %186 : vector<2x4xf32> to vector<2x4x1xf32>
    %188 = vector.broadcast %187 : vector<2x4x1xf32> to vector<2x4x4xf32>
    %189 = arith.subf %185, %188 : vector<2x4x4xf32>
    %190 = math.exp %189 : vector<2x4x4xf32>
    %cst_70 = arith.constant dense<0.000000e+00> : vector<2x4xf32>
    %191 = vector.multi_reduction <add>, %190, %cst_70 [2] : vector<2x4x4xf32> to vector<2x4xf32>
    %192 = vector.shape_cast %191 : vector<2x4xf32> to vector<2x4x1xf32>
    %193 = vector.broadcast %192 : vector<2x4x1xf32> to vector<2x4x4xf32>
    %194 = arith.divf %190, %193 : vector<2x4x4xf32>
    "tpu.trace_start"() <{level = 10 : i32, message = "bqk,bkd->bqd"}> : () -> ()
    %cst_71 = arith.constant dense<0.000000e+00> : vector<2x4x16xf32>
    %195 = tpu.matmul %194, %180, %cst_71 {dimension_numbers = #tpu.dot_dimension_numbers<[2], [1], [1], [2], [0, 0, 0, 1, 1, 2], [0], [0]>} : vector<2x4x4xf32>, vector<2x4x16xf32>, vector<2x4x16xf32> -> vector<2x4x16xf32>
    "tpu.trace_stop"() : () -> ()
    %196 = vector.shape_cast %195 : vector<2x4x16xf32> to vector<8x16xf32>
    %197 = vector.extract_strided_slice %98 {offsets = [48, 0], sizes = [16, 64], strides = [1, 1]} : vector<64x64xf32> to vector<16x64xf32>
    %cst_72 = arith.constant dense<0.000000e+00> : vector<8x64xf32>
    %198 = tpu.matmul %196, %197, %cst_72 {dimension_numbers = #tpu.dot_dimension_numbers<[1], [0], [0], [1], [0, 0, 1, 1], [], []>} : vector<8x16xf32>, vector<16x64xf32>, vector<8x64xf32> -> vector<8x64xf32>
    %199 = arith.addf %174, %198 : vector<8x64xf32>
    %200 = arith.addf %59, %199 : vector<8x64xf32>
    %c0_73 = arith.constant 0 : index
    %c0_74 = arith.constant 0 : index
    %c0_75 = arith.constant 0 : index
    %201 = vector.load %arg11[%c0_73, %c0_74, %c0_75] : memref<2x1x64xf32, #tpu.memory_space<vmem>>, vector<1x1x64xf32>
    %202 = vector.shape_cast %201 : vector<1x1x64xf32> to vector<1x64xf32>
    %203 = vector.broadcast %202 : vector<1x64xf32> to vector<8x64xf32>
    %204 = arith.addf %200, %203 : vector<8x64xf32>
    %c0_76 = arith.constant 0 : index
    %c0_77 = arith.constant 0 : index
    %c0_78 = arith.constant 0 : index
    %205 = vector.load %arg14[%c0_76, %c0_77, %c0_78] : memref<2x1x64xf32, #tpu.memory_space<vmem>>, vector<1x1x64xf32>
    %206 = vector.shape_cast %205 : vector<1x1x64xf32> to vector<1x64xf32>
    %c0_79 = arith.constant 0 : index
    %c0_80 = arith.constant 0 : index
    %c0_81 = arith.constant 0 : index
    %207 = vector.load %arg15[%c0_79, %c0_80, %c0_81] : memref<2x1x64xf32, #tpu.memory_space<vmem>>, vector<1x1x64xf32>
    %208 = vector.shape_cast %207 : vector<1x1x64xf32> to vector<1x64xf32>
    %cst_82 = arith.constant dense<0.000000e+00> : vector<8xf32>
    %209 = vector.multi_reduction <add>, %204, %cst_82 [1] : vector<8x64xf32> to vector<8xf32>
    %210 = vector.shape_cast %209 : vector<8xf32> to vector<8x1xf32>
    %cst_83 = arith.constant 6.400000e+01 : f32
    %211 = vector.broadcast %cst_83 : f32 to vector<8x1xf32>
    %212 = arith.divf %210, %211 : vector<8x1xf32>
    %213 = vector.broadcast %212 : vector<8x1xf32> to vector<8x64xf32>
    %214 = arith.subf %204, %213 : vector<8x64xf32>
    %215 = arith.mulf %214, %214 : vector<8x64xf32>
    %cst_84 = arith.constant dense<0.000000e+00> : vector<8xf32>
    %216 = vector.multi_reduction <add>, %215, %cst_84 [1] : vector<8x64xf32> to vector<8xf32>
    %217 = vector.shape_cast %216 : vector<8xf32> to vector<8x1xf32>
    %cst_85 = arith.constant 6.400000e+01 : f32
    %218 = vector.broadcast %cst_85 : f32 to vector<8x1xf32>
    %219 = arith.divf %217, %218 : vector<8x1xf32>
    %220 = vector.broadcast %212 : vector<8x1xf32> to vector<8x64xf32>
    %221 = arith.subf %204, %220 : vector<8x64xf32>
    %cst_86 = arith.constant 9.99999974E-6 : f32
    %222 = vector.broadcast %cst_86 : f32 to vector<8x1xf32>
    %223 = arith.addf %219, %222 : vector<8x1xf32>
    %224 = math.rsqrt %223 : vector<8x1xf32>
    %225 = vector.broadcast %224 : vector<8x1xf32> to vector<8x64xf32>
    %226 = arith.mulf %221, %225 : vector<8x64xf32>
    %227 = vector.broadcast %206 : vector<1x64xf32> to vector<8x64xf32>
    %228 = arith.mulf %226, %227 : vector<8x64xf32>
    %229 = vector.broadcast %208 : vector<1x64xf32> to vector<8x64xf32>
    %230 = arith.addf %228, %229 : vector<8x64xf32>
    %c0_87 = arith.constant 0 : index
    %c0_88 = arith.constant 0 : index
    %c0_89 = arith.constant 0 : index
    %231 = vector.load %arg16[%c0_87, %c0_88, %c0_89] : memref<2x64x256xf32, #tpu.memory_space<vmem>>, vector<1x64x256xf32>
    %232 = vector.shape_cast %231 : vector<1x64x256xf32> to vector<64x256xf32>
    %cst_90 = arith.constant dense<0.000000e+00> : vector<8x256xf32>
    %233 = tpu.matmul %230, %232, %cst_90 {dimension_numbers = #tpu.dot_dimension_numbers<[1], [0], [0], [1], [0, 0, 1, 1], [], []>} : vector<8x64xf32>, vector<64x256xf32>, vector<8x256xf32> -> vector<8x256xf32>
    %c0_91 = arith.constant 0 : index
    %c0_92 = arith.constant 0 : index
    %c0_93 = arith.constant 0 : index
    %234 = vector.load %arg17[%c0_91, %c0_92, %c0_93] : memref<2x1x256xf32, #tpu.memory_space<vmem>>, vector<1x1x256xf32>
    %235 = vector.shape_cast %234 : vector<1x1x256xf32> to vector<1x256xf32>
    %236 = vector.broadcast %235 : vector<1x256xf32> to vector<8x256xf32>
    %237 = arith.addf %233, %236 : vector<8x256xf32>
    %cst_94 = arith.constant 5.000000e-01 : f32
    %238 = vector.broadcast %cst_94 : f32 to vector<8x256xf32>
    %239 = arith.mulf %238, %237 : vector<8x256xf32>
    %cst_95 = arith.constant 0.707106769 : f32
    %240 = vector.broadcast %cst_95 : f32 to vector<8x256xf32>
    %241 = arith.mulf %237, %240 : vector<8x256xf32>
    %242 = math.absf %241 : vector<8x256xf32>
    %cst_96 = arith.constant 0.327591091 : f32
    %243 = vector.broadcast %cst_96 : f32 to vector<8x256xf32>
    %244 = arith.mulf %243, %242 : vector<8x256xf32>
    %cst_97 = arith.constant 1.000000e+00 : f32
    %245 = vector.broadcast %cst_97 : f32 to vector<8x256xf32>
    %246 = arith.addf %245, %244 : vector<8x256xf32>
    %cst_98 = arith.constant 1.000000e+00 : f32
    %247 = vector.broadcast %cst_98 : f32 to vector<8x256xf32>
    %248 = arith.divf %247, %246 : vector<8x256xf32>
    %cst_99 = arith.constant 1.06140542 : f32
    %249 = vector.broadcast %cst_99 : f32 to vector<8x256xf32>
    %250 = arith.mulf %249, %248 : vector<8x256xf32>
    %cst_100 = arith.constant -1.45315206 : f32
    %251 = vector.broadcast %cst_100 : f32 to vector<8x256xf32>
    %252 = arith.addf %250, %251 : vector<8x256xf32>
    %253 = arith.mulf %252, %248 : vector<8x256xf32>
    %cst_101 = arith.constant 1.42141378 : f32
    %254 = vector.broadcast %cst_101 : f32 to vector<8x256xf32>
    %255 = arith.addf %253, %254 : vector<8x256xf32>
    %256 = arith.mulf %255, %248 : vector<8x256xf32>
    %cst_102 = arith.constant -0.284496725 : f32
    %257 = vector.broadcast %cst_102 : f32 to vector<8x256xf32>
    %258 = arith.addf %256, %257 : vector<8x256xf32>
    %259 = arith.mulf %258, %248 : vector<8x256xf32>
    %cst_103 = arith.constant 0.254829586 : f32
    %260 = vector.broadcast %cst_103 : f32 to vector<8x256xf32>
    %261 = arith.addf %259, %260 : vector<8x256xf32>
    %262 = arith.mulf %261, %248 : vector<8x256xf32>
    %cst_104 = arith.constant 0.000000e+00 : f32
    %263 = vector.broadcast %cst_104 : f32 to vector<8x256xf32>
    %264 = arith.subf %263, %242 : vector<8x256xf32>
    %265 = arith.mulf %264, %242 : vector<8x256xf32>
    %266 = math.exp %265 : vector<8x256xf32>
    %267 = arith.mulf %262, %266 : vector<8x256xf32>
    %cst_105 = arith.constant 1.000000e+00 : f32
    %268 = vector.broadcast %cst_105 : f32 to vector<8x256xf32>
    %269 = arith.subf %268, %267 : vector<8x256xf32>
    %cst_106 = arith.constant 0.000000e+00 : f32
    %270 = vector.broadcast %cst_106 : f32 to vector<8x256xf32>
    %271 = arith.cmpf oge, %241, %270 : vector<8x256xf32>
    %cst_107 = arith.constant 0.000000e+00 : f32
    %272 = vector.broadcast %cst_107 : f32 to vector<8x256xf32>
    %273 = arith.subf %272, %269 : vector<8x256xf32>
    %274 = arith.select %271, %269, %273 : vector<8x256xi1>, vector<8x256xf32>
    %cst_108 = arith.constant 1.000000e+00 : f32
    %275 = vector.broadcast %cst_108 : f32 to vector<8x256xf32>
    %276 = arith.addf %275, %274 : vector<8x256xf32>
    %277 = arith.mulf %239, %276 : vector<8x256xf32>
    %c0_109 = arith.constant 0 : index
    %c0_110 = arith.constant 0 : index
    %c0_111 = arith.constant 0 : index
    %278 = vector.load %arg18[%c0_109, %c0_110, %c0_111] : memref<2x256x64xf32, #tpu.memory_space<vmem>>, vector<1x256x64xf32>
    %279 = vector.shape_cast %278 : vector<1x256x64xf32> to vector<256x64xf32>
    %cst_112 = arith.constant dense<0.000000e+00> : vector<8x64xf32>
    %280 = tpu.matmul %277, %279, %cst_112 {dimension_numbers = #tpu.dot_dimension_numbers<[1], [0], [0], [1], [0, 0, 1, 1], [], []>} : vector<8x256xf32>, vector<256x64xf32>, vector<8x64xf32> -> vector<8x64xf32>
    %c0_113 = arith.constant 0 : index
    %c0_114 = arith.constant 0 : index
    %c0_115 = arith.constant 0 : index
    %281 = vector.load %arg19[%c0_113, %c0_114, %c0_115] : memref<2x1x64xf32, #tpu.memory_space<vmem>>, vector<1x1x64xf32>
    %282 = vector.shape_cast %281 : vector<1x1x64xf32> to vector<1x64xf32>
    %283 = vector.broadcast %282 : vector<1x64xf32> to vector<8x64xf32>
    %284 = arith.addf %280, %283 : vector<8x64xf32>
    %285 = arith.addf %204, %284 : vector<8x64xf32>
    %c1 = arith.constant 1 : index
    %c0_116 = arith.constant 0 : index
    %c0_117 = arith.constant 0 : index
    %286 = vector.load %arg12[%c1, %c0_116, %c0_117] : memref<2x1x64xf32, #tpu.memory_space<vmem>>, vector<1x1x64xf32>
    %287 = vector.shape_cast %286 : vector<1x1x64xf32> to vector<1x64xf32>
    %c1_118 = arith.constant 1 : index
    %c0_119 = arith.constant 0 : index
    %c0_120 = arith.constant 0 : index
    %288 = vector.load %arg13[%c1_118, %c0_119, %c0_120] : memref<2x1x64xf32, #tpu.memory_space<vmem>>, vector<1x1x64xf32>
    %289 = vector.shape_cast %288 : vector<1x1x64xf32> to vector<1x64xf32>
    %cst_121 = arith.constant dense<0.000000e+00> : vector<8xf32>
    %290 = vector.multi_reduction <add>, %285, %cst_121 [1] : vector<8x64xf32> to vector<8xf32>
    %291 = vector.shape_cast %290 : vector<8xf32> to vector<8x1xf32>
    %cst_122 = arith.constant 6.400000e+01 : f32
    %292 = vector.broadcast %cst_122 : f32 to vector<8x1xf32>
    %293 = arith.divf %291, %292 : vector<8x1xf32>
    %294 = vector.broadcast %293 : vector<8x1xf32> to vector<8x64xf32>
    %295 = arith.subf %285, %294 : vector<8x64xf32>
    %296 = arith.mulf %295, %295 : vector<8x64xf32>
    %cst_123 = arith.constant dense<0.000000e+00> : vector<8xf32>
    %297 = vector.multi_reduction <add>, %296, %cst_123 [1] : vector<8x64xf32> to vector<8xf32>
    %298 = vector.shape_cast %297 : vector<8xf32> to vector<8x1xf32>
    %cst_124 = arith.constant 6.400000e+01 : f32
    %299 = vector.broadcast %cst_124 : f32 to vector<8x1xf32>
    %300 = arith.divf %298, %299 : vector<8x1xf32>
    %301 = vector.broadcast %293 : vector<8x1xf32> to vector<8x64xf32>
    %302 = arith.subf %285, %301 : vector<8x64xf32>
    %cst_125 = arith.constant 9.99999974E-6 : f32
    %303 = vector.broadcast %cst_125 : f32 to vector<8x1xf32>
    %304 = arith.addf %300, %303 : vector<8x1xf32>
    %305 = math.rsqrt %304 : vector<8x1xf32>
    %306 = vector.broadcast %305 : vector<8x1xf32> to vector<8x64xf32>
    %307 = arith.mulf %302, %306 : vector<8x64xf32>
    %308 = vector.broadcast %287 : vector<1x64xf32> to vector<8x64xf32>
    %309 = arith.mulf %307, %308 : vector<8x64xf32>
    %310 = vector.broadcast %289 : vector<1x64xf32> to vector<8x64xf32>
    %311 = arith.addf %309, %310 : vector<8x64xf32>
    %c1_126 = arith.constant 1 : index
    %c0_127 = arith.constant 0 : index
    %c0_128 = arith.constant 0 : index
    %312 = vector.load %arg8[%c1_126, %c0_127, %c0_128] : memref<2x64x192xf32, #tpu.memory_space<vmem>>, vector<1x64x192xf32>
    %313 = vector.shape_cast %312 : vector<1x64x192xf32> to vector<64x192xf32>
    %cst_129 = arith.constant dense<0.000000e+00> : vector<8x192xf32>
    %314 = tpu.matmul %311, %313, %cst_129 {dimension_numbers = #tpu.dot_dimension_numbers<[1], [0], [0], [1], [0, 0, 1, 1], [], []>} : vector<8x64xf32>, vector<64x192xf32>, vector<8x192xf32> -> vector<8x192xf32>
    %c1_130 = arith.constant 1 : index
    %c0_131 = arith.constant 0 : index
    %c0_132 = arith.constant 0 : index
    %315 = vector.load %arg9[%c1_130, %c0_131, %c0_132] : memref<2x1x192xf32, #tpu.memory_space<vmem>>, vector<1x1x192xf32>
    %316 = vector.shape_cast %315 : vector<1x1x192xf32> to vector<1x192xf32>
    %317 = vector.broadcast %316 : vector<1x192xf32> to vector<8x192xf32>
    %318 = arith.addf %314, %317 : vector<8x192xf32>
    %c1_133 = arith.constant 1 : index
    %c0_134 = arith.constant 0 : index
    %c0_135 = arith.constant 0 : index
    %319 = vector.load %arg10[%c1_133, %c0_134, %c0_135] : memref<2x64x64xf32, #tpu.memory_space<vmem>>, vector<1x64x64xf32>
    %320 = vector.shape_cast %319 : vector<1x64x64xf32> to vector<64x64xf32>
    %cst_136 = arith.constant 0.000000e+00 : f32
    %321 = vector.broadcast %cst_136 : f32 to vector<8x64xf32>
    %322 = vector.extract_strided_slice %318 {offsets = [0, 0], sizes = [8, 16], strides = [1, 1]} : vector<8x192xf32> to vector<8x16xf32>
    %323 = vector.shape_cast %322 : vector<8x16xf32> to vector<2x4x16xf32>
    %324 = vector.extract_strided_slice %318 {offsets = [0, 64], sizes = [8, 16], strides = [1, 1]} : vector<8x192xf32> to vector<8x16xf32>
    %325 = vector.shape_cast %324 : vector<8x16xf32> to vector<2x4x16xf32>
    %326 = vector.extract_strided_slice %318 {offsets = [0, 128], sizes = [8, 16], strides = [1, 1]} : vector<8x192xf32> to vector<8x16xf32>
    %327 = vector.shape_cast %326 : vector<8x16xf32> to vector<2x4x16xf32>
    "tpu.trace_start"() <{level = 10 : i32, message = "bqd,bkd->bqk"}> : () -> ()
    %cst_137 = arith.constant dense<0.000000e+00> : vector<2x4x4xf32>
    %328 = tpu.matmul %323, %325, %cst_137 {dimension_numbers = #tpu.dot_dimension_numbers<[2], [2], [1], [1], [0, 0, 0, 1, 1, 1], [0], [0]>} : vector<2x4x16xf32>, vector<2x4x16xf32>, vector<2x4x4xf32> -> vector<2x4x4xf32>
    "tpu.trace_stop"() : () -> ()
    %cst_138 = arith.constant 2.500000e-01 : f32
    %329 = vector.broadcast %cst_138 : f32 to vector<2x4x4xf32>
    %330 = arith.mulf %328, %329 : vector<2x4x4xf32>
    %331 = vector.broadcast %63 : vector<2x1x4xf32> to vector<2x4x4xf32>
    %332 = arith.addf %330, %331 : vector<2x4x4xf32>
    %cst_139 = arith.constant dense<0xFF800000> : vector<2x4xf32>
    %333 = vector.multi_reduction <maximumf>, %332, %cst_139 [2] : vector<2x4x4xf32> to vector<2x4xf32>
    %334 = vector.shape_cast %333 : vector<2x4xf32> to vector<2x4x1xf32>
    %335 = vector.broadcast %334 : vector<2x4x1xf32> to vector<2x4x4xf32>
    %336 = arith.subf %332, %335 : vector<2x4x4xf32>
    %337 = math.exp %336 : vector<2x4x4xf32>
    %cst_140 = arith.constant dense<0.000000e+00> : vector<2x4xf32>
    %338 = vector.multi_reduction <add>, %337, %cst_140 [2] : vector<2x4x4xf32> to vector<2x4xf32>
    %339 = vector.shape_cast %338 : vector<2x4xf32> to vector<2x4x1xf32>
    %340 = vector.broadcast %339 : vector<2x4x1xf32> to vector<2x4x4xf32>
    %341 = arith.divf %337, %340 : vector<2x4x4xf32>
    "tpu.trace_start"() <{level = 10 : i32, message = "bqk,bkd->bqd"}> : () -> ()
    %cst_141 = arith.constant dense<0.000000e+00> : vector<2x4x16xf32>
    %342 = tpu.matmul %341, %327, %cst_141 {dimension_numbers = #tpu.dot_dimension_numbers<[2], [1], [1], [2], [0, 0, 0, 1, 1, 2], [0], [0]>} : vector<2x4x4xf32>, vector<2x4x16xf32>, vector<2x4x16xf32> -> vector<2x4x16xf32>
    "tpu.trace_stop"() : () -> ()
    %343 = vector.shape_cast %342 : vector<2x4x16xf32> to vector<8x16xf32>
    %344 = vector.extract_strided_slice %320 {offsets = [0, 0], sizes = [16, 64], strides = [1, 1]} : vector<64x64xf32> to vector<16x64xf32>
    %cst_142 = arith.constant dense<0.000000e+00> : vector<8x64xf32>
    %345 = tpu.matmul %343, %344, %cst_142 {dimension_numbers = #tpu.dot_dimension_numbers<[1], [0], [0], [1], [0, 0, 1, 1], [], []>} : vector<8x16xf32>, vector<16x64xf32>, vector<8x64xf32> -> vector<8x64xf32>
    %346 = arith.addf %321, %345 : vector<8x64xf32>
    %347 = vector.extract_strided_slice %318 {offsets = [0, 16], sizes = [8, 16], strides = [1, 1]} : vector<8x192xf32> to vector<8x16xf32>
    %348 = vector.shape_cast %347 : vector<8x16xf32> to vector<2x4x16xf32>
    %349 = vector.extract_strided_slice %318 {offsets = [0, 80], sizes = [8, 16], strides = [1, 1]} : vector<8x192xf32> to vector<8x16xf32>
    %350 = vector.shape_cast %349 : vector<8x16xf32> to vector<2x4x16xf32>
    %351 = vector.extract_strided_slice %318 {offsets = [0, 144], sizes = [8, 16], strides = [1, 1]} : vector<8x192xf32> to vector<8x16xf32>
    %352 = vector.shape_cast %351 : vector<8x16xf32> to vector<2x4x16xf32>
    "tpu.trace_start"() <{level = 10 : i32, message = "bqd,bkd->bqk"}> : () -> ()
    %cst_143 = arith.constant dense<0.000000e+00> : vector<2x4x4xf32>
    %353 = tpu.matmul %348, %350, %cst_143 {dimension_numbers = #tpu.dot_dimension_numbers<[2], [2], [1], [1], [0, 0, 0, 1, 1, 1], [0], [0]>} : vector<2x4x16xf32>, vector<2x4x16xf32>, vector<2x4x4xf32> -> vector<2x4x4xf32>
    "tpu.trace_stop"() : () -> ()
    %cst_144 = arith.constant 2.500000e-01 : f32
    %354 = vector.broadcast %cst_144 : f32 to vector<2x4x4xf32>
    %355 = arith.mulf %353, %354 : vector<2x4x4xf32>
    %356 = vector.broadcast %63 : vector<2x1x4xf32> to vector<2x4x4xf32>
    %357 = arith.addf %355, %356 : vector<2x4x4xf32>
    %cst_145 = arith.constant dense<0xFF800000> : vector<2x4xf32>
    %358 = vector.multi_reduction <maximumf>, %357, %cst_145 [2] : vector<2x4x4xf32> to vector<2x4xf32>
    %359 = vector.shape_cast %358 : vector<2x4xf32> to vector<2x4x1xf32>
    %360 = vector.broadcast %359 : vector<2x4x1xf32> to vector<2x4x4xf32>
    %361 = arith.subf %357, %360 : vector<2x4x4xf32>
    %362 = math.exp %361 : vector<2x4x4xf32>
    %cst_146 = arith.constant dense<0.000000e+00> : vector<2x4xf32>
    %363 = vector.multi_reduction <add>, %362, %cst_146 [2] : vector<2x4x4xf32> to vector<2x4xf32>
    %364 = vector.shape_cast %363 : vector<2x4xf32> to vector<2x4x1xf32>
    %365 = vector.broadcast %364 : vector<2x4x1xf32> to vector<2x4x4xf32>
    %366 = arith.divf %362, %365 : vector<2x4x4xf32>
    "tpu.trace_start"() <{level = 10 : i32, message = "bqk,bkd->bqd"}> : () -> ()
    %cst_147 = arith.constant dense<0.000000e+00> : vector<2x4x16xf32>
    %367 = tpu.matmul %366, %352, %cst_147 {dimension_numbers = #tpu.dot_dimension_numbers<[2], [1], [1], [2], [0, 0, 0, 1, 1, 2], [0], [0]>} : vector<2x4x4xf32>, vector<2x4x16xf32>, vector<2x4x16xf32> -> vector<2x4x16xf32>
    "tpu.trace_stop"() : () -> ()
    %368 = vector.shape_cast %367 : vector<2x4x16xf32> to vector<8x16xf32>
    %369 = vector.extract_strided_slice %320 {offsets = [16, 0], sizes = [16, 64], strides = [1, 1]} : vector<64x64xf32> to vector<16x64xf32>
    %cst_148 = arith.constant dense<0.000000e+00> : vector<8x64xf32>
    %370 = tpu.matmul %368, %369, %cst_148 {dimension_numbers = #tpu.dot_dimension_numbers<[1], [0], [0], [1], [0, 0, 1, 1], [], []>} : vector<8x16xf32>, vector<16x64xf32>, vector<8x64xf32> -> vector<8x64xf32>
    %371 = arith.addf %346, %370 : vector<8x64xf32>
    %372 = vector.extract_strided_slice %318 {offsets = [0, 32], sizes = [8, 16], strides = [1, 1]} : vector<8x192xf32> to vector<8x16xf32>
    %373 = vector.shape_cast %372 : vector<8x16xf32> to vector<2x4x16xf32>
    %374 = vector.extract_strided_slice %318 {offsets = [0, 96], sizes = [8, 16], strides = [1, 1]} : vector<8x192xf32> to vector<8x16xf32>
    %375 = vector.shape_cast %374 : vector<8x16xf32> to vector<2x4x16xf32>
    %376 = vector.extract_strided_slice %318 {offsets = [0, 160], sizes = [8, 16], strides = [1, 1]} : vector<8x192xf32> to vector<8x16xf32>
    %377 = vector.shape_cast %376 : vector<8x16xf32> to vector<2x4x16xf32>
    "tpu.trace_start"() <{level = 10 : i32, message = "bqd,bkd->bqk"}> : () -> ()
    %cst_149 = arith.constant dense<0.000000e+00> : vector<2x4x4xf32>
    %378 = tpu.matmul %373, %375, %cst_149 {dimension_numbers = #tpu.dot_dimension_numbers<[2], [2], [1], [1], [0, 0, 0, 1, 1, 1], [0], [0]>} : vector<2x4x16xf32>, vector<2x4x16xf32>, vector<2x4x4xf32> -> vector<2x4x4xf32>
    "tpu.trace_stop"() : () -> ()
    %cst_150 = arith.constant 2.500000e-01 : f32
    %379 = vector.broadcast %cst_150 : f32 to vector<2x4x4xf32>
    %380 = arith.mulf %378, %379 : vector<2x4x4xf32>
    %381 = vector.broadcast %63 : vector<2x1x4xf32> to vector<2x4x4xf32>
    %382 = arith.addf %380, %381 : vector<2x4x4xf32>
    %cst_151 = arith.constant dense<0xFF800000> : vector<2x4xf32>
    %383 = vector.multi_reduction <maximumf>, %382, %cst_151 [2] : vector<2x4x4xf32> to vector<2x4xf32>
    %384 = vector.shape_cast %383 : vector<2x4xf32> to vector<2x4x1xf32>
    %385 = vector.broadcast %384 : vector<2x4x1xf32> to vector<2x4x4xf32>
    %386 = arith.subf %382, %385 : vector<2x4x4xf32>
    %387 = math.exp %386 : vector<2x4x4xf32>
    %cst_152 = arith.constant dense<0.000000e+00> : vector<2x4xf32>
    %388 = vector.multi_reduction <add>, %387, %cst_152 [2] : vector<2x4x4xf32> to vector<2x4xf32>
    %389 = vector.shape_cast %388 : vector<2x4xf32> to vector<2x4x1xf32>
    %390 = vector.broadcast %389 : vector<2x4x1xf32> to vector<2x4x4xf32>
    %391 = arith.divf %387, %390 : vector<2x4x4xf32>
    "tpu.trace_start"() <{level = 10 : i32, message = "bqk,bkd->bqd"}> : () -> ()
    %cst_153 = arith.constant dense<0.000000e+00> : vector<2x4x16xf32>
    %392 = tpu.matmul %391, %377, %cst_153 {dimension_numbers = #tpu.dot_dimension_numbers<[2], [1], [1], [2], [0, 0, 0, 1, 1, 2], [0], [0]>} : vector<2x4x4xf32>, vector<2x4x16xf32>, vector<2x4x16xf32> -> vector<2x4x16xf32>
    "tpu.trace_stop"() : () -> ()
    %393 = vector.shape_cast %392 : vector<2x4x16xf32> to vector<8x16xf32>
    %394 = vector.extract_strided_slice %320 {offsets = [32, 0], sizes = [16, 64], strides = [1, 1]} : vector<64x64xf32> to vector<16x64xf32>
    %cst_154 = arith.constant dense<0.000000e+00> : vector<8x64xf32>
    %395 = tpu.matmul %393, %394, %cst_154 {dimension_numbers = #tpu.dot_dimension_numbers<[1], [0], [0], [1], [0, 0, 1, 1], [], []>} : vector<8x16xf32>, vector<16x64xf32>, vector<8x64xf32> -> vector<8x64xf32>
    %396 = arith.addf %371, %395 : vector<8x64xf32>
    %397 = vector.extract_strided_slice %318 {offsets = [0, 48], sizes = [8, 16], strides = [1, 1]} : vector<8x192xf32> to vector<8x16xf32>
    %398 = vector.shape_cast %397 : vector<8x16xf32> to vector<2x4x16xf32>
    %399 = vector.extract_strided_slice %318 {offsets = [0, 112], sizes = [8, 16], strides = [1, 1]} : vector<8x192xf32> to vector<8x16xf32>
    %400 = vector.shape_cast %399 : vector<8x16xf32> to vector<2x4x16xf32>
    %401 = vector.extract_strided_slice %318 {offsets = [0, 176], sizes = [8, 16], strides = [1, 1]} : vector<8x192xf32> to vector<8x16xf32>
    %402 = vector.shape_cast %401 : vector<8x16xf32> to vector<2x4x16xf32>
    "tpu.trace_start"() <{level = 10 : i32, message = "bqd,bkd->bqk"}> : () -> ()
    %cst_155 = arith.constant dense<0.000000e+00> : vector<2x4x4xf32>
    %403 = tpu.matmul %398, %400, %cst_155 {dimension_numbers = #tpu.dot_dimension_numbers<[2], [2], [1], [1], [0, 0, 0, 1, 1, 1], [0], [0]>} : vector<2x4x16xf32>, vector<2x4x16xf32>, vector<2x4x4xf32> -> vector<2x4x4xf32>
    "tpu.trace_stop"() : () -> ()
    %cst_156 = arith.constant 2.500000e-01 : f32
    %404 = vector.broadcast %cst_156 : f32 to vector<2x4x4xf32>
    %405 = arith.mulf %403, %404 : vector<2x4x4xf32>
    %406 = vector.broadcast %63 : vector<2x1x4xf32> to vector<2x4x4xf32>
    %407 = arith.addf %405, %406 : vector<2x4x4xf32>
    %cst_157 = arith.constant dense<0xFF800000> : vector<2x4xf32>
    %408 = vector.multi_reduction <maximumf>, %407, %cst_157 [2] : vector<2x4x4xf32> to vector<2x4xf32>
    %409 = vector.shape_cast %408 : vector<2x4xf32> to vector<2x4x1xf32>
    %410 = vector.broadcast %409 : vector<2x4x1xf32> to vector<2x4x4xf32>
    %411 = arith.subf %407, %410 : vector<2x4x4xf32>
    %412 = math.exp %411 : vector<2x4x4xf32>
    %cst_158 = arith.constant dense<0.000000e+00> : vector<2x4xf32>
    %413 = vector.multi_reduction <add>, %412, %cst_158 [2] : vector<2x4x4xf32> to vector<2x4xf32>
    %414 = vector.shape_cast %413 : vector<2x4xf32> to vector<2x4x1xf32>
    %415 = vector.broadcast %414 : vector<2x4x1xf32> to vector<2x4x4xf32>
    %416 = arith.divf %412, %415 : vector<2x4x4xf32>
    "tpu.trace_start"() <{level = 10 : i32, message = "bqk,bkd->bqd"}> : () -> ()
    %cst_159 = arith.constant dense<0.000000e+00> : vector<2x4x16xf32>
    %417 = tpu.matmul %416, %402, %cst_159 {dimension_numbers = #tpu.dot_dimension_numbers<[2], [1], [1], [2], [0, 0, 0, 1, 1, 2], [0], [0]>} : vector<2x4x4xf32>, vector<2x4x16xf32>, vector<2x4x16xf32> -> vector<2x4x16xf32>
    "tpu.trace_stop"() : () -> ()
    %418 = vector.shape_cast %417 : vector<2x4x16xf32> to vector<8x16xf32>
    %419 = vector.extract_strided_slice %320 {offsets = [48, 0], sizes = [16, 64], strides = [1, 1]} : vector<64x64xf32> to vector<16x64xf32>
    %cst_160 = arith.constant dense<0.000000e+00> : vector<8x64xf32>
    %420 = tpu.matmul %418, %419, %cst_160 {dimension_numbers = #tpu.dot_dimension_numbers<[1], [0], [0], [1], [0, 0, 1, 1], [], []>} : vector<8x16xf32>, vector<16x64xf32>, vector<8x64xf32> -> vector<8x64xf32>
    %421 = arith.addf %396, %420 : vector<8x64xf32>
    %422 = arith.addf %285, %421 : vector<8x64xf32>
    %c1_161 = arith.constant 1 : index
    %c0_162 = arith.constant 0 : index
    %c0_163 = arith.constant 0 : index
    %423 = vector.load %arg11[%c1_161, %c0_162, %c0_163] : memref<2x1x64xf32, #tpu.memory_space<vmem>>, vector<1x1x64xf32>
    %424 = vector.shape_cast %423 : vector<1x1x64xf32> to vector<1x64xf32>
    %425 = vector.broadcast %424 : vector<1x64xf32> to vector<8x64xf32>
    %426 = arith.addf %422, %425 : vector<8x64xf32>
    %c1_164 = arith.constant 1 : index
    %c0_165 = arith.constant 0 : index
    %c0_166 = arith.constant 0 : index
    %427 = vector.load %arg14[%c1_164, %c0_165, %c0_166] : memref<2x1x64xf32, #tpu.memory_space<vmem>>, vector<1x1x64xf32>
    %428 = vector.shape_cast %427 : vector<1x1x64xf32> to vector<1x64xf32>
    %c1_167 = arith.constant 1 : index
    %c0_168 = arith.constant 0 : index
    %c0_169 = arith.constant 0 : index
    %429 = vector.load %arg15[%c1_167, %c0_168, %c0_169] : memref<2x1x64xf32, #tpu.memory_space<vmem>>, vector<1x1x64xf32>
    %430 = vector.shape_cast %429 : vector<1x1x64xf32> to vector<1x64xf32>
    %cst_170 = arith.constant dense<0.000000e+00> : vector<8xf32>
    %431 = vector.multi_reduction <add>, %426, %cst_170 [1] : vector<8x64xf32> to vector<8xf32>
    %432 = vector.shape_cast %431 : vector<8xf32> to vector<8x1xf32>
    %cst_171 = arith.constant 6.400000e+01 : f32
    %433 = vector.broadcast %cst_171 : f32 to vector<8x1xf32>
    %434 = arith.divf %432, %433 : vector<8x1xf32>
    %435 = vector.broadcast %434 : vector<8x1xf32> to vector<8x64xf32>
    %436 = arith.subf %426, %435 : vector<8x64xf32>
    %437 = arith.mulf %436, %436 : vector<8x64xf32>
    %cst_172 = arith.constant dense<0.000000e+00> : vector<8xf32>
    %438 = vector.multi_reduction <add>, %437, %cst_172 [1] : vector<8x64xf32> to vector<8xf32>
    %439 = vector.shape_cast %438 : vector<8xf32> to vector<8x1xf32>
    %cst_173 = arith.constant 6.400000e+01 : f32
    %440 = vector.broadcast %cst_173 : f32 to vector<8x1xf32>
    %441 = arith.divf %439, %440 : vector<8x1xf32>
    %442 = vector.broadcast %434 : vector<8x1xf32> to vector<8x64xf32>
    %443 = arith.subf %426, %442 : vector<8x64xf32>
    %cst_174 = arith.constant 9.99999974E-6 : f32
    %444 = vector.broadcast %cst_174 : f32 to vector<8x1xf32>
    %445 = arith.addf %441, %444 : vector<8x1xf32>
    %446 = math.rsqrt %445 : vector<8x1xf32>
    %447 = vector.broadcast %446 : vector<8x1xf32> to vector<8x64xf32>
    %448 = arith.mulf %443, %447 : vector<8x64xf32>
    %449 = vector.broadcast %428 : vector<1x64xf32> to vector<8x64xf32>
    %450 = arith.mulf %448, %449 : vector<8x64xf32>
    %451 = vector.broadcast %430 : vector<1x64xf32> to vector<8x64xf32>
    %452 = arith.addf %450, %451 : vector<8x64xf32>
    %c1_175 = arith.constant 1 : index
    %c0_176 = arith.constant 0 : index
    %c0_177 = arith.constant 0 : index
    %453 = vector.load %arg16[%c1_175, %c0_176, %c0_177] : memref<2x64x256xf32, #tpu.memory_space<vmem>>, vector<1x64x256xf32>
    %454 = vector.shape_cast %453 : vector<1x64x256xf32> to vector<64x256xf32>
    %cst_178 = arith.constant dense<0.000000e+00> : vector<8x256xf32>
    %455 = tpu.matmul %452, %454, %cst_178 {dimension_numbers = #tpu.dot_dimension_numbers<[1], [0], [0], [1], [0, 0, 1, 1], [], []>} : vector<8x64xf32>, vector<64x256xf32>, vector<8x256xf32> -> vector<8x256xf32>
    %c1_179 = arith.constant 1 : index
    %c0_180 = arith.constant 0 : index
    %c0_181 = arith.constant 0 : index
    %456 = vector.load %arg17[%c1_179, %c0_180, %c0_181] : memref<2x1x256xf32, #tpu.memory_space<vmem>>, vector<1x1x256xf32>
    %457 = vector.shape_cast %456 : vector<1x1x256xf32> to vector<1x256xf32>
    %458 = vector.broadcast %457 : vector<1x256xf32> to vector<8x256xf32>
    %459 = arith.addf %455, %458 : vector<8x256xf32>
    %cst_182 = arith.constant 5.000000e-01 : f32
    %460 = vector.broadcast %cst_182 : f32 to vector<8x256xf32>
    %461 = arith.mulf %460, %459 : vector<8x256xf32>
    %cst_183 = arith.constant 0.707106769 : f32
    %462 = vector.broadcast %cst_183 : f32 to vector<8x256xf32>
    %463 = arith.mulf %459, %462 : vector<8x256xf32>
    %464 = math.absf %463 : vector<8x256xf32>
    %cst_184 = arith.constant 0.327591091 : f32
    %465 = vector.broadcast %cst_184 : f32 to vector<8x256xf32>
    %466 = arith.mulf %465, %464 : vector<8x256xf32>
    %cst_185 = arith.constant 1.000000e+00 : f32
    %467 = vector.broadcast %cst_185 : f32 to vector<8x256xf32>
    %468 = arith.addf %467, %466 : vector<8x256xf32>
    %cst_186 = arith.constant 1.000000e+00 : f32
    %469 = vector.broadcast %cst_186 : f32 to vector<8x256xf32>
    %470 = arith.divf %469, %468 : vector<8x256xf32>
    %cst_187 = arith.constant 1.06140542 : f32
    %471 = vector.broadcast %cst_187 : f32 to vector<8x256xf32>
    %472 = arith.mulf %471, %470 : vector<8x256xf32>
    %cst_188 = arith.constant -1.45315206 : f32
    %473 = vector.broadcast %cst_188 : f32 to vector<8x256xf32>
    %474 = arith.addf %472, %473 : vector<8x256xf32>
    %475 = arith.mulf %474, %470 : vector<8x256xf32>
    %cst_189 = arith.constant 1.42141378 : f32
    %476 = vector.broadcast %cst_189 : f32 to vector<8x256xf32>
    %477 = arith.addf %475, %476 : vector<8x256xf32>
    %478 = arith.mulf %477, %470 : vector<8x256xf32>
    %cst_190 = arith.constant -0.284496725 : f32
    %479 = vector.broadcast %cst_190 : f32 to vector<8x256xf32>
    %480 = arith.addf %478, %479 : vector<8x256xf32>
    %481 = arith.mulf %480, %470 : vector<8x256xf32>
    %cst_191 = arith.constant 0.254829586 : f32
    %482 = vector.broadcast %cst_191 : f32 to vector<8x256xf32>
    %483 = arith.addf %481, %482 : vector<8x256xf32>
    %484 = arith.mulf %483, %470 : vector<8x256xf32>
    %cst_192 = arith.constant 0.000000e+00 : f32
    %485 = vector.broadcast %cst_192 : f32 to vector<8x256xf32>
    %486 = arith.subf %485, %464 : vector<8x256xf32>
    %487 = arith.mulf %486, %464 : vector<8x256xf32>
    %488 = math.exp %487 : vector<8x256xf32>
    %489 = arith.mulf %484, %488 : vector<8x256xf32>
    %cst_193 = arith.constant 1.000000e+00 : f32
    %490 = vector.broadcast %cst_193 : f32 to vector<8x256xf32>
    %491 = arith.subf %490, %489 : vector<8x256xf32>
    %cst_194 = arith.constant 0.000000e+00 : f32
    %492 = vector.broadcast %cst_194 : f32 to vector<8x256xf32>
    %493 = arith.cmpf oge, %463, %492 : vector<8x256xf32>
    %cst_195 = arith.constant 0.000000e+00 : f32
    %494 = vector.broadcast %cst_195 : f32 to vector<8x256xf32>
    %495 = arith.subf %494, %491 : vector<8x256xf32>
    %496 = arith.select %493, %491, %495 : vector<8x256xi1>, vector<8x256xf32>
    %cst_196 = arith.constant 1.000000e+00 : f32
    %497 = vector.broadcast %cst_196 : f32 to vector<8x256xf32>
    %498 = arith.addf %497, %496 : vector<8x256xf32>
    %499 = arith.mulf %461, %498 : vector<8x256xf32>
    %c1_197 = arith.constant 1 : index
    %c0_198 = arith.constant 0 : index
    %c0_199 = arith.constant 0 : index
    %500 = vector.load %arg18[%c1_197, %c0_198, %c0_199] : memref<2x256x64xf32, #tpu.memory_space<vmem>>, vector<1x256x64xf32>
    %501 = vector.shape_cast %500 : vector<1x256x64xf32> to vector<256x64xf32>
    %cst_200 = arith.constant dense<0.000000e+00> : vector<8x64xf32>
    %502 = tpu.matmul %499, %501, %cst_200 {dimension_numbers = #tpu.dot_dimension_numbers<[1], [0], [0], [1], [0, 0, 1, 1], [], []>} : vector<8x256xf32>, vector<256x64xf32>, vector<8x64xf32> -> vector<8x64xf32>
    %c1_201 = arith.constant 1 : index
    %c0_202 = arith.constant 0 : index
    %c0_203 = arith.constant 0 : index
    %503 = vector.load %arg19[%c1_201, %c0_202, %c0_203] : memref<2x1x64xf32, #tpu.memory_space<vmem>>, vector<1x1x64xf32>
    %504 = vector.shape_cast %503 : vector<1x1x64xf32> to vector<1x64xf32>
    %505 = vector.broadcast %504 : vector<1x64xf32> to vector<8x64xf32>
    %506 = arith.addf %502, %505 : vector<8x64xf32>
    %507 = arith.addf %426, %506 : vector<8x64xf32>
    %508 = vector.shape_cast %507 : vector<8x64xf32> to vector<2x4x64xf32>
    %509 = vector.extract_strided_slice %508 {offsets = [0, 0, 0], sizes = [2, 1, 64], strides = [1, 1, 1]} : vector<2x4x64xf32> to vector<2x1x64xf32>
    %510 = vector.shape_cast %509 : vector<2x1x64xf32> to vector<2x64xf32>
    %511 = vector.extract_strided_slice %508 {offsets = [0, 1, 0], sizes = [2, 3, 64], strides = [1, 1, 1]} : vector<2x4x64xf32> to vector<2x3x64xf32>
    %c0_204 = arith.constant 0 : index
    %c0_205 = arith.constant 0 : index
    %512 = vector.load %arg2[%c0_204, %c0_205] : memref<2x3xf32, #tpu.memory_space<vmem>>, vector<2x3xf32>
    %c0_206 = arith.constant 0 : index
    %c0_207 = arith.constant 0 : index
    %513 = vector.load %arg20[%c0_206, %c0_207] : memref<64x128xf32, #tpu.memory_space<vmem>>, vector<64x128xf32>
    %cst_208 = arith.constant dense<0.000000e+00> : vector<2x128xf32>
    %514 = tpu.matmul %510, %513, %cst_208 {dimension_numbers = #tpu.dot_dimension_numbers<[1], [0], [0], [1], [0, 0, 1, 1], [], []>} : vector<2x64xf32>, vector<64x128xf32>, vector<2x128xf32> -> vector<2x128xf32>
    %c0_209 = arith.constant 0 : index
    %c0_210 = arith.constant 0 : index
    %515 = vector.load %arg21[%c0_209, %c0_210] : memref<1x128xf32, #tpu.memory_space<vmem>>, vector<1x128xf32>
    %516 = vector.broadcast %515 : vector<1x128xf32> to vector<2x128xf32>
    %517 = arith.addf %514, %516 : vector<2x128xf32>
    %c0_211 = arith.constant 0 : index
    %c0_212 = arith.constant 0 : index
    %518 = vector.load %arg22[%c0_211, %c0_212] : memref<1x128xf32, #tpu.memory_space<vmem>>, vector<1x128xf32>
    %c0_213 = arith.constant 0 : index
    %c0_214 = arith.constant 0 : index
    %519 = vector.load %arg23[%c0_213, %c0_214] : memref<1x128xf32, #tpu.memory_space<vmem>>, vector<1x128xf32>
    %cst_215 = arith.constant dense<0.000000e+00> : vector<2xf32>
    %520 = vector.multi_reduction <add>, %517, %cst_215 [1] : vector<2x128xf32> to vector<2xf32>
    %521 = vector.shape_cast %520 : vector<2xf32> to vector<2x1xf32>
    %cst_216 = arith.constant 1.280000e+02 : f32
    %522 = vector.broadcast %cst_216 : f32 to vector<2x1xf32>
    %523 = arith.divf %521, %522 : vector<2x1xf32>
    %524 = vector.broadcast %523 : vector<2x1xf32> to vector<2x128xf32>
    %525 = arith.subf %517, %524 : vector<2x128xf32>
    %526 = arith.mulf %525, %525 : vector<2x128xf32>
    %cst_217 = arith.constant dense<0.000000e+00> : vector<2xf32>
    %527 = vector.multi_reduction <add>, %526, %cst_217 [1] : vector<2x128xf32> to vector<2xf32>
    %528 = vector.shape_cast %527 : vector<2xf32> to vector<2x1xf32>
    %cst_218 = arith.constant 1.280000e+02 : f32
    %529 = vector.broadcast %cst_218 : f32 to vector<2x1xf32>
    %530 = arith.divf %528, %529 : vector<2x1xf32>
    %531 = vector.broadcast %523 : vector<2x1xf32> to vector<2x128xf32>
    %532 = arith.subf %517, %531 : vector<2x128xf32>
    %cst_219 = arith.constant 9.99999974E-6 : f32
    %533 = vector.broadcast %cst_219 : f32 to vector<2x1xf32>
    %534 = arith.addf %530, %533 : vector<2x1xf32>
    %535 = math.rsqrt %534 : vector<2x1xf32>
    %536 = vector.broadcast %535 : vector<2x1xf32> to vector<2x128xf32>
    %537 = arith.mulf %532, %536 : vector<2x128xf32>
    %538 = vector.broadcast %518 : vector<1x128xf32> to vector<2x128xf32>
    %539 = arith.mulf %537, %538 : vector<2x128xf32>
    %540 = vector.broadcast %519 : vector<1x128xf32> to vector<2x128xf32>
    %541 = arith.addf %539, %540 : vector<2x128xf32>
    %cst_220 = arith.constant 0.000000e+00 : f32
    %542 = vector.broadcast %cst_220 : f32 to vector<2x128xf32>
    %543 = arith.maximumf %541, %542 : vector<2x128xf32>
    %c0_221 = arith.constant 0 : index
    %c0_222 = arith.constant 0 : index
    %544 = vector.load %arg24[%c0_221, %c0_222] : memref<128x1xf32, #tpu.memory_space<vmem>>, vector<128x1xf32>
    %cst_223 = arith.constant dense<0.000000e+00> : vector<2x1xf32>
    %545 = tpu.matmul %543, %544, %cst_223 {dimension_numbers = #tpu.dot_dimension_numbers<[1], [0], [0], [1], [0, 0, 1, 1], [], []>} : vector<2x128xf32>, vector<128x1xf32>, vector<2x1xf32> -> vector<2x1xf32>
    %c0_224 = arith.constant 0 : index
    %c0_225 = arith.constant 0 : index
    %546 = vector.load %arg25[%c0_224, %c0_225] : memref<1x1xf32, #tpu.memory_space<vmem>>, vector<1x1xf32>
    %547 = vector.broadcast %546 : vector<1x1xf32> to vector<2x1xf32>
    %548 = arith.addf %545, %547 : vector<2x1xf32>
    %c0_226 = arith.constant 0 : index
    %c0_227 = arith.constant 0 : index
    %549 = vector.load %arg32[%c0_226, %c0_227] : memref<2x1xf32, #tpu.memory_space<vmem>>, vector<2x1xf32>
    tpu.vector_store %arg32[%c0_226, %c0_227], %548 {strides = array<i32>} : memref<2x1xf32, #tpu.memory_space<vmem>>, vector<2x1xf32>,
    %550 = vector.shape_cast %511 : vector<2x3x64xf32> to vector<6x64xf32>
    %c0_228 = arith.constant 0 : index
    %c0_229 = arith.constant 0 : index
    %551 = vector.load %arg26[%c0_228, %c0_229] : memref<64x64xf32, #tpu.memory_space<vmem>>, vector<64x64xf32>
    %cst_230 = arith.constant dense<0.000000e+00> : vector<6x64xf32>
    %552 = tpu.matmul %550, %551, %cst_230 {dimension_numbers = #tpu.dot_dimension_numbers<[1], [0], [0], [1], [0, 0, 1, 1], [], []>} : vector<6x64xf32>, vector<64x64xf32>, vector<6x64xf32> -> vector<6x64xf32>
    %c0_231 = arith.constant 0 : index
    %c0_232 = arith.constant 0 : index
    %553 = vector.load %arg27[%c0_231, %c0_232] : memref<1x64xf32, #tpu.memory_space<vmem>>, vector<1x64xf32>
    %554 = vector.broadcast %553 : vector<1x64xf32> to vector<6x64xf32>
    %555 = arith.addf %552, %554 : vector<6x64xf32>
    %c0_233 = arith.constant 0 : index
    %c0_234 = arith.constant 0 : index
    %556 = vector.load %arg28[%c0_233, %c0_234] : memref<1x64xf32, #tpu.memory_space<vmem>>, vector<1x64xf32>
    %c0_235 = arith.constant 0 : index
    %c0_236 = arith.constant 0 : index
    %557 = vector.load %arg29[%c0_235, %c0_236] : memref<1x64xf32, #tpu.memory_space<vmem>>, vector<1x64xf32>
    %cst_237 = arith.constant dense<0.000000e+00> : vector<6xf32>
    %558 = vector.multi_reduction <add>, %555, %cst_237 [1] : vector<6x64xf32> to vector<6xf32>
    %559 = vector.shape_cast %558 : vector<6xf32> to vector<6x1xf32>
    %cst_238 = arith.constant 6.400000e+01 : f32
    %560 = vector.broadcast %cst_238 : f32 to vector<6x1xf32>
    %561 = arith.divf %559, %560 : vector<6x1xf32>
    %562 = vector.broadcast %561 : vector<6x1xf32> to vector<6x64xf32>
    %563 = arith.subf %555, %562 : vector<6x64xf32>
    %564 = arith.mulf %563, %563 : vector<6x64xf32>
    %cst_239 = arith.constant dense<0.000000e+00> : vector<6xf32>
    %565 = vector.multi_reduction <add>, %564, %cst_239 [1] : vector<6x64xf32> to vector<6xf32>
    %566 = vector.shape_cast %565 : vector<6xf32> to vector<6x1xf32>
    %cst_240 = arith.constant 6.400000e+01 : f32
    %567 = vector.broadcast %cst_240 : f32 to vector<6x1xf32>
    %568 = arith.divf %566, %567 : vector<6x1xf32>
    %569 = vector.broadcast %561 : vector<6x1xf32> to vector<6x64xf32>
    %570 = arith.subf %555, %569 : vector<6x64xf32>
    %cst_241 = arith.constant 9.99999974E-6 : f32
    %571 = vector.broadcast %cst_241 : f32 to vector<6x1xf32>
    %572 = arith.addf %568, %571 : vector<6x1xf32>
    %573 = math.rsqrt %572 : vector<6x1xf32>
    %574 = vector.broadcast %573 : vector<6x1xf32> to vector<6x64xf32>
    %575 = arith.mulf %570, %574 : vector<6x64xf32>
    %576 = vector.broadcast %556 : vector<1x64xf32> to vector<6x64xf32>
    %577 = arith.mulf %575, %576 : vector<6x64xf32>
    %578 = vector.broadcast %557 : vector<1x64xf32> to vector<6x64xf32>
    %579 = arith.addf %577, %578 : vector<6x64xf32>
    %cst_242 = arith.constant 0.000000e+00 : f32
    %580 = vector.broadcast %cst_242 : f32 to vector<6x64xf32>
    %581 = arith.maximumf %579, %580 : vector<6x64xf32>
    %c0_243 = arith.constant 0 : index
    %c0_244 = arith.constant 0 : index
    %582 = vector.load %arg30[%c0_243, %c0_244] : memref<64x1xf32, #tpu.memory_space<vmem>>, vector<64x1xf32>
    %cst_245 = arith.constant dense<0.000000e+00> : vector<6x1xf32>
    %583 = tpu.matmul %581, %582, %cst_245 {dimension_numbers = #tpu.dot_dimension_numbers<[1], [0], [0], [1], [0, 0, 1, 1], [], []>} : vector<6x64xf32>, vector<64x1xf32>, vector<6x1xf32> -> vector<6x1xf32>
    %c0_246 = arith.constant 0 : index
    %c0_247 = arith.constant 0 : index
    %584 = vector.load %arg31[%c0_246, %c0_247] : memref<1x1xf32, #tpu.memory_space<vmem>>, vector<1x1xf32>
    %585 = vector.broadcast %584 : vector<1x1xf32> to vector<6x1xf32>
    %586 = arith.addf %583, %585 : vector<6x1xf32>
    %587 = vector.shape_cast %586 : vector<6x1xf32> to vector<2x3x1xf32>
    %588 = vector.shape_cast %510 : vector<2x64xf32> to vector<2x1x64xf32>
    %589 = vector.broadcast %588 : vector<2x1x64xf32> to vector<2x3x64xf32>
    %590 = arith.mulf %511, %589 : vector<2x3x64xf32>
    %cst_248 = arith.constant dense<0.000000e+00> : vector<2x3xf32>
    %591 = vector.multi_reduction <add>, %590, %cst_248 [2] : vector<2x3x64xf32> to vector<2x3xf32>
    %cst_249 = arith.constant dense<0xFF800000> : vector<2xf32>
    %592 = vector.multi_reduction <maximumf>, %591, %cst_249 [1] : vector<2x3xf32> to vector<2xf32>
    %593 = vector.shape_cast %592 : vector<2xf32> to vector<2x1xf32>
    %594 = vector.broadcast %593 : vector<2x1xf32> to vector<2x3xf32>
    %595 = arith.subf %591, %594 : vector<2x3xf32>
    %596 = math.exp %595 : vector<2x3xf32>
    %cst_250 = arith.constant dense<0.000000e+00> : vector<2xf32>
    %597 = vector.multi_reduction <add>, %596, %cst_250 [1] : vector<2x3xf32> to vector<2xf32>
    %598 = vector.shape_cast %597 : vector<2xf32> to vector<2x1xf32>
    %599 = vector.broadcast %598 : vector<2x1xf32> to vector<2x3xf32>
    %600 = arith.divf %596, %599 : vector<2x3xf32>
    %601 = arith.mulf %600, %512 : vector<2x3xf32>
    %cst_251 = arith.constant dense<0.000000e+00> : vector<2xf32>
    %602 = vector.multi_reduction <add>, %601, %cst_251 [1] : vector<2x3xf32> to vector<2xf32>
    %603 = vector.shape_cast %602 : vector<2xf32> to vector<2x1xf32>
    %cst_252 = arith.constant 9.99999997E-7 : f32
    %604 = vector.broadcast %cst_252 : f32 to vector<2x1xf32>
    %605 = arith.maximumf %603, %604 : vector<2x1xf32>
    %606 = vector.broadcast %605 : vector<2x1xf32> to vector<2x3xf32>
    %607 = arith.divf %601, %606 : vector<2x3xf32>
    %608 = vector.shape_cast %607 : vector<2x3xf32> to vector<2x3x1xf32>
    %c0_253 = arith.constant 0 : index
    %c0_254 = arith.constant 0 : index
    %c0_255 = arith.constant 0 : index
    %609 = vector.load %arg34[%c0_253, %c0_254, %c0_255] : memref<2x3x1xf32, #tpu.memory_space<vmem>>, vector<2x3x1xf32>
    tpu.vector_store %arg34[%c0_253, %c0_254, %c0_255], %608 {strides = array<i32>} : memref<2x3x1xf32, #tpu.memory_space<vmem>>, vector<2x3x1xf32>,
    %610 = vector.shape_cast %512 : vector<2x3xf32> to vector<2x3x1xf32>
    %611 = arith.mulf %587, %610 : vector<2x3x1xf32>
    %c0_256 = arith.constant 0 : index
    %c0_257 = arith.constant 0 : index
    %c0_258 = arith.constant 0 : index
    %612 = vector.load %arg33[%c0_256, %c0_257, %c0_258] : memref<2x3x1xf32, #tpu.memory_space<vmem>>, vector<2x3x1xf32>
    tpu.vector_store %arg33[%c0_256, %c0_257, %c0_258], %611 {strides = array<i32>} : memref<2x3x1xf32, #tpu.memory_space<vmem>>, vector<2x3x1xf32>,
    return
  }
}

</mosaic_0001>

<bundles_post_ra>
// kernel: tpu_custom_call.1
= control target key start
LH: loop header
LB: loop body
LE: loop exit
PB: predicated region body
PF: predicated region fallthrough
CT: control target
= control target key end

     0   :  { %s7043_s6 = smov 1   ;;  %s7044_s10 = smov 2   ;;  %s8140_s0 = inlined_call_operand.smem [shape: u32[35], index: -1, kind: input, shape index: {}] }
   0x1   :  { %s7112_s5 = sld [smem:[%s8140_s0]]   ;;  %s7045_s14 = smov 3  }
   0x2   :  { %s7117_s9 = sld [smem:[%s8140_s0 + %s7043_s6]]   ;;  %s7046_s18 = smov 4  }
   0x3   :  { %s7122_s13 = sld [smem:[%s8140_s0 + %s7044_s10]]   ;;  %s7047_s22 = smov 5  }
   0x4   :  { %s7127_s17 = sld [smem:[%s8140_s0 + %s7045_s14]]   ;;  %s7048_s26 = smov 6  }
   0x5   :  { %s7132_s21 = sld [smem:[%s8140_s0 + %s7046_s18]]   ;;  %s7049_s30 = smov 7  }
   0x6   :  { %s7137_s25 = sld [smem:[%s8140_s0 + %s7047_s22]]   ;;  %s7050_s4 = smov 8  }
   0x7   :  { %s7142_s29 = sld [smem:[%s8140_s0 + %s7048_s26]]   ;;  %s7051_s10 = smov 9  }
   0x8   :  { %s7147_s3 = sld [smem:[%s8140_s0 + %s7049_s30]]   ;;  %s7052_s15 = smov 10  }
   0x9   :  { %s7152_s8 = sld [smem:[%s8140_s0 + %s7050_s4]]   ;;  %s7053_s20 = smov 11  }
   0xa   :  { %8150 = sst [smem:[#allocation30_spill]] %s7127_s17  ;;  %s7054_s26 = smov 12  }
   0xb   :  { %8151 = sst [smem:[#allocation31_spill]] %s7132_s21  ;;  %s7055_s1 = smov 13  }
   0xc   :  { %s7157_s14 = sld [smem:[%s8140_s0 + %s7051_s10]]   ;;  %s7056_s7 = smov 14  }
   0xd   :  { %s7162_s19 = sld [smem:[%s8140_s0 + %s7052_s15]]   ;;  %s7057_s15 = smov 15  }
   0xe   :  { %s7167_s24 = sld [smem:[%s8140_s0 + %s7053_s20]]   ;;  %s7058_s22 = smov 16  }
   0xf   :  { %8152 = sst [smem:[#allocation32_spill]] %s7152_s8  ;;  %s7059_s28 = smov 17  }
  0x10   :  { %s7172_s30 = sld [smem:[%s8140_s0 + %s7054_s26]]   ;;  %s7068_s10 = smov 26  }
  0x11   :  { %s7177_s6 = sld [smem:[%s8140_s0 + %s7055_s1]]   ;;  %s7069_s16 = smov 27  }
  0x12   :  { %8153 = sst [smem:[#allocation33_spill]] %s7157_s14  ;;  %s7070_s23 = smov 28  }
  0x13   :  { %8154 = sst [smem:[#allocation34_spill]] %s7162_s19  ;;  %s7071_s1 = smov 29  }
  0x14   :  { %s7182_s12 = sld [smem:[%s8140_s0 + %s7056_s7]]   ;;  %s7060_s7 = smov 18  }
  0x15   :  { %s7187_s20 = sld [smem:[%s8140_s0 + %s7057_s15]]   ;;  %s7061_s15 = smov 19  }
  0x16   :  { %s7192_s27 = sld [smem:[%s8140_s0 + %s7058_s22]]   ;;  %s7062_s22 = smov 20  }
  0x17   :  { %s7197_s4 = sld [smem:[%s8140_s0 + %s7059_s28]]   ;;  %s7063_s28 = smov 21  }
  0x18   :  { %s7202_s19 = sld [smem:[%s8140_s0 + %s7060_s7]]   ;;  %s7064_s7 = smov 22  }
  0x19   :  { %s7207_s14 = sld [smem:[%s8140_s0 + %s7061_s15]]   ;;  %s7065_s15 = smov 23  }
  0x1a   :  { %s7255_s21 = sld [smem:[%s8140_s0 + %s7071_s1]]   ;;  %s7075_s1 = smov 34  }
  0x1c   :  { %8155 = sst [smem:[#allocation35_spill]] %s7192_s27 }
  0x1d   :  { %8156 = sst [smem:[#allocation36_spill]] %s7197_s4 }
  0x1e   :  { %8157 = sst [smem:[#allocation37_spill]] %s7202_s19 }
  0x1f   :  { %8158 = sst [smem:[#allocation38_spill]] %s7207_s14 }
  0x20   :  { %s7212_s27 = sld [smem:[%s8140_s0 + %s7062_s22]]   ;;  %s7066_s22 = smov 24  }
  0x21   :  { %s7217_s4 = sld [smem:[%s8140_s0 + %s7063_s28]]   ;;  %s7067_s28 = smov 25  }
  0x22   :  { %s7222_s19 = sld [smem:[%s8140_s0 + %s7064_s7]]   ;;  %s7076_s7 = smov 31  }
  0x23   :  { %s7227_s14 = sld [smem:[%s8140_s0 + %s7065_s15]]  }
  0x24   :  { %s5668_s8 = sld [smem:[%s8140_s0 + %s7067_s28]]  }
  0x25   :  { %8165 = sst [smem:[#allocation45_spill]] %s7255_s21 }
  0x26   :  { %8159 = sst [smem:[#allocation39_spill]] %s7212_s27 }
  0x27   :  { %s7232_s27 = sld [smem:[%s8140_s0 + %s7066_s22]]  }
  0x28   :  { %8160 = sst [smem:[#allocation40_spill]] %s7222_s19 }
  0x29   :  { %8161 = sst [smem:[#allocation41_spill]] %s7227_s14 }
  0x2a   :  { %s7240_s19 = sld [smem:[%s8140_s0 + %s7068_s10]]   ;;  %s7072_s10 = smov 30   ;;  %v75_v0 = vstv %s5668_s8 }
  0x2b   :  { %s7245_s14 = sld [smem:[%s8140_s0 + %s7069_s16]]   ;;  %s7073_s16 = smov 32   ;;  %76 = vst [vmem:[#allocation2] sm:$0x1] %v75_v0 }
  0x2c   :  { %s7260_s17 = sld [smem:[%s8140_s0 + %s7072_s10]]  }
  0x2d   :  { %8162 = sst [smem:[#allocation42_spill]] %s7232_s27 }
  0x2e   :  { %s7250_s27 = sld [smem:[%s8140_s0 + %s7070_s23]]   ;;  %s7074_s23 = smov 33  }
  0x2f   :  { %s7270_s28 = sld [smem:[%s8140_s0 + %s7074_s23]]  }
  0x30   :  { %s7275_s10 = sld [smem:[%s8140_s0 + %s7075_s1]]  }
  0x31   :  { %8163 = sst [smem:[#allocation43_spill]] %s7245_s14 }
  0x32   :  { %s7265_s14 = sld [smem:[%s8140_s0 + %s7073_s16]]  }
  0x33   :  { %s5674_s16 = sld [smem:[%s8140_s0 + %s7076_s7]]  }
  0x34   :  { %8164 = sst [smem:[#allocation44_spill]] %s7250_s27 }
  0x39   :  { %v77_v1 = vstv %s5674_s16 }
  0x3a   :  { %78 = vst [vmem:[#allocation3] sm:$0x1] %v77_v1 }
  0x3b   :  { %79 = vsyncpa [#allocation5], 0 }
  0x3c   :  { %80 = vsyncpa [#allocation7], 0 }
  0x3d   :  { %81 = vsyncpa [#allocation10], 0 }
  0x3e   :  { %82 = vsyncpa [#allocation13], 0 }
  0x3f   :  { %83 = vsyncpa [#allocation16], 0 }
  0x40   :  { %84 = vsyncpa [#allocation19], 0 }
  0x41   :  { %85 = vsyncpa [#allocation22], 0  ;;  %s7077_s21 = smov [#allocation6]   ;;  %s7078_s15 = smov [#allocation9]  }
  0x42   :  { %s104_s8 = sshll.u32 %s7077_s21, 4  ;;  %s128_s18 = sshll.u32 %s7078_s15, 4  ;;  %s105_s8 = int_to_ptr.vmem [resolvable:$true] %s104_s8  ;;  %s129_s18 = int_to_ptr.vmem [resolvable:$true] %s128_s18 }
  0x43   :  { %s6765_s27 = scalar_lea.hbm %s7122_s13, 32 }
  0x44   :  { %p6766_p0 = scmp.ne.s32.totalorder %s7122_s13, %s6765_s27  ;;  %p6769_p1 = scmp.lt.u32.totalorder %s6765_s27, %s7122_s13 }
  0x46   :  { %p6771_p2 = pnand %p6769_p1, %p6766_p0 }
  0x48   :  { %6774 = shalt.err (!%p6771_p2)
}
  0x49   :  { %s6775_s0 = scalar_lea.vmem %s105_s8, 32  ;;  %p6780_p4 = scmp.lt.s32.totalorder %s105_s8, %s105_s8 }
  0x4a   :  { %p6776_p3 = scmp.ne.s32.totalorder %s105_s8, %s6775_s0  ;;  %p6781_p5 = scmp.lt.s32.totalorder %s6775_s0, %s6775_s0 }
  0x4c   :  { %p6782_p6 = por %p6781_p5, %p6780_p4 }
  0x4e   :  { %p6783_p7 = pnand %p6782_p6, %p6776_p3 }
  0x50   :  { %6786 = shalt.err (!%p6783_p7)
}
  0x51   :  { %107 = dma.hbm_to_vmem [thread:$0]  %s7122_s13, 32, %s105_s8, [#allocation7]  }
  0x52   :  { %s6787_s23 = scalar_lea.hbm %s7142_s29, 16 }
  0x53   :  { %p6788_p8 = scmp.ne.s32.totalorder %s7142_s29, %s6787_s23  ;;  %p6791_p9 = scmp.lt.u32.totalorder %s6787_s23, %s7142_s29 }
  0x55   :  { %p6793_p10 = pnand %p6791_p9, %p6788_p8 }
  0x57   :  { %6796 = shalt.err (!%p6793_p10)
}
  0x58   :  { %s6797_s22 = scalar_lea.vmem %s129_s18, 16  ;;  %s6801_s26 = scalar_lea.vmem %s129_s18, 32 }
  0x59   :  { %p6798_p11 = scmp.ne.s32.totalorder %s129_s18, %s6797_s22  ;;  %p6802_p12 = scmp.lt.s32.totalorder %s129_s18, %s129_s18 }
  0x5a   :  { %p6803_p13 = scmp.lt.s32.totalorder %s6801_s26, %s6797_s22 }
  0x5c   :  { %p6804_p0 = por %p6803_p13, %p6802_p12 }
  0x5e   :  { %p6805_p1 = pnand %p6804_p0, %p6798_p11 }
  0x60   :  { %6808 = shalt.err (!%p6805_p1)
}
  0x61   :  { %131 = dma.hbm_to_vmem [thread:$0]  %s7142_s29, 16, %s129_s18, [#allocation10]  }
  0x62   :  { %s7079_s1 = smov [#allocation12]   ;;  %s6809_s2 = scalar_lea.hbm %s7167_s24, 32 }
  0x63   :  { %s153_s13 = sshll.u32 %s7079_s1, 4  ;;  %p6810_p2 = scmp.ne.s32.totalorder %s7167_s24, %s6809_s2  ;;  %s154_s13 = int_to_ptr.vmem [resolvable:$true] %s153_s13 }
  0x64   :  { %p6813_p3 = scmp.lt.u32.totalorder %s6809_s2, %s7167_s24 }
  0x66   :  { %p6815_p4 = pnand %p6813_p3, %p6810_p2 }
  0x68   :  { %6818 = shalt.err (!%p6815_p4)
}
  0x69   :  { %s6819_s7 = scalar_lea.vmem %s154_s13, 32  ;;  %p6824_p6 = scmp.lt.s32.totalorder %s154_s13, %s154_s13 }
  0x6a   :  { %p6820_p5 = scmp.ne.s32.totalorder %s154_s13, %s6819_s7  ;;  %p6825_p7 = scmp.lt.s32.totalorder %s6819_s7, %s6819_s7 }
  0x6c   :  { %p6826_p8 = por %p6825_p7, %p6824_p6 }
  0x6e   :  { %p6827_p9 = pnand %p6826_p8, %p6820_p5 }
  0x70   :  { %6830 = shalt.err (!%p6827_p9)
}
  0x71   :  { %s7080_s11 = smov 16   ;;  %s7081_s29 = smov 1  }
  0x72   :  { %159 = dma.hbm_to_vmem [thread:$0]  %s7167_s24, 32, %s154_s13, [#allocation13], %s7080_s11, %s7080_s11, %s7081_s29  }
  0x73   :  { %s7082_s16 = smov [#allocation15]   ;;  %s7083_s8 = smov [#allocation18]  }
  0x74   :  { %s177_s21 = sshll.u32 %s7082_s16, 4  ;;  %s201_s15 = sshll.u32 %s7083_s8, 4  ;;  %s178_s21 = int_to_ptr.vmem [resolvable:$true] %s177_s21  ;;  %s202_s15 = int_to_ptr.vmem [resolvable:$true] %s201_s15 }
  0x75   :  { %s6831_s18 = scalar_lea.hbm %s7177_s6, 32 }
  0x76   :  { %p6832_p10 = scmp.ne.s32.totalorder %s7177_s6, %s6831_s18  ;;  %p6835_p11 = scmp.lt.u32.totalorder %s6831_s18, %s7177_s6 }
  0x78   :  { %p6837_p12 = pnand %p6835_p11, %p6832_p10 }
  0x7a   :  { %6840 = shalt.err (!%p6837_p12)
}
  0x7b   :  { %s6841_s27 = scalar_lea.vmem %s178_s21, 32  ;;  %p6846_p0 = scmp.lt.s32.totalorder %s178_s21, %s178_s21 }
  0x7c   :  { %p6842_p13 = scmp.ne.s32.totalorder %s178_s21, %s6841_s27  ;;  %p6847_p1 = scmp.lt.s32.totalorder %s6841_s27, %s6841_s27 }
  0x7e   :  { %p6848_p2 = por %p6847_p1, %p6846_p0 }
  0x80   :  { %p6849_p3 = pnand %p6848_p2, %p6842_p13 }
  0x82   :  { %6852 = shalt.err (!%p6849_p3)
}
  0x83   :  { %183 = dma.hbm_to_vmem [thread:$0]  %s7177_s6, 32, %s178_s21, [#allocation16], %s7080_s11, %s7080_s11, %s7081_s29  }
  0x84   :  { %s6853_s24 = scalar_lea.hbm %s7187_s20, 32 }
  0x85   :  { %p6854_p4 = scmp.ne.s32.totalorder %s7187_s20, %s6853_s24  ;;  %p6857_p5 = scmp.lt.u32.totalorder %s6853_s24, %s7187_s20 }
  0x87   :  { %p6859_p6 = pnand %p6857_p5, %p6854_p4 }
  0x89   :  { %6862 = shalt.err (!%p6859_p6)
}
  0x8a   :  { %s6863_s0 = scalar_lea.vmem %s202_s15, 32  ;;  %p6868_p8 = scmp.lt.s32.totalorder %s202_s15, %s202_s15 }
  0x8b   :  { %p6864_p7 = scmp.ne.s32.totalorder %s202_s15, %s6863_s0  ;;  %p6869_p9 = scmp.lt.s32.totalorder %s6863_s0, %s6863_s0 }
  0x8d   :  { %p6870_p10 = por %p6869_p9, %p6868_p8 }
  0x8f   :  { %p6871_p11 = pnand %p6870_p10, %p6864_p7 }
  0x91   :  { %6874 = shalt.err (!%p6871_p11)
}
  0x92   :  { %207 = dma.hbm_to_vmem [thread:$0]  %s7187_s20, 32, %s202_s15, [#allocation19], %s7080_s11, %s7080_s11, %s7081_s29  }
  0x93   :  { %s7084_s6 = smov [#allocation4]   ;;  %s7085_s22 = smov [#allocation8]  }
  0x94   :  { %s94_s23 = sshll.u32 %s7084_s6, 4  ;;  %s118_s26 = sshll.u32 %s7085_s22, 4  ;;  %s95_s23 = int_to_ptr.vmem [resolvable:$true] %s94_s23  ;;  %s119_s26 = int_to_ptr.vmem [resolvable:$true] %s118_s26 }
  0x95   :  { %s6875_s1 = scalar_lea.hbm %s7117_s9, 32 }
  0x96   :  { %p6876_p12 = scmp.ne.s32.totalorder %s7117_s9, %s6875_s1  ;;  %p6879_p13 = scmp.lt.u32.totalorder %s6875_s1, %s7117_s9 }
  0x98   :  { %p6881_p0 = pnand %p6879_p13, %p6876_p12 }
  0x9a   :  { %6884 = shalt.err (!%p6881_p0)
}
  0x9b   :  { %s6885_s13 = scalar_lea.vmem %s95_s23, 32  ;;  %p6890_p2 = scmp.lt.s32.totalorder %s95_s23, %s95_s23 }
  0x9c   :  { %p6886_p1 = scmp.ne.s32.totalorder %s95_s23, %s6885_s13  ;;  %p6891_p3 = scmp.lt.s32.totalorder %s6885_s13, %s6885_s13 }
  0x9e   :  { %p6892_p4 = por %p6891_p3, %p6890_p2 }
  0xa0   :  { %p6893_p5 = pnand %p6892_p4, %p6886_p1 }
  0xa2   :  { %6896 = shalt.err (!%p6893_p5)
}
  0xa3   :  { %97 = dma.hbm_to_vmem [thread:$0]  %s7117_s9, 32, %s95_s23, [#allocation5]  }
  0xa4   :  { %s6897_s20 = scalar_lea.hbm %s7137_s25, 16 }
  0xa5   :  { %p6898_p6 = scmp.ne.s32.totalorder %s7137_s25, %s6897_s20  ;;  %p6901_p7 = scmp.lt.u32.totalorder %s6897_s20, %s7137_s25 }
  0xa7   :  { %p6903_p8 = pnand %p6901_p7, %p6898_p6 }
  0xa9   :  { %6906 = shalt.err (!%p6903_p8)
}
  0xaa   :  { %s6907_s2 = scalar_lea.vmem %s119_s26, 16  ;;  %s6911_s7 = scalar_lea.vmem %s119_s26, 32 }
  0xab   :  { %p6908_p9 = scmp.ne.s32.totalorder %s119_s26, %s6907_s2  ;;  %p6912_p10 = scmp.lt.s32.totalorder %s119_s26, %s119_s26 }
  0xac   :  { %p6913_p11 = scmp.lt.s32.totalorder %s6911_s7, %s6907_s2 }
  0xae   :  { %p6914_p12 = por %p6913_p11, %p6912_p10 }
  0xb0   :  { %p6915_p13 = pnand %p6914_p12, %p6908_p9 }
  0xb2   :  { %6918 = shalt.err (!%p6915_p13)
}
  0xb3   :  { %121 = dma.hbm_to_vmem [thread:$0]  %s7137_s25, 16, %s119_s26, [#allocation7]  }
  0xb4   :  { %s7086_s9 = smov [#allocation11]   ;;  %s7087_s21 = smov [#allocation14]  }
  0xb5   :  { %s138_s16 = sshll.u32 %s7086_s9, 4  ;;  %s165_s8 = sshll.u32 %s7087_s21, 4  ;;  %s139_s16 = int_to_ptr.vmem [resolvable:$true] %s138_s16  ;;  %s166_s8 = int_to_ptr.vmem [resolvable:$true] %s165_s8 }
  0xb6   :  { %s6919_s15 = scalar_lea.hbm %s7147_s3, 16 }
  0xb7   :  { %p6920_p0 = scmp.ne.s32.totalorder %s7147_s3, %s6919_s15  ;;  %p6923_p1 = scmp.lt.u32.totalorder %s6919_s15, %s7147_s3 }
  0xb9   :  { %p6925_p2 = pnand %p6923_p1, %p6920_p0 }
  0xbb   :  { %6928 = shalt.err (!%p6925_p2)
}
  0xbc   :  { %s6929_s18 = scalar_lea.vmem %s139_s16, 16  ;;  %s6933_s27 = scalar_lea.vmem %s139_s16, 32 }
  0xbd   :  { %p6930_p3 = scmp.ne.s32.totalorder %s139_s16, %s6929_s18  ;;  %p6934_p4 = scmp.lt.s32.totalorder %s139_s16, %s139_s16 }
  0xbe   :  { %p6935_p5 = scmp.lt.s32.totalorder %s6933_s27, %s6929_s18 }
  0xc0   :  { %p6936_p6 = por %p6935_p5, %p6934_p4 }
  0xc2   :  { %p6937_p7 = pnand %p6936_p6, %p6930_p3 }
  0xc4   :  { %6940 = shalt.err (!%p6937_p7)
}
  0xc5   :  { %141 = dma.hbm_to_vmem [thread:$0]  %s7147_s3, 16, %s139_s16, [#allocation10]  }
  0xc6   :  { %s6941_s25 = scalar_lea.hbm %s7172_s30, 32 }
  0xc7   :  { %p6942_p8 = scmp.ne.s32.totalorder %s7172_s30, %s6941_s25  ;;  %p6945_p9 = scmp.lt.u32.totalorder %s6941_s25, %s7172_s30 }
  0xc9   :  { %p6947_p10 = pnand %p6945_p9, %p6942_p8 }
  0xcb   :  { %6950 = shalt.err (!%p6947_p10)
}
  0xcc   :  { %s6951_s24 = scalar_lea.vmem %s166_s8, 32  ;;  %p6956_p12 = scmp.lt.s32.totalorder %s166_s8, %s166_s8 }
  0xcd   :  { %p6952_p11 = scmp.ne.s32.totalorder %s166_s8, %s6951_s24  ;;  %p6957_p13 = scmp.lt.s32.totalorder %s6951_s24, %s6951_s24 }
  0xcf   :  { %p6958_p0 = por %p6957_p13, %p6956_p12 }
  0xd1   :  { %p6959_p1 = pnand %p6958_p0, %p6952_p11 }
  0xd3   :  { %6962 = shalt.err (!%p6959_p1)
}
  0xd4   :  { %171 = dma.hbm_to_vmem [thread:$0]  %s7172_s30, 32, %s166_s8, [#allocation13], %s7080_s11, %s7080_s11, %s7081_s29  }
  0xd5   :  { %s7088_s3 = smov [#allocation17]   ;;  %s7089_s6 = smov [#allocation20]  }
  0xd6   :  { %s189_s0 = sshll.u32 %s7088_s3, 4  ;;  %s224_s23 = sshll.u32 %s7089_s6, 4  ;;  %s190_s0 = int_to_ptr.vmem [resolvable:$true] %s189_s0  ;;  %s225_s23 = int_to_ptr.vmem [resolvable:$true] %s224_s23 }
  0xd7   :  { %s6963_s22 = scalar_lea.hbm %s7182_s12, 32 }
  0xd8   :  { %p6964_p2 = scmp.ne.s32.totalorder %s7182_s12, %s6963_s22  ;;  %p6967_p3 = scmp.lt.u32.totalorder %s6963_s22, %s7182_s12 }
  0xda   :  { %p6969_p4 = pnand %p6967_p3, %p6964_p2 }
  0xdc   :  { %6972 = shalt.err (!%p6969_p4)
}
  0xdd   :  { %s6973_s26 = scalar_lea.vmem %s190_s0, 32  ;;  %p6978_p6 = scmp.lt.s32.totalorder %s190_s0, %s190_s0 }
  0xde   :  { %p6974_p5 = scmp.ne.s32.totalorder %s190_s0, %s6973_s26  ;;  %p6979_p7 = scmp.lt.s32.totalorder %s6973_s26, %s6973_s26 }
  0xe0   :  { %p6980_p8 = por %p6979_p7, %p6978_p6 }
  0xe2   :  { %p6981_p9 = pnand %p6980_p8, %p6974_p5 }
  0xe4   :  { %6984 = shalt.err (!%p6981_p9)
}
  0xe5   :  { %195 = dma.hbm_to_vmem [thread:$0]  %s7182_s12, 32, %s190_s0, [#allocation16], %s7080_s11, %s7080_s11, %s7081_s29  }
  0xe6   :  { %s6985_s30 = scalar_lea.hbm %s7217_s4, 16 }
  0xe7   :  { %p6986_p10 = scmp.ne.s32.totalorder %s7217_s4, %s6985_s30  ;;  %p6989_p11 = scmp.lt.u32.totalorder %s6985_s30, %s7217_s4 }
  0xe9   :  { %p6991_p12 = pnand %p6989_p11, %p6986_p10 }
  0xeb   :  { %6994 = shalt.err (!%p6991_p12)
}
  0xec   :  { %s6995_s1 = scalar_lea.vmem %s225_s23, 16  ;;  %s6999_s13 = scalar_lea.vmem %s225_s23, 32 }
  0xed   :  { %p6996_p13 = scmp.ne.s32.totalorder %s225_s23, %s6995_s1  ;;  %p7000_p0 = scmp.lt.s32.totalorder %s225_s23, %s225_s23 }
  0xee   :  { %p7001_p1 = scmp.lt.s32.totalorder %s6999_s13, %s6995_s1 }
  0xf0   :  { %p7002_p2 = por %p7001_p1, %p7000_p0 }
  0xf2   :  { %p7003_p3 = pnand %p7002_p2, %p6996_p13 }
  0xf4   :  { %7006 = shalt.err (!%p7003_p3)
}
  0xf5   :  { %227 = dma.hbm_to_vmem [thread:$0]  %s7217_s4, 16, %s225_s23, [#allocation19]  }
  0xf6   :  { %s7090_s12 = smov [#allocation21]   ;;  %s7007_s20 = scalar_lea.hbm %s7240_s19, 1024 }
  0xf7   :  { %s241_s29 = sshll.u32 %s7090_s12, 4  ;;  %p7008_p4 = scmp.ne.s32.totalorder %s7240_s19, %s7007_s20  ;;  %s242_s29 = int_to_ptr.vmem [resolvable:$true] %s241_s29 }
  0xf8   :  { %p7011_p5 = scmp.lt.u32.totalorder %s7007_s20, %s7240_s19 }
  0xfa   :  { %p7013_p6 = pnand %p7011_p5, %p7008_p4 }
  0xfc   :  { %7016 = shalt.err (!%p7013_p6)
}
  0xfd   :  { %s7017_s2 = scalar_lea.vmem %s242_s29, 1024  ;;  %p7022_p8 = scmp.lt.s32.totalorder %s242_s29, %s242_s29 }
  0xfe   :  { %p7018_p7 = scmp.ne.s32.totalorder %s242_s29, %s7017_s2  ;;  %p7023_p9 = scmp.lt.s32.totalorder %s7017_s2, %s7017_s2 }
 0x100   :  { %p7024_p10 = por %p7023_p9, %p7022_p8 }
 0x102   :  { %p7025_p11 = pnand %p7024_p10, %p7018_p7 }
 0x104   :  { %7028 = shalt.err (!%p7025_p11)
}
 0x105   :  { %s7091_s7 = smov 128   ;;  %s7092_s9 = smov 8  }
 0x106   :  { %247 = dma.hbm_to_vmem [thread:$0]  %s7240_s19, 1024, %s242_s29, [#allocation22], %s7091_s7, %s7091_s7, %s7092_s9  }
 0x107   :  { %7029 = dma.done.wait [#allocation5], 32  }
 0x108   :  { %7030 = vsyncadd [#allocation5], 4294967264 }
 0x109   :  { %7031 = dma.done.wait [#allocation7], 48  }
 0x10a   :  { %7032 = vsyncadd [#allocation7], 4294967248 }
 0x10b   :  { %7033 = dma.done.wait [#allocation10], 32  }
 0x10c   :  { %7034 = vsyncadd [#allocation10], 4294967264 }
 0x10d   :  { %7035 = dma.done.wait [#allocation13], 64  }
 0x10e   :  { %7036 = vsyncadd [#allocation13], 4294967232 }
 0x10f   :  { %7037 = dma.done.wait [#allocation16], 64  }
 0x110   :  { %7038 = vsyncadd [#allocation16], 4294967232 }
 0x111   :  { %7039 = dma.done.wait [#allocation19], 48  }
 0x112   :  { %7040 = vsyncadd [#allocation19], 4294967248 }
 0x113   :  { %7041 = dma.done.wait [#allocation22], 1024  }
 0x114   :  { %7042 = vsyncadd [#allocation22], 4294966272  ;;  %vm326_vm0 = vcmask 1043456   ;;  %v294_v2 = vld [vmem:[%s7112_s5] sm:$0xff]  ;;  %v296_v3 = vld [vmem:[%s7112_s5 + $0x10] sm:$0xff]  ;;  %s8166_s19 = sld [smem:[#allocation30_spill]]  ;;  %v392_v44 = vlaneseq }
 0x115   :  { %v295_v4 = vld [vmem:[%s7112_s5 + $0x8] sm:$0xff]  ;;  %v310_v5 = vcombine.high %v294_v2, %v294_v2  ;;  %v327_v6 = vsel %vm326_vm0, %v294_v2, 0.0  ;;  %v312_v7 = vcombine.high %v296_v3, %v296_v3  ;;  %v337_v8 = vsel %vm326_vm0, %v296_v3, 0.0  ;;  %v297_v9 = vld [vmem:[%s7112_s5 + $0x18] sm:$0xff]  ;;  %v298_v10 = vld [vmem:[%s7112_s5 + $0x20] sm:$0xff]  ;;  %s8168_s4 = sld [smem:[#allocation32_spill]] }
 0x116   :  { %v311_v11 = vcombine.high %v295_v4, %v295_v4  ;;  %v332_v12 = vsel %vm326_vm0, %v295_v4, 0.0  ;;  %v313_v13 = vcombine.high %v297_v9, %v297_v9  ;;  %v299_v14 = vld [vmem:[%s7112_s5 + $0x28] sm:$0xff]  ;;  %v342_v17 = vsel %vm326_vm0, %v297_v9, 0.0  ;;  %v300_v23 = vld [vmem:[%s7112_s5 + $0x30] sm:$0xff]  ;;  %v301_v24 = vld [vmem:[%s7112_s5 + $0x38] sm:$0xff]  ;;  %s8167_s5 = sld [smem:[#allocation31_spill]] }
 0x117   :  { %v328_v15 = vsel %vm326_vm0, %v310_v5, 0.0  ;;  %v338_v16 = vsel %vm326_vm0, %v312_v7, 0.0  ;;  %v314_v18 = vcombine.high %v298_v10, %v298_v10  ;;  %v315_v25 = vcombine.high %v299_v14, %v299_v14  ;;  %s8169_s16 = sld [smem:[#allocation33_spill]]  ;;  %s7095_s21 = smov 64  }
 0x118   :  { %v329_v19 = vadd.f32 %v328_v15, %v327_v6  ;;  %v339_v20 = vadd.f32 %v338_v16, %v337_v8  ;;  %v333_v21 = vsel %vm326_vm0, %v311_v11, 0.0  ;;  %v343_v22 = vsel %vm326_vm0, %v313_v13, 0.0  ;;  %s7097_s8 = smov 48   ;;  %s7098_s15 = smov 112  }
 0x119   :  { %v334_v26 = vadd.f32 %v333_v21, %v332_v12  ;;  %v344_v27 = vadd.f32 %v343_v22, %v342_v17  ;;  %v347_v28 = vsel %vm326_vm0, %v298_v10, 0.0  ;;  %v348_v29 = vsel %vm326_vm0, %v314_v18, 0.0  ;;  %s7099_s18 = smov 32   ;;  %s7100_s27 = smov 96  }
 0x11a   :  { %330 = vadd.xlane.f32.xlu0 %v329_v19  ;;  %340 = vadd.xlane.f32.xlu1 %v339_v20  ;;  %v352_v30 = vsel %vm326_vm0, %v299_v14, 0.0  ;;  %v353_v31 = vsel %vm326_vm0, %v315_v25, 0.0  ;;  %v316_v32 = vcombine.high %v300_v23, %v300_v23  ;;  %v317_v33 = vcombine.high %v301_v24, %v301_v24  ;;  %v376_v42 = vld [vmem:[%s8166_s19] sm:$0xf]  ;;  %s8170_s25 = sld [smem:[#allocation34_spill]]  ;;  %s7102_s24 = smov 80  }
 0x11b   :  { %v349_v34 = vadd.f32 %v348_v29, %v347_v28  ;;  %v354_v35 = vadd.f32 %v353_v31, %v352_v30  ;;  %v357_v36 = vsel %vm326_vm0, %v300_v23, 0.0  ;;  %v362_v38 = vsel %vm326_vm0, %v301_v24, 0.0  ;;  %v5681_v29 = vld [vmem:[#allocation8] ss:$0 sm:$0xff]  ;;  %v5682_v31 = vld [vmem:[#allocation9] ss:$0 sm:$0xff] }
 0x11c   :  { %v358_v37 = vsel %vm326_vm0, %v316_v32, 0.0  ;;  %v363_v39 = vsel %vm326_vm0, %v317_v33, 0.0  ;;  %v7093_v43 = vmov 0.0   ;;  %vm7094_vm1 = vmmov 0   ;;  %v5678_v15 = vld [vmem:[%s8167_s5] ss:$0 sm:$0xff] }
 0x11d   :  { %v359_v40 = vadd.f32 %v358_v37, %v357_v36  ;;  %v364_v41 = vadd.f32 %v363_v39, %v362_v38  ;;  %6063 = vmatprep.subr.mxu0 %v7093_v43  ;;  %6065 = vmatprep.mubr.msk.f32.mxu0 %vm7094_vm1, %v7093_v43  ;;  %v7374_v45 = vand.u32 127, %v392_v44  ;;  %v7376_v46 = vshrl.u32 %v392_v44, 7  ;;  %s8171_s3 = sld [smem:[#allocation35_spill]]  ;;  %s8172_s0 = sld [smem:[#allocation37_spill]] }
 0x11e   :  { %335 = vadd.xlane.f32.xlu0 %v334_v26  ;;  %345 = vadd.xlane.f32.xlu1 %v344_v27  ;;  %vm426_vm2 = vcmask 1041409   ;;  %vm428_vm3 = vcmask 1042434   ;;  %vm430_vm4 = vcmask 1043459   ;;  %vm432_vm5 = vcmask 1044484   ;;  %s8173_s6 = sld [smem:[#allocation36_spill]]  ;;  %s8174_s23 = sld [smem:[#allocation38_spill]] }
 0x11f   :  { %6064 = vmatpush3.msk.msra.mxu0 %vm326_vm0, %v376_v42  ;;  %722 = vmatprep.mubr.f32.mxu1 %v7093_v43  ;;  %v7380_v49 = vsub.s32 %v7374_v45, %v7376_v46  ;;  %vm434_vm6 = vcmask 1045509   ;;  %vm436_vm7 = vcmask 1046534   ;;  %vm438_vm8 = vcmask 1047559   ;;  %s8176_s22 = sld [smem:[#allocation43_spill]]  ;;  %s8177_s26 = sld [smem:[#allocation42_spill]] }
 0x120   :  { %6068 = vmatprep.subr.mxu0 %v7093_v43  ;;  %vm440_vm9 = vcmask 31744   ;;  %vm518_vm10 = vcmask 523264   ;;  %v554_v32 = vand.u32 3, %v7376_v46  ;;  %vm743_vm12 = vcmask 130048   ;;  %s8179_s30 = sld [smem:[#allocation45_spill]]  ;;  %s8180_s1 = sld [smem:[#allocation40_spill]] }
 0x121   :  { %vm908_vm13 = vcmask 27648   ;;  %s8181_s13 = sld [smem:[#allocation41_spill]] }
 0x122   :  { %350 = vadd.xlane.f32.xlu0 %v349_v34  ;;  %355 = vadd.xlane.f32.xlu1 %v354_v35  ;;  %vm562_vm11 = vcmp.eq.s32.totalorder %v554_v32, 0  ;;  %v5683_v35 = vld [vmem:[#allocation11] ss:$0 sm:$0xff]  ;;  %v573_v32 = vld [vmem:[#allocation4] sm:$0x3] }
 0x126   :  { %360 = vadd.xlane.f32.xlu0 %v359_v40  ;;  %365 = vadd.xlane.f32.xlu1 %v364_v41 }
 0x1a7   :  { %v331_v47 = vpop.xlane.xlu0 %330  ;;  %v341_v48 = vpop.xlane.xlu1 %340 }
 0x1a8   :  { %v368_v50 = vmul.f32 0.00390625, %v331_v47  ;;  %v370_v51 = vmul.f32 0.00390625, %v341_v48  ;;  %v628_v47 = vld [vmem:[%s8168_s4 + $0x8] sm:$0xff]  ;;  %v630_v48 = vld [vmem:[%s8168_s4 + $0x18] sm:$0xff] }
 0x1aa   :  { %v397_v56 = vrot.slane %v368_v50, %v7380_v49  ;;  %v405_v59 = vrot.slane %v370_v51, %v7380_v49  ;;  %v6376_v50 = vpack.c.bf16 %v630_v48, %v628_v47  ;;  %v627_v51 = vld [vmem:[%s8168_s4] sm:$0xff] }
 0x1ab   :  { %v336_v52 = vpop.xlane.xlu0 %335  ;;  %v346_v53 = vpop.xlane.xlu1 %345 }
 0x1ac   :  { %v369_v54 = vmul.f32 0.00390625, %v336_v52  ;;  %v371_v55 = vmul.f32 0.00390625, %v346_v53  ;;  %v629_v52 = vld [vmem:[%s8168_s4 + $0x10] sm:$0xff]  ;;  %6377 = vmatprep.subr.bf16.mxu1 %v6376_v50 }
 0x1ad   :  { %v6378_v53 = vpack.c.bf16 %v629_v52, %v627_v51 }
 0x1ae   :  { %v401_v57 = vrot.slane %v369_v54, %v7380_v49  ;;  %v409_v58 = vrot.slane %v371_v55, %v7380_v49  ;;  %v632_v54 = vld [vmem:[%s8168_s4 + $0x28] sm:$0xff]  ;;  %v634_v55 = vld [vmem:[%s8168_s4 + $0x38] sm:$0xff] }
 0x1af   :  { %v351_v60 = vpop.xlane.xlu0 %350  ;;  %v356_v61 = vpop.xlane.xlu1 %355  ;;  %6379 = vmatpush1.bf16.msra.mxu1 %v6378_v53 }
 0x1b0   :  { %v427_v62 = vsel %vm426_vm2, %v401_v57, %v397_v56  ;;  %v372_v63 = vmul.f32 0.00390625, %v351_v60  ;;  %v373_v0 = vmul.f32 0.00390625, %v356_v61  ;;  %v631_v56 = vld [vmem:[%s8168_s4 + $0x20] sm:$0xff]  ;;  %v6380_v57 = vpack.c.bf16 %v634_v55, %v632_v54  ;;  %v638_v60 = vld [vmem:[%s8168_s4 + $0x58] sm:$0xff] }
 0x1b1   :  { %v429_v1 = vsel %vm428_vm3, %v405_v59, %v427_v62  ;;  %v636_v59 = vld [vmem:[%s8168_s4 + $0x48] sm:$0xff] }
 0x1b2   :  { %v431_v2 = vsel %vm430_vm4, %v409_v58, %v429_v1  ;;  %v413_v3 = vrot.slane %v372_v63, %v7380_v49  ;;  %v417_v4 = vrot.slane %v373_v0, %v7380_v49  ;;  %v633_v58 = vld [vmem:[%s8168_s4 + $0x30] sm:$0xff]  ;;  %6381 = vmatprep.subr.bf16.mxu1 %v6380_v57  ;;  %v6384_v62 = vpack.c.bf16 %v638_v60, %v636_v59  ;;  %v635_v63 = vld [vmem:[%s8168_s4 + $0x40] sm:$0xff]  ;;  %v640_v1 = vld [vmem:[%s8168_s4 + $0x68] sm:$0xff] }
 0x1b3   :  { %v361_v5 = vpop.xlane.xlu0 %360  ;;  %v366_v6 = vpop.xlane.xlu1 %365  ;;  %v6382_v61 = vpack.c.bf16 %v633_v58, %v631_v56  ;;  %v637_v0 = vld [vmem:[%s8168_s4 + $0x50] sm:$0xff]  ;;  %vm5377_vm4 = vcmask 519169  }
 0x1b4   :  { %v433_v7 = vsel %vm432_vm5, %v413_v3, %v431_v2  ;;  %v374_v8 = vmul.f32 0.00390625, %v361_v5  ;;  %v375_v9 = vmul.f32 0.00390625, %v366_v6  ;;  %v642_v2 = vld [vmem:[%s8168_s4 + $0x78] sm:$0xff]  ;;  %v6386_v3 = vpack.c.bf16 %v637_v0, %v635_v63  ;;  %v639_v5 = vld [vmem:[%s8168_s4 + $0x60] sm:$0xff]  ;;  %v641_v6 = vld [vmem:[%s8168_s4 + $0x70] sm:$0xff] }
 0x1b5   :  { %v435_v12 = vsel %vm434_vm6, %v417_v4, %v433_v7  ;;  %6383 = vmatpush1.bf16.msra.mxu1 %v6382_v61  ;;  %v6388_v4 = vpack.c.bf16 %v642_v2, %v640_v1  ;;  %v6390_v7 = vpack.c.bf16 %v641_v6, %v639_v5  ;;  %vm5396_vm5 = vcmask 25608  }
 0x1b6   :  { %v421_v10 = vrot.slane %v374_v8, %v7380_v49  ;;  %v425_v11 = vrot.slane %v375_v9, %v7380_v49  ;;  %6385 = vmatprep.subr.bf16.mxu1 %v6384_v62  ;;  %vm4894_vm6 = vcmask 1041408  }
 0x1b8   :  { %v437_v13 = vsel %vm436_vm7, %v421_v10, %v435_v12  ;;  %v5684_v12 = vld [vmem:[#allocation14] ss:$0 sm:$0xff]  ;;  %vm5436_vm7 = vcmask 17408  }
 0x1b9   :  { %v439_v14 = vsel %vm438_vm8, %v425_v11, %v437_v13  ;;  %6387 = vmatpush1.bf16.msra.mxu1 %v6386_v3  ;;  %vm5017_vm8 = vcmask 1024  }
 0x1ba   :  { %6066 = vmatmul.mubr.msk.f32.vlgmr.msra.gmra.mrb[0].mxu0 %vm440_vm9, %v439_v14  ;;  %6389 = vmatprep.subr.bf16.mxu1 %v6388_v4  ;;  %v5685_v14 = vld [vmem:[#allocation15] ss:$0 sm:$0xff] }
 0x1bb   :  { %6070 = vmatprep.mubr.msk.f32.mxu0 %vm7094_vm1, %v7093_v43 }
 0x1bd   :  { %6391 = vmatpush1.bf16.msra.mxu1 %v6390_v7 }
 0x1be   :  { %6088 = vmatprep.subr.mxu1 %v7093_v43 }
 0x28d   :  { %v512_v16 = vpop.f32.mrb[0].mxu0 }
 0x28e   :  { %v513_v17 = vadd.f32 %v5678_v15, %v512_v16  ;;  %v6067_v18 = vpop.f32.mrb[1].mxu0 }
 0x28f   :  { %v643_v18 = vld [vmem:[%s8169_s16] sm:$0x3] }
 0x290   :  { %v519_v19 = vsel %vm518_vm10, %v513_v17, 0.0 }
 0x291   :  { %520 = vadd.xlane.f32.xlu0 %v519_v19 }
 0x31e   :  { %v521_v20 = vpop.xlane.xlu0 %520 }
 0x31f   :  { %v523_v21 = vmul.f32 0.015625, %v521_v20 }
 0x321   :  { %v524_v22 = vsub.f32 %v513_v17, %v523_v21  ;;  %v7425_v17 = vsub.s32 0, %v7376_v46 }
 0x323   :  { %v525_v23 = vmul.f32 %v524_v22, %v524_v22  ;;  %v648_v19 = vrot.slane %v643_v18, %v7425_v17 }
 0x325   :  { %v526_v24 = vsel %vm518_vm10, %v525_v23, 0.0 }
 0x326   :  { %527 = vadd.xlane.f32.xlu1 %v526_v24  ;;  %v7440_v24 = vsub.s32 1, %v7376_v46 }
 0x3b3   :  { %v528_v25 = vpop.xlane.xlu1 %527 }
 0x3b4   :  { %v529_v26 = vmul.f32 0.015625, %v528_v25 }
 0x3b6   :  { %v530_v27 = vadd.f32 1e-05, %v529_v26  ;;  %v652_v26 = vrot.slane %v643_v18, %v7440_v24 }
 0x3b8   :  { %6659 = vrsqrt.f32 %v530_v27 }
 0x3c2   :  { %v6660_v28 = vpop.eup %6659 }
 0x3c3   :  { %v532_v30 = vmul.f32 %v6660_v28, %v524_v22 }
 0x3c5   :  { %v539_v33 = vmul.f32 %v5681_v29, %v532_v30  ;;  %v7096_v29 = vmov 1966171168  }
 0x3c6   :  { %v577_v30 = vunpack.c.l.s4 %v7096_v29 }
 0x3c7   :  { %v546_v34 = vadd.f32 %v5682_v31, %v539_v33 }
 0x3c8   :  { %v578_v31 = vunpack.c.0.s8 %v577_v30 }
 0x3c9   :  { %v547_v36 = vmax.f32 %v546_v34, 0.0  ;;  %v574_v34 = vmul.f32 -1e+30, %v573_v32 }
 0x3ca   :  { %v7461_v33 = vsub.s32 %v578_v31, %v7376_v46 }
 0x3cb   :  { %v7398_v37 = vsel %vm562_vm11, %v5683_v35, %v547_v36 }
 0x3cc   :  { %v600_v38 = vsel %vm518_vm10, %v7398_v37, 0.0  ;;  %v582_v35 = vrot.slane %v574_v34, %v7461_v33 }
 0x3cd   :  { %601 = vadd.xlane.f32.xlu0 %v600_v38 }
 0x3ce   :  { %v590_v36 = vrot.slane %v582_v35, %v7461_v33  ;;  %v583_v38 = vcombine.high %v582_v35, %v582_v35 }
 0x45a   :  { %v602_v39 = vpop.xlane.xlu0 %601 }
 0x45b   :  { %v603_v40 = vmul.f32 0.015625, %v602_v39  ;;  %v7466_v39 = vrot.slane %v590_v36, %v7425_v17 }
 0x45d   :  { %v604_v41 = vsub.f32 %v7398_v37, %v603_v40  ;;  %v597_v40 = vrot.slane %v583_v38, %v7461_v33 }
 0x45f   :  { %v605_v42 = vmul.f32 %v604_v41, %v604_v41  ;;  %v7471_v48 = vrot.slane %v597_v40, %v7425_v17 }
 0x461   :  { %v606_v44 = vsel %vm518_vm10, %v605_v42, 0.0 }
 0x462   :  { %607 = vadd.xlane.f32.xlu1 %v606_v44 }
 0x4ef   :  { %v608_v8 = vpop.xlane.xlu1 %607 }
 0x4f0   :  { %v609_v9 = vmul.f32 0.015625, %v608_v8 }
 0x4f2   :  { %v610_v10 = vadd.f32 1e-05, %v609_v9 }
 0x4f4   :  { %6661 = vrsqrt.f32 %v610_v10 }
 0x4fe   :  { %v6662_v11 = vpop.eup %6661 }
 0x4ff   :  { %v612_v13 = vmul.f32 %v6662_v11, %v604_v41 }
 0x501   :  { %v619_v15 = vmul.f32 %v5684_v12, %v612_v13 }
 0x503   :  { %v626_v16 = vadd.f32 %v5685_v14, %v619_v15 }
 0x505   :  { %5686 = vmatmul.mubr.msk.f32.vlgmr.msra.gmra.mrb[0].mxu1 %vm518_vm10, %v626_v16 }
 0x506   :  { %6090 = vmatprep.mubr.msk.f32.mxu1 %vm7094_vm1, %v7093_v43 }
 0x5d8   :  { %v724_v20 = vpop.f32.mrb[0].mxu1 }
 0x5d9   :  { %v7429_v21 = vadd.f32 %v724_v20, %v648_v19  ;;  %v726_v22 = vpop.f32.mrb[1].mxu1 }
 0x5da   :  { %v7451_v28 = vadd.f32 %v726_v22, %v652_v26 }
 0x5db   :  { %741 = vrot.lane.b32.xlu0 %v7429_v21, %s7095_s21  ;;  %v7435_v23 = vcombine.high %v7429_v21, %v7429_v21 }
 0x5dc   :  { %v7493_v9 = vcombine.high %v7451_v28, %v7451_v28 }
 0x5dd   :  { %818 = vrot.lane.b32.xlu1 %v7435_v23, %s7095_s21 }
 0x64d   :  { %v742_v25 = vpop.permute.xlu0 %741 }
 0x64e   :  { %6069 = vmatpush3.xpose.msk.msra.mxu0 %vm743_vm12, %v742_v25 }
 0x64f   :  { %6073 = vmatprep.subr.mxu0 %v7093_v43  ;;  %v819_v27 = vpop.permute.xlu1 %818 }
 0x651   :  { %6071 = vmatmul.mubr.msk.f32.vlgmr.msra.gmra.mrb[2].mxu0 %vm743_vm12, %v7429_v21 }
 0x652   :  { %6074 = vmatpush3.xpose.msk.msra.mxu0 %vm743_vm12, %v819_v27  ;;  %6075 = vmatprep.mubr.msk.f32.mxu0 %vm7094_vm1, %v7093_v43 }
 0x653   :  { %6078 = vmatprep.subr.mxu0 %v7093_v43 }
 0x655   :  { %6076 = vmatmul.mubr.msk.f32.vlgmr.msra.gmra.mrb[4].mxu0 %vm743_vm12, %v7435_v23 }
 0x656   :  { %6079 = vmatpush3.msk.msra.mxu0 %vm326_vm0, %v7451_v28  ;;  %6080 = vmatprep.mubr.msk.f32.mxu0 %vm7094_vm1, %v7093_v43 }
 0x657   :  { %6083 = vmatprep.subr.mxu0 %v7093_v43 }
 0x724   :  { %v814_v41 = vpop.f32.mrb[2].mxu0 }
 0x725   :  { %v894_v42 = vmul.f32 0.25, %v814_v41  ;;  %v6072_v44 = vpop.f32.mrb[3].mxu0 }
 0x727   :  { %v906_v47 = vadd.f32 %v7466_v39, %v894_v42 }
 0x728   :  { %v890_v50 = vpop.f32.mrb[4].mxu0 }
 0x729   :  { %v895_v51 = vmul.f32 0.25, %v890_v50  ;;  %v6077_v52 = vpop.f32.mrb[5].mxu0  ;;  %v909_v53 = vsel %vm908_vm13, %v906_v47, -inf }
 0x72a   :  { %910 = vmax.xlane.f32.xlu1 %v909_v53  ;;  %v7101_v52 = vmov 0.0|0.0  }
 0x72b   :  { %v907_v54 = vadd.f32 %v7471_v48, %v895_v51 }
 0x72d   :  { %v912_v55 = vsel %vm908_vm13, %v907_v54, -inf }
 0x72e   :  { %913 = vmax.xlane.f32.xlu0 %v912_v55 }
 0x73b   :  { %1161 = vrot.lane.b32.xlu1 %v7435_v23, %s7097_s8 }
 0x73f   :  { %1081 = vrot.lane.b32.xlu1 %v7429_v21, %s7098_s15 }
 0x7b7   :  { %v911_v56 = vpop.xlane.xlu1 %910 }
 0x7b8   :  { %v915_v57 = vsub.f32 %v906_v47, %v911_v56 }
 0x7ba   :  { %v917_v58 = vmul.f32 1.442695, %v915_v57 }
 0x7bb   :  { %v914_v59 = vpop.xlane.xlu0 %913  ;;  %v1162_v2 = vpop.permute.xlu1 %1161 }
 0x7bc   :  { %6663 = vpow2.f32 %v917_v58  ;;  %v916_v60 = vsub.f32 %v907_v54, %v914_v59  ;;  %v729_v58 = vld [vmem:[%s8170_s25] sm:$0xff]  ;;  %v730_v59 = vld [vmem:[%s8170_s25 + $0x8] sm:$0xff] }
 0x7be   :  { %v919_v61 = vmul.f32 1.442695, %v916_v60 }
 0x7bf   :  { %v1082_v3 = vpop.permute.xlu1 %1081 }
 0x7c0   :  { %6665 = vpow2.f32 %v919_v61  ;;  %v6396_v61 = vpack.c.bf16 %v730_v59, %v729_v58  ;;  %v733_v58 = vld [vmem:[%s8170_s25 + $0x20] sm:$0xff]  ;;  %v734_v59 = vld [vmem:[%s8170_s25 + $0x28] sm:$0xff] }
 0x7c6   :  { %v6664_v62 = vpop.eup %6663 }
 0x7c7   :  { %v921_v63 = vsel %vm908_vm13, %v6664_v62, 0.0 }
 0x7c8   :  { %922 = vadd.xlane.f32.xlu0 %v921_v63 }
 0x7ca   :  { %v6666_v0 = vpop.eup %6665 }
 0x7cb   :  { %v924_v1 = vsel %vm908_vm13, %v6666_v0, 0.0 }
 0x7cc   :  { %925 = vadd.xlane.f32.xlu1 %v924_v1 }
 0x7dd   :  { %1159 = vrot.lane.b32.xlu1 %v7435_v23, %s7098_s15 }
 0x7de   :  { %1083 = vrot.lane.b32.xlu0 %v7429_v21, %s7097_s8 }
 0x855   :  { %v923_v4 = vpop.xlane.xlu0 %922 }
 0x856   :  { %6667 = vrcp.f32 %v923_v4 }
 0x859   :  { %v926_v5 = vpop.xlane.xlu1 %925  ;;  %v1084_v6 = vpop.permute.xlu0 %1083 }
 0x85a   :  { %6669 = vrcp.f32 %v926_v5  ;;  %6089 = vmatpush3.xpose.msk.msra.mxu1 %vm743_vm12, %v1084_v6 }
 0x85b   :  { %6098 = vmatprep.subr.mxu1 %v7093_v43 }
 0x85d   :  { %6091 = vmatmul.mubr.msk.f32.vlgmr.msra.gmra.mrb[2].mxu1 %vm743_vm12, %v1082_v3  ;;  %v1160_v12 = vpop.permute.xlu1 %1159  ;;  %v732_v3 = vld [vmem:[%s8170_s25 + $0x18] sm:$0xff] }
 0x85e   :  { %6100 = vmatprep.mubr.msk.f32.mxu1 %vm7094_vm1, %v7093_v43 }
 0x860   :  { %v6668_v7 = vpop.eup %6667 }
 0x861   :  { %v928_v8 = vmul.f32 %v6668_v7, %v6664_v62 }
 0x863   :  { %6081 = vmatmul.mubr.msk.f32.vlgmr.msra.gmra.mrb[6].mxu0 %vm440_vm9, %v928_v8 }
 0x864   :  { %v6670_v10 = vpop.eup %6669  ;;  %6084 = vmatpush3.msk.msra.mxu0 %vm326_vm0, %v7493_v9  ;;  %6085 = vmatprep.mubr.msk.f32.mxu0 %vm7094_vm1, %v7093_v43 }
 0x865   :  { %v930_v11 = vmul.f32 %v6670_v10, %v6666_v0  ;;  %6093 = vmatprep.subr.mxu0 %v7093_v43 }
 0x867   :  { %6086 = vmatmul.mubr.msk.f32.vlgmr.msra.gmra.mrb[8].mxu0 %vm440_vm9, %v930_v11 }
 0x868   :  { %6095 = vmatprep.mubr.msk.f32.mxu0 %vm7094_vm1, %v7093_v43 }
 0x86b   :  { %6094 = vmatpush3.xpose.msk.msra.mxu0 %vm743_vm12, %v1162_v2  ;;  %v731_v2 = vld [vmem:[%s8170_s25 + $0x10] sm:$0xff] }
 0x86c   :  { %6103 = vmatprep.subr.mxu0 %v7093_v43  ;;  %v6393_v4 = vpack.c.bf16 %v732_v3, %v731_v2 }
 0x86e   :  { %6096 = vmatmul.mubr.msk.f32.vlgmr.msra.gmra.mrb[10].mxu0 %vm743_vm12, %v1160_v12 }
 0x86f   :  { %6105 = vmatprep.mubr.msk.f32.mxu0 %vm7094_vm1, %v7093_v43 }
 0x930   :  { %v1155_v13 = vpop.f32.mrb[2].mxu1 }
 0x931   :  { %v1237_v14 = vmul.f32 0.25, %v1155_v13  ;;  %v6092_v15 = vpop.f32.mrb[3].mxu1 }
 0x933   :  { %v1239_v16 = vadd.f32 %v1237_v14, %v7466_v39 }
 0x935   :  { %v1241_v18 = vsel %vm908_vm13, %v1239_v16, -inf }
 0x936   :  { %1242 = vmax.xlane.f32.xlu0 %v1241_v18  ;;  %v1002_v19 = vpop.f32.mrb[6].mxu0 }
 0x937   :  { %v6082_v20 = vpop.f32.mrb[7].mxu0 }
 0x93a   :  { %v1077_v22 = vpop.f32.mrb[8].mxu0 }
 0x93b   :  { %v1494_v25 = vcombine.low %v1002_v19, %v1077_v22  ;;  %v6087_v26 = vpop.f32.mrb[9].mxu0 }
 0x941   :  { %v1233_v27 = vpop.f32.mrb[10].mxu0 }
 0x942   :  { %v1238_v29 = vmul.f32 0.25, %v1233_v27  ;;  %v6097_v30 = vpop.f32.mrb[11].mxu0 }
 0x944   :  { %v1240_v31 = vadd.f32 %v1238_v29, %v7471_v48 }
 0x946   :  { %v1244_v32 = vsel %vm908_vm13, %v1240_v31, -inf }
 0x947   :  { %1245 = vmax.xlane.f32.xlu1 %v1244_v32 }
 0x958   :  { %1340 = vrot.lane.b32.xlu1 %v7493_v9, %s7098_s15 }
 0x95c   :  { %1569 = vrot.lane.b32.xlu1 %v7429_v21, %s7099_s18 }
 0x960   :  { %1647 = vrot.lane.b32.xlu1 %v7435_v23, %s7099_s18 }
 0x964   :  { %1645 = vrot.lane.b32.xlu1 %v7435_v23, %s7100_s27 }
 0x9c3   :  { %v1243_v34 = vpop.xlane.xlu0 %1242 }
 0x9c4   :  { %v1247_v35 = vsub.f32 %v1239_v16, %v1243_v34 }
 0x9c6   :  { %v1249_v36 = vmul.f32 1.442695, %v1247_v35 }
 0x9c8   :  { %6671 = vpow2.f32 %v1249_v36 }
 0x9d2   :  { %v6672_v38 = vpop.eup %6671 }
 0x9d3   :  { %v1253_v40 = vsel %vm908_vm13, %v6672_v38, 0.0 }
 0x9d4   :  { %v1246_v41 = vpop.xlane.xlu1 %1245  ;;  %1254 = vadd.xlane.f32.xlu0 %v1253_v40 }
 0x9d5   :  { %v1248_v42 = vsub.f32 %v1240_v31, %v1246_v41 }
 0x9d7   :  { %v1251_v44 = vmul.f32 1.442695, %v1248_v42 }
 0x9d8   :  { %v1341_v47 = vpop.permute.xlu1 %1340 }
 0x9d9   :  { %6673 = vpow2.f32 %v1251_v44  ;;  %6104 = vmatpush3.msk.msra.mxu0 %vm326_vm0, %v1341_v47 }
 0x9da   :  { %6395 = vmatprep.subr.bf16.mxu0 %v7101_v52 }
 0x9dc   :  { %v1570_v63 = vpop.permute.xlu1 %1569 }
 0x9e0   :  { %v1648_v0 = vpop.permute.xlu1 %1647 }
 0x9e3   :  { %v6674_v50 = vpop.eup %6673 }
 0x9e4   :  { %v1256_v51 = vsel %vm908_vm13, %v6674_v50, 0.0  ;;  %v1646_v1 = vpop.permute.xlu1 %1645 }
 0x9e5   :  { %1257 = vadd.xlane.f32.xlu0 %v1256_v51 }
 0x9fb   :  { %1263 = vrot.lane.b32.xlu0 %v7451_v28, %s7098_s15 }
 0x9ff   :  { %1567 = vrot.lane.b32.xlu0 %v7429_v21, %s7100_s27 }
 0xa61   :  { %v1255_v53 = vpop.xlane.xlu0 %1254 }
 0xa62   :  { %6675 = vrcp.f32 %v1255_v53 }
 0xa6c   :  { %v6676_v55 = vpop.eup %6675 }
 0xa6d   :  { %v1260_v56 = vmul.f32 %v6676_v55, %v6672_v38 }
 0xa72   :  { %v1258_v54 = vpop.xlane.xlu0 %1257 }
 0xa73   :  { %6677 = vrcp.f32 %v1258_v54 }
 0xa76   :  { %v1264_v57 = vpop.permute.xlu0 %1263 }
 0xa77   :  { %6099 = vmatpush3.msk.msra.mxu1 %vm326_vm0, %v1264_v57 }
 0xa78   :  { %6101 = vmatmul.mubr.msk.f32.vlgmr.msra.gmra.mrb[4].mxu1 %vm440_vm9, %v1260_v56  ;;  %6392 = vmatprep.subr.bf16.mxu1 %v7101_v52 }
 0xa79   :  { %6112 = vmatprep.mubr.msk.f32.mxu1 %vm7094_vm1, %v7093_v43  ;;  %6394 = vmatpush3.bf16.msra.mxu1 %v6393_v4 }
 0xa7a   :  { %6122 = vmatprep.subr.mxu1 %v7093_v43  ;;  %v1568_v13 = vpop.permute.xlu0 %1567 }
 0xa7d   :  { %v6678_v60 = vpop.eup %6677 }
 0xa7e   :  { %v1262_v62 = vmul.f32 %v6678_v60, %v6674_v50 }
 0xa80   :  { %6106 = vmatmul.mubr.msk.f32.vlgmr.msra.gmra.mrb[12].mxu0 %vm440_vm9, %v1262_v62 }
 0xa81   :  { %6397 = vmatpush3.bf16.msra.mxu0 %v6396_v61  ;;  %6119 = vmatprep.mubr.msk.f32.mxu0 %vm7094_vm1, %v7093_v43  ;;  %v6399_v61 = vpack.c.bf16 %v734_v59, %v733_v58  ;;  %v5723_v59 = vld [vmem:[#allocation12] ss:$0 sm:$0xff] }
 0xa82   :  { %6127 = vmatprep.subr.mxu0 %v7093_v43 }
 0xa84   :  { %6120 = vmatmul.mubr.msk.f32.vlgmr.msra.gmra.mrb[14].mxu0 %vm743_vm12, %v1494_v25 }
 0xa85   :  { %6129 = vmatprep.mubr.msk.f32.mxu0 %vm7094_vm1, %v7093_v43 }
 0xa8a   :  { %6128 = vmatpush3.xpose.msk.msra.mxu0 %vm743_vm12, %v1648_v0 }
 0xa8b   :  { %6137 = vmatprep.subr.mxu0 %v7093_v43 }
 0xa8d   :  { %6130 = vmatmul.mubr.msk.f32.vlgmr.msra.gmra.mrb[16].mxu0 %vm743_vm12, %v1646_v1 }
 0xa8e   :  { %6139 = vmatprep.mubr.msk.f32.mxu0 %vm7094_vm1, %v7093_v43 }
 0xb4b   :  { %v1336_v5 = vpop.f32.mrb[4].mxu1 }
 0xb4c   :  { %v6102_v6 = vpop.f32.mrb[5].mxu1 }
 0xb53   :  { %v1413_v7 = vpop.f32.mrb[12].mxu0 }
 0xb54   :  { %v1419_v8 = vcombine.low %v1336_v5, %v1413_v7  ;;  %v6107_v10 = vpop.f32.mrb[13].mxu0 }
 0xb56   :  { %6113 = vmatmul.mubr.msk.f32.vlgmr.msra.gmra.mrb[6].mxu1 %vm743_vm12, %v1419_v8 }
 0xb57   :  { %6123 = vmatpush3.xpose.msk.msra.mxu1 %vm743_vm12, %v1570_v63  ;;  %v1563_v11 = vpop.f32.mrb[14].mxu0  ;;  %6124 = vmatprep.mubr.msk.f32.mxu1 %vm7094_vm1, %v7093_v43 }
 0xb58   :  { %v6121_v12 = vpop.f32.mrb[15].mxu0  ;;  %6132 = vmatprep.subr.mxu1 %v7093_v43 }
 0xb5a   :  { %6125 = vmatmul.mubr.msk.f32.vlgmr.msra.gmra.mrb[8].mxu1 %vm743_vm12, %v1568_v13 }
 0xb5b   :  { %6134 = vmatprep.mubr.msk.f32.mxu1 %vm7094_vm1, %v7093_v43 }
 0xb60   :  { %v1719_v14 = vpop.f32.mrb[16].mxu0 }
 0xb61   :  { %v1724_v15 = vmul.f32 0.25, %v1719_v14  ;;  %v6131_v16 = vpop.f32.mrb[17].mxu0 }
 0xb63   :  { %v1726_v18 = vadd.f32 %v1724_v15, %v7471_v48 }
 0xb65   :  { %v1730_v19 = vsel %vm908_vm13, %v1726_v18, -inf }
 0xb66   :  { %1731 = vmax.xlane.f32.xlu1 %v1730_v19 }
 0xb77   :  { %1826 = vrot.lane.b32.xlu1 %v7493_v9, %s7100_s27 }
 0xb7b   :  { %1981 = vrot.lane.b32.xlu1 %v7429_v21, %s7080_s11 }
 0xb7f   :  { %2059 = vrot.lane.b32.xlu1 %v7435_v23, %s7080_s11 }
 0xb83   :  { %2057 = vrot.lane.b32.xlu1 %v7435_v23, %s7102_s24 }
 0xbf3   :  { %v1732_v20 = vpop.xlane.xlu1 %1731 }
 0xbf4   :  { %v1734_v25 = vsub.f32 %v1726_v18, %v1732_v20 }
 0xbf6   :  { %v1737_v26 = vmul.f32 1.442695, %v1734_v25 }
 0xbf7   :  { %v1827_v22 = vpop.permute.xlu1 %1826 }
 0xbf8   :  { %6138 = vmatpush3.msk.msra.mxu0 %vm326_vm0, %v1827_v22  ;;  %6679 = vpow2.f32 %v1737_v26 }
 0xbf9   :  { %6149 = vmatprep.subr.mxu0 %v7093_v43 }
 0xbfb   :  { %v1982_v54 = vpop.permute.xlu1 %1981 }
 0xbff   :  { %v2060_v4 = vpop.permute.xlu1 %2059 }
 0xc02   :  { %v6680_v36 = vpop.eup %6679 }
 0xc03   :  { %v1742_v38 = vsel %vm908_vm13, %v6680_v36, 0.0  ;;  %v2058_v10 = vpop.permute.xlu1 %2057 }
 0xc29   :  { %v1488_v27 = vpop.f32.mrb[6].mxu1 }
 0xc2a   :  { %v7571_v29 = vadd.f32 %v1563_v11, %v1488_v27  ;;  %v6114_v30 = vpop.f32.mrb[7].mxu1 }
 0xc2d   :  { %v1641_v31 = vpop.f32.mrb[8].mxu1 }
 0xc2e   :  { %v1723_v32 = vmul.f32 0.25, %v1641_v31  ;;  %v6126_v34 = vpop.f32.mrb[9].mxu1 }
 0xc30   :  { %v1725_v35 = vadd.f32 %v1723_v32, %v7466_v39 }
 0xc32   :  { %v1727_v23 = vsel %vm908_vm13, %v1725_v35, -inf }
 0xc33   :  { %1728 = vmax.xlane.f32.xlu0 %v1727_v23 }
 0xc37   :  { %1743 = vadd.xlane.f32.xlu0 %v1742_v38 }
 0xcc0   :  { %v1729_v40 = vpop.xlane.xlu0 %1728 }
 0xcc1   :  { %v1733_v41 = vsub.f32 %v1725_v35, %v1729_v40 }
 0xcc3   :  { %v1735_v42 = vmul.f32 1.442695, %v1733_v41 }
 0xcc4   :  { %v1744_v44 = vpop.xlane.xlu0 %1743 }
 0xcc5   :  { %6681 = vpow2.f32 %v1735_v42  ;;  %v735_v42 = vld [vmem:[%s8170_s25 + $0x30] sm:$0xff] }
 0xcc6   :  { %6683 = vrcp.f32 %v1744_v44  ;;  %v736_v44 = vld [vmem:[%s8170_s25 + $0x38] sm:$0xff] }
 0xccf   :  { %v6682_v47 = vpop.eup %6681 }
 0xcd0   :  { %v6684_v50 = vpop.eup %6683  ;;  %v1739_v51 = vsel %vm908_vm13, %v6682_v47, 0.0 }
 0xcd1   :  { %v1748_v53 = vmul.f32 %v6684_v50, %v6680_v36  ;;  %1740 = vadd.xlane.f32.xlu0 %v1739_v51 }
 0xcd3   :  { %6140 = vmatmul.mubr.msk.f32.vlgmr.msra.gmra.mrb[18].mxu0 %vm440_vm9, %v1748_v53 }
 0xcd4   :  { %6150 = vmatpush3.xpose.msk.msra.mxu0 %vm743_vm12, %v1982_v54  ;;  %6151 = vmatprep.mubr.msk.f32.mxu0 %vm7094_vm1, %v7093_v43 }
 0xcd5   :  { %6159 = vmatprep.subr.mxu0 %v7093_v43 }
 0xce7   :  { %1749 = vrot.lane.b32.xlu0 %v7451_v28, %s7100_s27 }
 0xceb   :  { %1979 = vrot.lane.b32.xlu0 %v7429_v21, %s7102_s24 }
 0xd5e   :  { %v1741_v55 = vpop.xlane.xlu0 %1740 }
 0xd5f   :  { %6685 = vrcp.f32 %v1741_v55 }
 0xd62   :  { %v1750_v56 = vpop.permute.xlu0 %1749 }
 0xd63   :  { %6133 = vmatpush3.msk.msra.mxu1 %vm326_vm0, %v1750_v56 }
 0xd64   :  { %6398 = vmatprep.subr.bf16.mxu1 %v7101_v52 }
 0xd66   :  { %v1980_v57 = vpop.permute.xlu0 %1979 }
 0xd67   :  { %6152 = vmatmul.mubr.msk.f32.vlgmr.msra.gmra.mrb[20].mxu0 %vm743_vm12, %v1980_v57 }
 0xd68   :  { %6161 = vmatprep.mubr.msk.f32.mxu0 %vm7094_vm1, %v7093_v43 }
 0xd69   :  { %v6686_v60 = vpop.eup %6685 }
 0xd6a   :  { %v1746_v62 = vmul.f32 %v6686_v60, %v6682_v47  ;;  %v6402_v47 = vpack.c.bf16 %v736_v44, %v735_v42  ;;  %v2602_v42 = vld [vmem:[%s8172_s0 + $0x88] sm:$0xff] }
 0xd6c   :  { %6135 = vmatmul.mubr.msk.f32.vlgmr.msra.gmra.mrb[10].mxu1 %vm440_vm9, %v1746_v62 }
 0xd6d   :  { %6400 = vmatpush3.bf16.msra.mxu1 %v6399_v61  ;;  %6146 = vmatprep.mubr.msk.f32.mxu1 %vm7094_vm1, %v7093_v43 }
 0xd6e   :  { %6154 = vmatprep.subr.mxu1 %v7093_v43 }
 0xda6   :  { %v1899_v21 = vpop.f32.mrb[18].mxu0 }
 0xda7   :  { %v6141_v63 = vpop.f32.mrb[19].mxu0 }
 0xe3a   :  { %v2053_v0 = vpop.f32.mrb[20].mxu0 }
 0xe3b   :  { %v2135_v1 = vmul.f32 0.25, %v2053_v0  ;;  %v6153_v2 = vpop.f32.mrb[21].mxu0 }
 0xe3d   :  { %v2137_v3 = vadd.f32 %v2135_v1, %v7466_v39 }
 0xe3f   :  { %v1822_v5 = vpop.f32.mrb[10].mxu1  ;;  %v2139_v6 = vsel %vm908_vm13, %v2137_v3, -inf }
 0xe40   :  { %v1905_v7 = vcombine.low %v1822_v5, %v1899_v21  ;;  %v6136_v8 = vpop.f32.mrb[11].mxu1  ;;  %2140 = vmax.xlane.f32.xlu0 %v2139_v6  ;;  %v2429_v5 = vld [vmem:[%s8171_s3] sm:$0xff]  ;;  %v2431_v6 = vld [vmem:[%s8171_s3 + $0x10] sm:$0xff] }
 0xe41   :  { %v2434_v8 = vld [vmem:[%s8171_s3 + $0x28] sm:$0xff] }
 0xe42   :  { %6147 = vmatmul.mubr.msk.f32.vlgmr.msra.gmra.mrb[12].mxu1 %vm743_vm12, %v1905_v7  ;;  %v6406_v7 = vpack.c.bf16 %v2431_v6, %v2429_v5  ;;  %v2609_v6 = vld [vmem:[%s8172_s0 + $0xc0] sm:$0xff] }
 0xe43   :  { %6155 = vmatpush3.xpose.msk.msra.mxu1 %vm743_vm12, %v2060_v4  ;;  %6156 = vmatprep.mubr.msk.f32.mxu1 %vm7094_vm1, %v7093_v43 }
 0xe44   :  { %6164 = vmatprep.subr.mxu1 %v7093_v43 }
 0xe46   :  { %6157 = vmatmul.mubr.msk.f32.vlgmr.msra.gmra.mrb[14].mxu1 %vm743_vm12, %v2058_v10  ;;  %v2436_v10 = vld [vmem:[%s8171_s3 + $0x38] sm:$0xff] }
 0xe47   :  { %6166 = vmatprep.mubr.msk.f32.mxu1 %vm7094_vm1, %v7093_v43 }
 0xecd   :  { %v2141_v11 = vpop.xlane.xlu0 %2140 }
 0xece   :  { %v2145_v12 = vsub.f32 %v2137_v3, %v2141_v11  ;;  %v2430_v3 = vld [vmem:[%s8171_s3 + $0x8] sm:$0xff]  ;;  %v6408_v11 = vpack.c.bf16 %v2436_v10, %v2434_v8  ;;  %v2593_v10 = vld [vmem:[%s8172_s0 + $0x40] sm:$0xff] }
 0xed0   :  { %v2147_v13 = vmul.f32 1.442695, %v2145_v12  ;;  %v2433_v12 = vld [vmem:[%s8171_s3 + $0x20] sm:$0xff] }
 0xed2   :  { %6687 = vpow2.f32 %v2147_v13  ;;  %v2435_v13 = vld [vmem:[%s8171_s3 + $0x30] sm:$0xff] }
 0xedc   :  { %v6688_v14 = vpop.eup %6687 }
 0xedd   :  { %v2151_v15 = vsel %vm908_vm13, %v6688_v14, 0.0 }
 0xede   :  { %2152 = vadd.xlane.f32.xlu0 %v2151_v15  ;;  %v2438_v15 = vld [vmem:[%s8171_s3 + $0x48] sm:$0xff] }
 0xf15   :  { %v1974_v16 = vpop.f32.mrb[12].mxu1 }
 0xf16   :  { %v1978_v18 = vadd.f32 %v1974_v16, %v7571_v29  ;;  %v6148_v19 = vpop.f32.mrb[13].mxu1  ;;  %v2440_v16 = vld [vmem:[%s8171_s3 + $0x58] sm:$0xff] }
 0xf17   :  { %v2437_v19 = vld [vmem:[%s8171_s3 + $0x40] sm:$0xff] }
 0xf19   :  { %v2131_v20 = vpop.f32.mrb[14].mxu1 }
 0xf1a   :  { %v2136_v22 = vmul.f32 0.25, %v2131_v20  ;;  %v6158_v25 = vpop.f32.mrb[15].mxu1  ;;  %v2439_v20 = vld [vmem:[%s8171_s3 + $0x50] sm:$0xff] }
 0xf1b   :  { %v2442_v25 = vld [vmem:[%s8171_s3 + $0x68] sm:$0xff] }
 0xf1c   :  { %v2138_v26 = vadd.f32 %v2136_v22, %v7471_v48  ;;  %v6414_v22 = vpack.c.bf16 %v2439_v20, %v2437_v19  ;;  %v2613_v20 = vld [vmem:[%s8172_s0 + $0xe0] sm:$0xff] }
 0xf1e   :  { %v2142_v27 = vsel %vm908_vm13, %v2138_v26, -inf }
 0xf1f   :  { %2143 = vmax.xlane.f32.xlu1 %v2142_v27  ;;  %v2441_v27 = vld [vmem:[%s8171_s3 + $0x60] sm:$0xff] }
 0xf30   :  { %2238 = vrot.lane.b32.xlu1 %v7493_v9, %s7102_s24 }
 0xf6b   :  { %v2153_v23 = vpop.xlane.xlu0 %2152 }
 0xfac   :  { %v2144_v30 = vpop.xlane.xlu1 %2143 }
 0xfad   :  { %v2146_v31 = vsub.f32 %v2138_v26, %v2144_v30  ;;  %v2444_v26 = vld [vmem:[%s8171_s3 + $0x78] sm:$0xff] }
 0xfae   :  { %v6416_v30 = vpack.c.bf16 %v2444_v26, %v2442_v25  ;;  %v2597_v26 = vld [vmem:[%s8172_s0 + $0x60] sm:$0xff] }
 0xfaf   :  { %v2149_v32 = vmul.f32 1.442695, %v2146_v31  ;;  %v2443_v31 = vld [vmem:[%s8171_s3 + $0x70] sm:$0xff] }
 0xfb0   :  { %v2239_v34 = vpop.permute.xlu1 %2238 }
 0xfb1   :  { %6689 = vpow2.f32 %v2149_v32  ;;  %6165 = vmatpush3.msk.msra.mxu1 %vm326_vm0, %v2239_v34  ;;  %v6418_v32 = vpack.c.bf16 %v2443_v31, %v2441_v27  ;;  %v2598_v27 = vld [vmem:[%s8172_s0 + $0x68] sm:$0xff]  ;;  %v2615_v31 = vld [vmem:[%s8172_s0 + $0xf0] sm:$0xff] }
 0xfb2   :  { %6691 = vrcp.f32 %v2153_v23 }
 0xfbb   :  { %v6690_v29 = vpop.eup %6689 }
 0xfbc   :  { %v2154_v35 = vsel %vm908_vm13, %v6690_v29, 0.0  ;;  %v6692_v9 = vpop.eup %6691 }
 0xfbd   :  { %2155 = vadd.xlane.f32.xlu0 %v2154_v35  ;;  %v2158_v38 = vmul.f32 %v6692_v9, %v6688_v14  ;;  %v6410_v14 = vpack.c.bf16 %v2435_v13, %v2433_v12  ;;  %v2611_v13 = vld [vmem:[%s8172_s0 + $0xd0] sm:$0xff] }
 0xfd3   :  { %2161 = vrot.lane.b32.xlu0 %v7451_v28, %s7102_s24 }
0x104a   :  { %v2156_v36 = vpop.xlane.xlu0 %2155 }
0x104b   :  { %6693 = vrcp.f32 %v2156_v36  ;;  %v5724_v36 = vld [vmem:[#allocation17] ss:$0 sm:$0xff] }
0x104e   :  { %v2162_v40 = vpop.permute.xlu0 %2161 }
0x104f   :  { %6160 = vmatpush3.msk.msra.mxu0 %vm326_vm0, %v2162_v40 }
0x1050   :  { %6162 = vmatmul.mubr.msk.f32.vlgmr.msra.gmra.mrb[22].mxu0 %vm440_vm9, %v2158_v38  ;;  %6401 = vmatprep.subr.bf16.mxu0 %v7101_v52  ;;  %v5725_v38 = vld [vmem:[#allocation18] ss:$0 sm:$0xff] }
0x1051   :  { %6173 = vmatprep.mubr.msk.f32.mxu0 %vm7094_vm1, %v7093_v43  ;;  %6403 = vmatpush3.bf16.msra.mxu0 %v6402_v47  ;;  %v2585_v47 = vld [vmem:[%s8172_s0] sm:$0xff] }
0x1055   :  { %v6694_v41 = vpop.eup %6693 }
0x1056   :  { %v2160_v28 = vmul.f32 %v6694_v41, %v6690_v29 }
0x1058   :  { %6167 = vmatmul.mubr.msk.f32.vlgmr.msra.gmra.mrb[16].mxu1 %vm440_vm9, %v2160_v28  ;;  %v2601_v28 = vld [vmem:[%s8172_s0 + $0x80] sm:$0xff] }
0x1059   :  { %2524 = vmatprep.mubr.f32.mxu1 %v7093_v43  ;;  %v6420_v44 = vpack.c.bf16 %v2602_v42, %v2601_v28 }
0x105b   :  { %6421 = vmatprep.subr.bf16.mxu0 %v6420_v44 }
0x1123   :  { %v2234_v50 = vpop.f32.mrb[22].mxu0 }
0x1124   :  { %v6163_v51 = vpop.f32.mrb[23].mxu0 }
0x112b   :  { %v2311_v53 = vpop.f32.mrb[16].mxu1 }
0x112c   :  { %v2317_v54 = vcombine.low %v2234_v50, %v2311_v53  ;;  %v6168_v55 = vpop.f32.mrb[17].mxu1  ;;  %v2586_v50 = vld [vmem:[%s8172_s0 + $0x8] sm:$0xff]  ;;  %v2603_v53 = vld [vmem:[%s8172_s0 + $0x90] sm:$0xff] }
0x112d   :  { %v6422_v51 = vpack.c.bf16 %v2586_v50, %v2585_v47 }
0x112e   :  { %6174 = vmatmul.mubr.msk.f32.vlgmr.msra.gmra.mrb[24].mxu0 %vm743_vm12, %v2317_v54  ;;  %v2604_v54 = vld [vmem:[%s8172_s0 + $0x98] sm:$0xff] }
0x112f   :  { %6423 = vmatpush3.bf16.msra.mxu0 %v6422_v51  ;;  %v6424_v55 = vpack.c.bf16 %v2604_v54, %v2603_v53 }
0x1131   :  { %6425 = vmatprep.subr.bf16.mxu0 %v6424_v55 }
0x1201   :  { %v2386_v56 = vpop.f32.mrb[24].mxu0 }
0x1202   :  { %v2390_v57 = vadd.f32 %v2386_v56, %v1978_v18  ;;  %v6175_v58 = vpop.f32.mrb[25].mxu0  ;;  %v6412_v18 = vpack.c.bf16 %v2440_v16, %v2438_v15  ;;  %v2587_v56 = vld [vmem:[%s8172_s0 + $0x10] sm:$0xff] }
0x1203   :  { %v2595_v16 = vld [vmem:[%s8172_s0 + $0x50] sm:$0xff] }
0x1204   :  { %v2391_v60 = vadd.f32 %v2390_v57, %v7398_v37  ;;  %v2432_v37 = vld [vmem:[%s8171_s3 + $0x18] sm:$0xff] }
0x1205   :  { %v6404_v4 = vpack.c.bf16 %v2432_v37, %v2430_v3  ;;  %v2588_v57 = vld [vmem:[%s8172_s0 + $0x18] sm:$0xff]  ;;  %v2591_v37 = vld [vmem:[%s8172_s0 + $0x30] sm:$0xff] }
0x1206   :  { %v7628_v61 = vadd.f32 %v5723_v59, %v2391_v60  ;;  %v6426_v58 = vpack.c.bf16 %v2588_v57, %v2587_v56  ;;  %v2605_v59 = vld [vmem:[%s8172_s0 + $0xa0] sm:$0xff]  ;;  %v2606_v60 = vld [vmem:[%s8172_s0 + $0xa8] sm:$0xff] }
0x1207   :  { %6405 = vmatprep.subr.bf16.mxu1 %v6404_v4  ;;  %v2592_v4 = vld [vmem:[%s8172_s0 + $0x38] sm:$0xff] }
0x1208   :  { %v2402_v62 = vsel %vm518_vm10, %v7628_v61, 0.0  ;;  %6407 = vmatpush1.bf16.msra.mxu1 %v6406_v7  ;;  %6427 = vmatpush3.bf16.msra.mxu0 %v6426_v58  ;;  %v6434_v5 = vpack.c.bf16 %v2592_v4, %v2591_v37  ;;  %v2610_v7 = vld [vmem:[%s8172_s0 + $0xc8] sm:$0xff] }
0x1209   :  { %2403 = vadd.xlane.f32.xlu1 %v2402_v62  ;;  %6409 = vmatprep.subr.bf16.mxu1 %v6408_v11  ;;  %v6428_v62 = vpack.c.bf16 %v2606_v60, %v2605_v59  ;;  %v6436_v8 = vpack.c.bf16 %v2610_v7, %v2609_v6  ;;  %v2594_v11 = vld [vmem:[%s8172_s0 + $0x48] sm:$0xff] }
0x120a   :  { %v6438_v12 = vpack.c.bf16 %v2594_v11, %v2593_v10 }
0x120b   :  { %6429 = vmatprep.subr.bf16.mxu0 %v6428_v62 }
0x120c   :  { %6411 = vmatpush1.bf16.msra.mxu1 %v6410_v14  ;;  %v2612_v14 = vld [vmem:[%s8172_s0 + $0xd8] sm:$0xff] }
0x120d   :  { %6413 = vmatprep.subr.bf16.mxu1 %v6412_v18  ;;  %v6440_v15 = vpack.c.bf16 %v2612_v14, %v2611_v13  ;;  %v2596_v18 = vld [vmem:[%s8172_s0 + $0x58] sm:$0xff] }
0x120e   :  { %v6442_v19 = vpack.c.bf16 %v2596_v18, %v2595_v16 }
0x1210   :  { %6415 = vmatpush1.bf16.msra.mxu1 %v6414_v22  ;;  %v2614_v22 = vld [vmem:[%s8172_s0 + $0xe8] sm:$0xff] }
0x1211   :  { %6417 = vmatprep.subr.bf16.mxu1 %v6416_v30  ;;  %v6444_v25 = vpack.c.bf16 %v2614_v22, %v2613_v20  ;;  %v6446_v30 = vpack.c.bf16 %v2598_v27, %v2597_v26 }
0x1214   :  { %6419 = vmatpush1.bf16.msra.mxu1 %v6418_v32  ;;  %v2616_v32 = vld [vmem:[%s8172_s0 + $0xf8] sm:$0xff] }
0x1296   :  { %v2404_v21 = vpop.xlane.xlu1 %2403 }
0x1297   :  { %v2405_v63 = vmul.f32 0.015625, %v2404_v21  ;;  %v2589_v21 = vld [vmem:[%s8172_s0 + $0x20] sm:$0xff] }
0x1299   :  { %v2406_v0 = vsub.f32 %v7628_v61, %v2405_v63  ;;  %v2590_v63 = vld [vmem:[%s8172_s0 + $0x28] sm:$0xff] }
0x129b   :  { %v2407_v1 = vmul.f32 %v2406_v0, %v2406_v0 }
0x129d   :  { %v2408_v2 = vsel %vm518_vm10, %v2407_v1, 0.0  ;;  %v2607_v1 = vld [vmem:[%s8172_s0 + $0xb0] sm:$0xff] }
0x129e   :  { %2409 = vadd.xlane.f32.xlu0 %v2408_v2  ;;  %v2608_v2 = vld [vmem:[%s8172_s0 + $0xb8] sm:$0xff] }
0x129f   :  { %v6432_v3 = vpack.c.bf16 %v2608_v2, %v2607_v1 }
0x132b   :  { %v2410_v34 = vpop.xlane.xlu0 %2409 }
0x132c   :  { %v2411_v29 = vmul.f32 0.015625, %v2410_v34  ;;  %v6448_v34 = vpack.c.bf16 %v2616_v32, %v2615_v31 }
0x132e   :  { %v2412_v35 = vadd.f32 1e-05, %v2411_v29  ;;  %v2599_v29 = vld [vmem:[%s8172_s0 + $0x70] sm:$0xff] }
0x1330   :  { %6695 = vrsqrt.f32 %v2412_v35  ;;  %v2600_v35 = vld [vmem:[%s8172_s0 + $0x78] sm:$0xff] }
0x133a   :  { %v6696_v23 = vpop.eup %6695 }
0x133b   :  { %v2414_v9 = vmul.f32 %v6696_v23, %v2406_v0  ;;  %v6430_v0 = vpack.c.bf16 %v2590_v63, %v2589_v21  ;;  %v6450_v23 = vpack.c.bf16 %v2600_v35, %v2599_v29 }
0x133d   :  { %v2421_v40 = vmul.f32 %v5724_v36, %v2414_v9  ;;  %6431 = vmatpush3.bf16.msra.mxu0 %v6430_v0  ;;  %v2445_v36 = vld [vmem:[%s8173_s6] sm:$0x3] }
0x133e   :  { %6433 = vmatprep.subr.bf16.mxu0 %v6432_v3  ;;  %v2450_v9 = vrot.slane %v2445_v36, %v7425_v17 }
0x133f   :  { %v2428_v41 = vadd.f32 %v5725_v38, %v2421_v40  ;;  %v2454_v38 = vrot.slane %v2445_v36, %v7440_v24 }
0x1341   :  { %5726 = vmatmul.mubr.msk.f32.vlgmr.msra.gmra.mrb[18].mxu1 %vm518_vm10, %v2428_v41  ;;  %6435 = vmatpush3.bf16.msra.mxu0 %v6434_v5 }
0x1342   :  { %2823 = vmatprep.mubr.f32.mxu1 %v7093_v43  ;;  %6437 = vmatprep.subr.bf16.mxu0 %v6436_v8 }
0x1345   :  { %6439 = vmatpush3.bf16.msra.mxu0 %v6438_v12 }
0x1346   :  { %6441 = vmatprep.subr.bf16.mxu0 %v6440_v15 }
0x1349   :  { %6443 = vmatpush3.bf16.msra.mxu0 %v6442_v19 }
0x134a   :  { %6445 = vmatprep.subr.bf16.mxu0 %v6444_v25 }
0x134d   :  { %6447 = vmatpush3.bf16.msra.mxu0 %v6446_v30 }
0x134e   :  { %6449 = vmatprep.subr.bf16.mxu0 %v6448_v34 }
0x1351   :  { %6451 = vmatpush3.bf16.msra.mxu0 %v6450_v23 }
0x1352   :  { %6181 = vmatprep.subr.mxu0 %v7093_v43 }
0x1414   :  { %v2526_v40 = vpop.f32.mrb[18].mxu1 }
0x1415   :  { %v2527_v41 = vadd.f32 %v2526_v40, %v2450_v9  ;;  %v2528_v28 = vpop.f32.mrb[19].mxu1 }
0x1416   :  { %v2529_v42 = vadd.f32 %v2528_v28, %v2454_v38 }
0x1417   :  { %v2533_v44 = vmul.f32 0.70710677, %v2527_v41  ;;  %v2531_v9 = vmul.f32 0.5, %v2527_v41 }
0x1418   :  { %v2534_v47 = vmul.f32 0.70710677, %v2529_v42  ;;  %v2532_v23 = vmul.f32 0.5, %v2529_v42 }
0x1419   :  { %v2535_v50 = vand.u32 2147483647, %v2533_v44  ;;  %vm2575_vm14 = vcmp.ge.f32.partialorder %v2533_v44, 0.0 }
0x141a   :  { %v2536_v51 = vand.u32 2147483647, %v2534_v47  ;;  %vm2576_vm15 = vcmp.ge.f32.partialorder %v2534_v47, 0.0 }
0x141b   :  { %v2537_v53 = vmul.f32 0.3275911, %v2535_v50  ;;  %v2563_v57 = vsub.f32 0.0, %v2535_v50 }
0x141c   :  { %v2538_v54 = vmul.f32 0.3275911, %v2536_v51  ;;  %v2564_v58 = vsub.f32 0.0, %v2536_v51 }
0x141d   :  { %v2539_v55 = vadd.f32 1.0, %v2537_v53  ;;  %v2565_v60 = vmul.f32 %v2563_v57, %v2535_v50  ;;  %v5727_v50 = vld [vmem:[%s8174_s23] ss:$0 sm:$0xff] }
0x141e   :  { %v2540_v56 = vadd.f32 1.0, %v2538_v54  ;;  %v2566_v63 = vmul.f32 %v2564_v58, %v2536_v51  ;;  %v5731_v58 = vld [vmem:[%s8168_s4 + $0x88] sm:$0xff] }
0x141f   :  { %6697 = vrcp.f32 %v2539_v55  ;;  %v2567_v2 = vmul.f32 1.442695, %v2565_v60  ;;  %v5730_v60 = vld [vmem:[%s8168_s4 + $0x80] sm:$0xff] }
0x1420   :  { %6699 = vrcp.f32 %v2540_v56  ;;  %v2569_v4 = vmul.f32 1.442695, %v2566_v63  ;;  %v5735_v63 = vld [vmem:[%s8168_s4 + $0xa8] sm:$0xff] }
0x1421   :  { %6701 = vpow2.f32 %v2567_v2  ;;  %v5734_v2 = vld [vmem:[%s8168_s4 + $0xa0] sm:$0xff] }
0x1422   :  { %6703 = vpow2.f32 %v2569_v4  ;;  %v5739_v4 = vld [vmem:[%s8168_s4 + $0xc8] sm:$0xff] }
0x1429   :  { %v6698_v59 = vpop.eup %6697 }
0x142a   :  { %v6700_v62 = vpop.eup %6699  ;;  %v2545_v21 = vmul.f32 1.0614054, %v6698_v59 }
0x142b   :  { %v2546_v0 = vmul.f32 1.0614054, %v6700_v62  ;;  %v6702_v19 = vpop.eup %6701 }
0x142c   :  { %v2547_v1 = vadd.f32 -1.4531521, %v2545_v21  ;;  %v6704_v22 = vpop.eup %6703 }
0x142d   :  { %v2548_v3 = vadd.f32 -1.4531521, %v2546_v0  ;;  %v5737_v0 = vld [vmem:[%s8168_s4 + $0xb8] sm:$0xff] }
0x142e   :  { %v2549_v37 = vmul.f32 %v6698_v59, %v2547_v1  ;;  %v6456_v1 = vpack.c.bf16 %v5737_v0, %v5735_v63 }
0x142f   :  { %v2550_v5 = vmul.f32 %v6700_v62, %v2548_v3  ;;  %v5736_v3 = vld [vmem:[%s8168_s4 + $0xb0] sm:$0xff] }
0x1430   :  { %v2551_v6 = vadd.f32 1.4214138, %v2549_v37  ;;  %v6458_v37 = vpack.c.bf16 %v5736_v3, %v5734_v2 }
0x1431   :  { %v2552_v7 = vadd.f32 1.4214138, %v2550_v5  ;;  %v5741_v5 = vld [vmem:[%s8168_s4 + $0xd8] sm:$0xff] }
0x1432   :  { %v2553_v8 = vmul.f32 %v6698_v59, %v2551_v6  ;;  %v6460_v6 = vpack.c.bf16 %v5741_v5, %v5739_v4 }
0x1433   :  { %v2554_v10 = vmul.f32 %v6700_v62, %v2552_v7  ;;  %v5738_v7 = vld [vmem:[%s8168_s4 + $0xc0] sm:$0xff] }
0x1434   :  { %v2555_v11 = vadd.f32 -0.28449672, %v2553_v8  ;;  %v5740_v8 = vld [vmem:[%s8168_s4 + $0xd0] sm:$0xff] }
0x1435   :  { %v2556_v12 = vadd.f32 -0.28449672, %v2554_v10  ;;  %v6462_v10 = vpack.c.bf16 %v5740_v8, %v5738_v7 }
0x1436   :  { %v2557_v13 = vmul.f32 %v6698_v59, %v2555_v11  ;;  %v5743_v11 = vld [vmem:[%s8168_s4 + $0xe8] sm:$0xff] }
0x1437   :  { %v2558_v14 = vmul.f32 %v6700_v62, %v2556_v12  ;;  %v5745_v12 = vld [vmem:[%s8168_s4 + $0xf8] sm:$0xff] }
0x1438   :  { %v2559_v15 = vadd.f32 0.2548296, %v2557_v13  ;;  %v5742_v13 = vld [vmem:[%s8168_s4 + $0xe0] sm:$0xff] }
0x1439   :  { %v2560_v16 = vadd.f32 0.2548296, %v2558_v14  ;;  %v6464_v14 = vpack.c.bf16 %v5745_v12, %v5743_v11 }
0x143a   :  { %v2561_v18 = vmul.f32 %v6698_v59, %v2559_v15  ;;  %v5744_v15 = vld [vmem:[%s8168_s4 + $0xf0] sm:$0xff] }
0x143b   :  { %v2562_v20 = vmul.f32 %v6700_v62, %v2560_v16  ;;  %v5732_v62 = vld [vmem:[%s8168_s4 + $0x90] sm:$0xff]  ;;  %v6466_v16 = vpack.c.bf16 %v5744_v15, %v5742_v13 }
0x143c   :  { %v2571_v25 = vmul.f32 %v6702_v19, %v2561_v18  ;;  %v6454_v21 = vpack.c.bf16 %v5732_v62, %v5730_v60 }
0x143d   :  { %v2572_v26 = vmul.f32 %v6704_v22, %v2562_v20 }
0x143e   :  { %v2573_v27 = vsub.f32 1.0, %v2571_v25  ;;  %v5728_v25 = vld [vmem:[#allocation14 + $0x1] ss:$0 sm:$0xff] }
0x143f   :  { %v2574_v30 = vsub.f32 1.0, %v2572_v26 }
0x1440   :  { %v2577_v31 = vsub.f32 0.0, %v2573_v27 }
0x1441   :  { %v2578_v32 = vsub.f32 0.0, %v2574_v30 }
0x1442   :  { %v2579_v34 = vsel %vm2575_vm14, %v2573_v27, %v2577_v31  ;;  %v5729_v27 = vld [vmem:[#allocation15 + $0x1] ss:$0 sm:$0xff] }
0x1443   :  { %v2581_v29 = vadd.f32 1.0, %v2579_v34  ;;  %v2580_v35 = vsel %vm2576_vm15, %v2574_v30, %v2578_v32  ;;  %v5746_v32 = vld [vmem:[%s8169_s16 + $0x2] sm:$0x3] }
0x1444   :  { %v2582_v36 = vadd.f32 1.0, %v2580_v35  ;;  %v2749_v34 = vrot.slane %v5746_v32, %v7425_v17 }
0x1445   :  { %v2583_v40 = vmul.f32 %v2581_v29, %v2531_v9  ;;  %v2753_v9 = vrot.slane %v5746_v32, %v7440_v24 }
0x1446   :  { %v2584_v38 = vmul.f32 %v2582_v36, %v2532_v23 }
0x1448   :  { %2688 = vmatprep.mubr.f32.mxu0 %v2584_v38 }
0x1449   :  { %2689 = vmatmul.mubr.f32.vlgmr.msra.gmra.mrb[26].mxu0 %v2583_v40 }
0x144a   :  { %6183 = vmatprep.mubr.msk.f32.mxu0 %vm7094_vm1, %v7093_v43 }
0x151c   :  { %v5937_v28 = vpop.f32.mrb[26].mxu0 }
0x151d   :  { %v5938_v44 = vpop.f32.mrb[27].mxu0 }
0x151e   :  { %v5939_v47 = vadd.f32 %v5938_v44, %v5937_v28 }
0x1520   :  { %v2691_v51 = vadd.f32 %v5939_v47, %v5727_v50 }
0x1522   :  { %v7692_v42 = vadd.f32 %v2691_v51, %v7628_v61  ;;  %v5733_v61 = vld [vmem:[%s8168_s4 + $0x98] sm:$0xff] }
0x1523   :  { %v6452_v59 = vpack.c.bf16 %v5733_v61, %v5731_v58 }
0x1524   :  { %v2699_v41 = vsel %vm518_vm10, %v7692_v42, 0.0 }
0x1525   :  { %2700 = vadd.xlane.f32.xlu0 %v2699_v41  ;;  %6453 = vmatprep.subr.bf16.mxu1 %v6452_v59 }
0x1526   :  { %6455 = vmatpush1.bf16.msra.mxu1 %v6454_v21 }
0x1527   :  { %6457 = vmatprep.subr.bf16.mxu1 %v6456_v1 }
0x152a   :  { %6459 = vmatpush1.bf16.msra.mxu1 %v6458_v37 }
0x152b   :  { %6461 = vmatprep.subr.bf16.mxu1 %v6460_v6 }
0x152e   :  { %6463 = vmatpush1.bf16.msra.mxu1 %v6462_v10 }
0x152f   :  { %6465 = vmatprep.subr.bf16.mxu1 %v6464_v14 }
0x1532   :  { %6467 = vmatpush1.bf16.msra.mxu1 %v6466_v16 }
0x1533   :  { %6176 = vmatprep.subr.mxu1 %v7093_v43 }
0x15b2   :  { %v2701_v53 = vpop.xlane.xlu0 %2700 }
0x15b3   :  { %v2702_v54 = vmul.f32 0.015625, %v2701_v53 }
0x15b5   :  { %v2703_v55 = vsub.f32 %v7692_v42, %v2702_v54 }
0x15b7   :  { %v2704_v56 = vmul.f32 %v2703_v55, %v2703_v55 }
0x15b9   :  { %v2705_v57 = vsel %vm518_vm10, %v2704_v56, 0.0 }
0x15ba   :  { %2706 = vadd.xlane.f32.xlu1 %v2705_v57 }
0x1647   :  { %v2707_v18 = vpop.xlane.xlu1 %2706 }
0x1648   :  { %v2708_v19 = vmul.f32 0.015625, %v2707_v18 }
0x164a   :  { %v2709_v20 = vadd.f32 1e-05, %v2708_v19 }
0x164c   :  { %6705 = vrsqrt.f32 %v2709_v20 }
0x1656   :  { %v6706_v22 = vpop.eup %6705 }
0x1657   :  { %v2711_v26 = vmul.f32 %v6706_v22, %v2703_v55 }
0x1659   :  { %v2718_v30 = vmul.f32 %v5728_v25, %v2711_v26 }
0x165b   :  { %v2725_v31 = vadd.f32 %v5729_v27, %v2718_v30 }
0x165d   :  { %5747 = vmatmul.mubr.msk.f32.vlgmr.msra.gmra.mrb[20].mxu1 %vm518_vm10, %v2725_v31 }
0x165e   :  { %6178 = vmatprep.mubr.msk.f32.mxu1 %vm7094_vm1, %v7093_v43 }
0x1730   :  { %v2825_v29 = vpop.f32.mrb[20].mxu1 }
0x1731   :  { %v7720_v35 = vadd.f32 %v2825_v29, %v2749_v34  ;;  %v2827_v23 = vpop.f32.mrb[21].mxu1 }
0x1732   :  { %v7731_v40 = vadd.f32 %v2827_v23, %v2753_v9 }
0x1733   :  { %2843 = vrot.lane.b32.xlu0 %v7720_v35, %s7095_s21  ;;  %v7726_v36 = vcombine.high %v7720_v35, %v7720_v35 }
0x1734   :  { %v7743_v50 = vcombine.high %v7731_v40, %v7731_v40 }
0x1735   :  { %2919 = vrot.lane.b32.xlu1 %v7726_v36, %s7095_s21 }
0x17a5   :  { %v2844_v38 = vpop.permute.xlu0 %2843 }
0x17a6   :  { %6177 = vmatpush3.xpose.msk.msra.mxu1 %vm743_vm12, %v2844_v38 }
0x17a7   :  { %v2920_v28 = vpop.permute.xlu1 %2919  ;;  %6186 = vmatprep.subr.mxu1 %v7093_v43 }
0x17a8   :  { %6182 = vmatpush3.xpose.msk.msra.mxu0 %vm743_vm12, %v2920_v28 }
0x17a9   :  { %6179 = vmatmul.mubr.msk.f32.vlgmr.msra.gmra.mrb[22].mxu1 %vm743_vm12, %v7720_v35  ;;  %6191 = vmatprep.subr.mxu0 %v7093_v43 }
0x17aa   :  { %6187 = vmatpush3.msk.msra.mxu1 %vm326_vm0, %v7731_v40  ;;  %6188 = vmatprep.mubr.msk.f32.mxu1 %vm7094_vm1, %v7093_v43 }
0x17ab   :  { %6184 = vmatmul.mubr.msk.f32.vlgmr.msra.gmra.mrb[28].mxu0 %vm743_vm12, %v7726_v36  ;;  %6196 = vmatprep.subr.mxu1 %v7093_v43 }
0x17ac   :  { %6192 = vmatpush3.msk.msra.mxu0 %vm326_vm0, %v7743_v50  ;;  %6193 = vmatprep.mubr.msk.f32.mxu0 %vm7094_vm1, %v7093_v43 }
0x17ad   :  { %6201 = vmatprep.subr.mxu0 %v7093_v43 }
0x187c   :  { %v2915_v44 = vpop.f32.mrb[22].mxu1 }
0x187d   :  { %v2995_v47 = vmul.f32 0.25, %v2915_v44  ;;  %v6180_v51 = vpop.f32.mrb[23].mxu1 }
0x187e   :  { %v2991_v41 = vpop.f32.mrb[28].mxu0 }
0x187f   :  { %v2996_v53 = vmul.f32 0.25, %v2991_v41  ;;  %v6185_v54 = vpop.f32.mrb[29].mxu0  ;;  %v2997_v55 = vadd.f32 %v2995_v47, %v7466_v39 }
0x1881   :  { %v2999_v56 = vsel %vm908_vm13, %v2997_v55, -inf  ;;  %v2998_v57 = vadd.f32 %v2996_v53, %v7471_v48 }
0x1882   :  { %3000 = vmax.xlane.f32.xlu1 %v2999_v56 }
0x1883   :  { %v3002_v58 = vsel %vm908_vm13, %v2998_v57, -inf }
0x1884   :  { %3003 = vmax.xlane.f32.xlu0 %v3002_v58 }
0x1893   :  { %3251 = vrot.lane.b32.xlu1 %v7726_v36, %s7097_s8 }
0x1897   :  { %3171 = vrot.lane.b32.xlu1 %v7720_v35, %s7098_s15 }
0x190f   :  { %v3001_v61 = vpop.xlane.xlu1 %3000 }
0x1910   :  { %v3005_v59 = vsub.f32 %v2997_v55, %v3001_v61  ;;  %v5750_v61 = vld [vmem:[%s8170_s25 + $0x50] sm:$0xff] }
0x1911   :  { %v3004_v60 = vpop.xlane.xlu0 %3003 }
0x1912   :  { %v3007_v62 = vmul.f32 1.442695, %v3005_v59  ;;  %v3006_v21 = vsub.f32 %v2998_v57, %v3004_v60  ;;  %v5751_v59 = vld [vmem:[%s8170_s25 + $0x58] sm:$0xff] }
0x1913   :  { %v3252_v37 = vpop.permute.xlu1 %3251 }
0x1914   :  { %6707 = vpow2.f32 %v3007_v62  ;;  %v3009_v63 = vmul.f32 1.442695, %v3006_v21  ;;  %v6469_v62 = vpack.c.bf16 %v5751_v59, %v5750_v61 }
0x1916   :  { %6709 = vpow2.f32 %v3009_v63  ;;  %v5748_v63 = vld [vmem:[%s8170_s25 + $0x40] sm:$0xff] }
0x1917   :  { %v3172_v4 = vpop.permute.xlu1 %3171 }
0x191e   :  { %v6708_v0 = vpop.eup %6707 }
0x191f   :  { %v3011_v1 = vsel %vm908_vm13, %v6708_v0, 0.0 }
0x1920   :  { %v6710_v2 = vpop.eup %6709  ;;  %3012 = vadd.xlane.f32.xlu0 %v3011_v1 }
0x1921   :  { %v3014_v3 = vsel %vm908_vm13, %v6710_v2, 0.0 }
0x1922   :  { %3015 = vadd.xlane.f32.xlu1 %v3014_v3 }
0x1933   :  { %3249 = vrot.lane.b32.xlu1 %v7726_v36, %s7098_s15 }
0x1936   :  { %3173 = vrot.lane.b32.xlu0 %v7720_v35, %s7097_s8 }
0x19ad   :  { %v3013_v5 = vpop.xlane.xlu0 %3012 }
0x19ae   :  { %6711 = vrcp.f32 %v3013_v5 }
0x19af   :  { %v3016_v6 = vpop.xlane.xlu1 %3015 }
0x19b0   :  { %6713 = vrcp.f32 %v3016_v6 }
0x19b1   :  { %v3174_v12 = vpop.permute.xlu0 %3173 }
0x19b3   :  { %v3250_v13 = vpop.permute.xlu1 %3249 }
0x19b8   :  { %v6712_v7 = vpop.eup %6711 }
0x19b9   :  { %v3018_v8 = vmul.f32 %v6712_v7, %v6708_v0  ;;  %v5749_v0 = vld [vmem:[%s8170_s25 + $0x48] sm:$0xff] }
0x19ba   :  { %v6714_v10 = vpop.eup %6713 }
0x19bb   :  { %v3020_v11 = vmul.f32 %v6714_v10, %v6710_v2  ;;  %6189 = vmatmul.mubr.msk.f32.vlgmr.msra.gmra.mrb[24].mxu1 %vm440_vm9, %v3018_v8  ;;  %v6472_v2 = vpack.c.bf16 %v5749_v0, %v5748_v63 }
0x19bc   :  { %6197 = vmatpush3.xpose.msk.msra.mxu1 %vm743_vm12, %v3174_v12  ;;  %6198 = vmatprep.mubr.msk.f32.mxu1 %vm7094_vm1, %v7093_v43 }
0x19bd   :  { %6194 = vmatmul.mubr.msk.f32.vlgmr.msra.gmra.mrb[30].mxu0 %vm440_vm9, %v3020_v11  ;;  %6206 = vmatprep.subr.mxu1 %v7093_v43 }
0x19be   :  { %6202 = vmatpush3.xpose.msk.msra.mxu0 %vm743_vm12, %v3252_v37  ;;  %6203 = vmatprep.mubr.msk.f32.mxu0 %vm7094_vm1, %v7093_v43 }
0x19bf   :  { %6199 = vmatmul.mubr.msk.f32.vlgmr.msra.gmra.mrb[26].mxu1 %vm743_vm12, %v3172_v4  ;;  %6211 = vmatprep.subr.mxu0 %v7093_v43 }
0x19c0   :  { %6208 = vmatprep.mubr.msk.f32.mxu1 %vm7094_vm1, %v7093_v43 }
0x19c1   :  { %6204 = vmatmul.mubr.msk.f32.vlgmr.msra.gmra.mrb[32].mxu0 %vm743_vm12, %v3250_v13 }
0x19c2   :  { %6213 = vmatprep.mubr.msk.f32.mxu0 %vm7094_vm1, %v7093_v43 }
0x1a8e   :  { %v7785_v14 = vpop.f32.mrb[24].mxu1 }
0x1a8f   :  { %v6190_v15 = vpop.f32.mrb[25].mxu1 }
0x1a90   :  { %v7787_v16 = vpop.f32.mrb[30].mxu0 }
0x1a91   :  { %v3584_v18 = vcombine.low %v7785_v14, %v7787_v16  ;;  %v6195_v19 = vpop.f32.mrb[31].mxu0 }
0x1a92   :  { %v3245_v20 = vpop.f32.mrb[26].mxu1 }
0x1a93   :  { %v3327_v22 = vmul.f32 0.25, %v3245_v20  ;;  %v6200_v25 = vpop.f32.mrb[27].mxu1 }
0x1a94   :  { %v3323_v26 = vpop.f32.mrb[32].mxu0 }
0x1a95   :  { %v3328_v27 = vmul.f32 0.25, %v3323_v26  ;;  %v6205_v30 = vpop.f32.mrb[33].mxu0  ;;  %v3329_v31 = vadd.f32 %v3327_v22, %v7466_v39 }
0x1a97   :  { %v3331_v32 = vsel %vm908_vm13, %v3329_v31, -inf  ;;  %v3330_v34 = vadd.f32 %v3328_v27, %v7471_v48 }
0x1a98   :  { %3332 = vmax.xlane.f32.xlu0 %v3331_v32 }
0x1a99   :  { %v3334_v29 = vsel %vm908_vm13, %v3330_v34, -inf }
0x1a9a   :  { %3335 = vmax.xlane.f32.xlu1 %v3334_v29 }
0x1aab   :  { %3430 = vrot.lane.b32.xlu1 %v7743_v50, %s7098_s15 }
0x1aaf   :  { %3659 = vrot.lane.b32.xlu1 %v7720_v35, %s7099_s18 }
0x1ab3   :  { %3737 = vrot.lane.b32.xlu1 %v7726_v36, %s7099_s18 }
0x1ab7   :  { %3735 = vrot.lane.b32.xlu1 %v7726_v36, %s7100_s27 }
0x1b25   :  { %v3333_v23 = vpop.xlane.xlu0 %3332 }
0x1b26   :  { %v3337_v9 = vsub.f32 %v3329_v31, %v3333_v23 }
0x1b27   :  { %v3336_v38 = vpop.xlane.xlu1 %3335 }
0x1b28   :  { %v3339_v28 = vmul.f32 1.442695, %v3337_v9  ;;  %v3338_v44 = vsub.f32 %v3330_v34, %v3336_v38 }
0x1b2a   :  { %6715 = vpow2.f32 %v3339_v28  ;;  %v3341_v47 = vmul.f32 1.442695, %v3338_v44 }
0x1b2b   :  { %v3431_v51 = vpop.permute.xlu1 %3430 }
0x1b2c   :  { %6717 = vpow2.f32 %v3341_v47  ;;  %6212 = vmatpush3.msk.msra.mxu0 %vm326_vm0, %v3431_v51 }
0x1b2d   :  { %6471 = vmatprep.subr.bf16.mxu0 %v7101_v52 }
0x1b2f   :  { %v3660_v37 = vpop.permute.xlu1 %3659 }
0x1b33   :  { %v3738_v4 = vpop.permute.xlu1 %3737 }
0x1b34   :  { %v6716_v41 = vpop.eup %6715 }
0x1b35   :  { %v3343_v53 = vsel %vm908_vm13, %v6716_v41, 0.0 }
0x1b36   :  { %v6718_v54 = vpop.eup %6717  ;;  %3344 = vadd.xlane.f32.xlu0 %v3343_v53 }
0x1b37   :  { %v3346_v55 = vsel %vm908_vm13, %v6718_v54, 0.0  ;;  %v3736_v5 = vpop.permute.xlu1 %3735 }
0x1b3a   :  { %3347 = vadd.xlane.f32.xlu0 %v3346_v55 }
0x1b50   :  { %3353 = vrot.lane.b32.xlu0 %v7731_v40, %s7098_s15 }
0x1b54   :  { %3657 = vrot.lane.b32.xlu0 %v7720_v35, %s7100_s27 }
0x1bc3   :  { %v3345_v56 = vpop.xlane.xlu0 %3344 }
0x1bc4   :  { %6719 = vrcp.f32 %v3345_v56 }
0x1bc7   :  { %v3348_v57 = vpop.xlane.xlu0 %3347 }
0x1bc8   :  { %6721 = vrcp.f32 %v3348_v57 }
0x1bcb   :  { %v3354_v58 = vpop.permute.xlu0 %3353 }
0x1bcc   :  { %6207 = vmatpush3.msk.msra.mxu1 %vm326_vm0, %v3354_v58 }
0x1bcd   :  { %6468 = vmatprep.subr.bf16.mxu1 %v7101_v52 }
0x1bce   :  { %v6720_v60 = vpop.eup %6719 }
0x1bcf   :  { %v3350_v21 = vmul.f32 %v6720_v60, %v6716_v41  ;;  %v3658_v14 = vpop.permute.xlu0 %3657  ;;  %v5752_v60 = vld [vmem:[%s8170_s25 + $0x60] sm:$0xff] }
0x1bd1   :  { %6209 = vmatmul.mubr.msk.f32.vlgmr.msra.gmra.mrb[28].mxu1 %vm440_vm9, %v3350_v21 }
0x1bd2   :  { %v6722_v1 = vpop.eup %6721  ;;  %6470 = vmatpush3.bf16.msra.mxu1 %v6469_v62  ;;  %6220 = vmatprep.mubr.msk.f32.mxu1 %vm7094_vm1, %v7093_v43  ;;  %v5753_v62 = vld [vmem:[%s8170_s25 + $0x68] sm:$0xff] }
0x1bd3   :  { %v3352_v3 = vmul.f32 %v6722_v1, %v6718_v54  ;;  %6230 = vmatprep.subr.mxu1 %v7093_v43  ;;  %v6475_v63 = vpack.c.bf16 %v5753_v62, %v5752_v60 }
0x1bd5   :  { %6214 = vmatmul.mubr.msk.f32.vlgmr.msra.gmra.mrb[34].mxu0 %vm440_vm9, %v3352_v3 }
0x1bd6   :  { %6473 = vmatpush3.bf16.msra.mxu0 %v6472_v2  ;;  %6227 = vmatprep.mubr.msk.f32.mxu0 %vm7094_vm1, %v7093_v43 }
0x1bd7   :  { %6235 = vmatprep.subr.mxu0 %v7093_v43 }
0x1bd9   :  { %6228 = vmatmul.mubr.msk.f32.vlgmr.msra.gmra.mrb[36].mxu0 %vm743_vm12, %v3584_v18 }
0x1bda   :  { %6237 = vmatprep.mubr.msk.f32.mxu0 %vm7094_vm1, %v7093_v43 }
0x1bdf   :  { %6236 = vmatpush3.xpose.msk.msra.mxu0 %vm743_vm12, %v3738_v4 }
0x1be0   :  { %6245 = vmatprep.subr.mxu0 %v7093_v43 }
0x1be2   :  { %6238 = vmatmul.mubr.msk.f32.vlgmr.msra.gmra.mrb[38].mxu0 %vm743_vm12, %v3736_v5 }
0x1be3   :  { %6247 = vmatprep.mubr.msk.f32.mxu0 %vm7094_vm1, %v7093_v43 }
0x1ca4   :  { %v3426_v6 = vpop.f32.mrb[28].mxu1 }
0x1ca5   :  { %v6210_v7 = vpop.f32.mrb[29].mxu1 }
0x1ca8   :  { %v3503_v8 = vpop.f32.mrb[34].mxu0 }
0x1ca9   :  { %v3509_v10 = vcombine.low %v3426_v6, %v3503_v8  ;;  %v6215_v11 = vpop.f32.mrb[35].mxu0 }
0x1cab   :  { %6221 = vmatmul.mubr.msk.f32.vlgmr.msra.gmra.mrb[30].mxu1 %vm743_vm12, %v3509_v10 }
0x1cac   :  { %6231 = vmatpush3.xpose.msk.msra.mxu1 %vm743_vm12, %v3660_v37  ;;  %v3653_v12 = vpop.f32.mrb[36].mxu0  ;;  %6232 = vmatprep.mubr.msk.f32.mxu1 %vm7094_vm1, %v7093_v43 }
0x1cad   :  { %v6229_v13 = vpop.f32.mrb[37].mxu0  ;;  %6240 = vmatprep.subr.mxu1 %v7093_v43 }
0x1caf   :  { %6233 = vmatmul.mubr.msk.f32.vlgmr.msra.gmra.mrb[32].mxu1 %vm743_vm12, %v3658_v14 }
0x1cb0   :  { %6242 = vmatprep.mubr.msk.f32.mxu1 %vm7094_vm1, %v7093_v43 }
0x1cb5   :  { %v3809_v15 = vpop.f32.mrb[38].mxu0 }
0x1cb6   :  { %v3814_v16 = vmul.f32 0.25, %v3809_v15  ;;  %v6239_v18 = vpop.f32.mrb[39].mxu0 }
0x1cb8   :  { %v3816_v19 = vadd.f32 %v3814_v16, %v7471_v48 }
0x1cba   :  { %v3820_v20 = vsel %vm908_vm13, %v3816_v19, -inf }
0x1cbb   :  { %3821 = vmax.xlane.f32.xlu1 %v3820_v20 }
0x1ccc   :  { %3916 = vrot.lane.b32.xlu1 %v7743_v50, %s7100_s27 }
0x1cd0   :  { %4071 = vrot.lane.b32.xlu1 %v7720_v35, %s7080_s11 }
0x1cd4   :  { %4149 = vrot.lane.b32.xlu1 %v7726_v36, %s7080_s11  ;;  %s8175_s11 = sld [smem:[#allocation39_spill]] }
0x1cd8   :  { %4147 = vrot.lane.b32.xlu1 %v7726_v36, %s7102_s24 }
0x1d48   :  { %v3822_v22 = vpop.xlane.xlu1 %3821 }
0x1d49   :  { %v3824_v26 = vsub.f32 %v3816_v19, %v3822_v22 }
0x1d4b   :  { %v3827_v27 = vmul.f32 1.442695, %v3824_v26 }
0x1d4c   :  { %v3917_v25 = vpop.permute.xlu1 %3916 }
0x1d4d   :  { %6246 = vmatpush3.msk.msra.mxu0 %vm326_vm0, %v3917_v25  ;;  %6723 = vpow2.f32 %v3827_v27 }
0x1d4e   :  { %6257 = vmatprep.subr.mxu0 %v7093_v43 }
0x1d50   :  { %v4072_v57 = vpop.permute.xlu1 %4071 }
0x1d54   :  { %v4150_v5 = vpop.permute.xlu1 %4149 }
0x1d57   :  { %v6724_v38 = vpop.eup %6723 }
0x1d58   :  { %v3832_v28 = vsel %vm908_vm13, %v6724_v38, 0.0  ;;  %v4148_v11 = vpop.permute.xlu1 %4147 }
0x1d7e   :  { %v3578_v30 = vpop.f32.mrb[30].mxu1 }
0x1d7f   :  { %v7856_v31 = vadd.f32 %v3653_v12, %v3578_v30  ;;  %v6222_v32 = vpop.f32.mrb[31].mxu1 }
0x1d82   :  { %v3731_v34 = vpop.f32.mrb[32].mxu1 }
0x1d83   :  { %v3813_v29 = vmul.f32 0.25, %v3731_v34  ;;  %v6234_v23 = vpop.f32.mrb[33].mxu1 }
0x1d85   :  { %v3815_v9 = vadd.f32 %v3813_v29, %v7466_v39 }
0x1d87   :  { %v3817_v36 = vsel %vm908_vm13, %v3815_v9, -inf }
0x1d88   :  { %3818 = vmax.xlane.f32.xlu0 %v3817_v36 }
0x1d8c   :  { %3833 = vadd.xlane.f32.xlu0 %v3832_v28 }
0x1e15   :  { %v3819_v44 = vpop.xlane.xlu0 %3818 }
0x1e16   :  { %v3823_v47 = vsub.f32 %v3815_v9, %v3819_v44  ;;  %v5754_v44 = vld [vmem:[%s8170_s25 + $0x70] sm:$0xff] }
0x1e18   :  { %v3825_v51 = vmul.f32 1.442695, %v3823_v47  ;;  %v5755_v47 = vld [vmem:[%s8170_s25 + $0x78] sm:$0xff] }
0x1e19   :  { %v3834_v41 = vpop.xlane.xlu0 %3833 }
0x1e1a   :  { %6725 = vpow2.f32 %v3825_v51  ;;  %v6478_v51 = vpack.c.bf16 %v5755_v47, %v5754_v44  ;;  %v5813_v44 = vld [vmem:[%s8172_s0 + $0x100] sm:$0xff]  ;;  %v5814_v47 = vld [vmem:[%s8172_s0 + $0x108] sm:$0xff] }
0x1e1b   :  { %6727 = vrcp.f32 %v3834_v41 }
0x1e24   :  { %v6726_v53 = vpop.eup %6725 }
0x1e25   :  { %v6728_v54 = vpop.eup %6727  ;;  %v3829_v55 = vsel %vm908_vm13, %v6726_v53, 0.0 }
0x1e26   :  { %v3838_v56 = vmul.f32 %v6728_v54, %v6724_v38  ;;  %3830 = vadd.xlane.f32.xlu0 %v3829_v55 }
0x1e28   :  { %6248 = vmatmul.mubr.msk.f32.vlgmr.msra.gmra.mrb[40].mxu0 %vm440_vm9, %v3838_v56 }
0x1e29   :  { %6258 = vmatpush3.xpose.msk.msra.mxu0 %vm743_vm12, %v4072_v57  ;;  %6259 = vmatprep.mubr.msk.f32.mxu0 %vm7094_vm1, %v7093_v43 }
0x1e2a   :  { %6267 = vmatprep.subr.mxu0 %v7093_v43 }
0x1e3c   :  { %3839 = vrot.lane.b32.xlu0 %v7731_v40, %s7100_s27 }
0x1e40   :  { %4069 = vrot.lane.b32.xlu0 %v7720_v35, %s7102_s24 }
0x1eb3   :  { %v3831_v58 = vpop.xlane.xlu0 %3830 }
0x1eb4   :  { %6729 = vrcp.f32 %v3831_v58 }
0x1eb7   :  { %v3840_v61 = vpop.permute.xlu0 %3839 }
0x1eb8   :  { %6241 = vmatpush3.msk.msra.mxu1 %vm326_vm0, %v3840_v61 }
0x1eb9   :  { %6474 = vmatprep.subr.bf16.mxu1 %v7101_v52 }
0x1ebb   :  { %v4070_v59 = vpop.permute.xlu0 %4069 }
0x1ebc   :  { %6260 = vmatmul.mubr.msk.f32.vlgmr.msra.gmra.mrb[42].mxu0 %vm743_vm12, %v4070_v59  ;;  %v5792_v59 = vld [vmem:[#allocation12 + $0x1] ss:$0 sm:$0xff] }
0x1ebd   :  { %6269 = vmatprep.mubr.msk.f32.mxu0 %vm7094_vm1, %v7093_v43 }
0x1ebe   :  { %v6730_v21 = vpop.eup %6729 }
0x1ebf   :  { %v3836_v0 = vmul.f32 %v6730_v21, %v6726_v53 }
0x1ec1   :  { %6243 = vmatmul.mubr.msk.f32.vlgmr.msra.gmra.mrb[34].mxu1 %vm440_vm9, %v3836_v0 }
0x1ec2   :  { %6476 = vmatpush3.bf16.msra.mxu1 %v6475_v63  ;;  %6254 = vmatprep.mubr.msk.f32.mxu1 %vm7094_vm1, %v7093_v43 }
0x1ec3   :  { %6262 = vmatprep.subr.mxu1 %v7093_v43 }
0x1efb   :  { %v3989_v35 = vpop.f32.mrb[40].mxu0 }
0x1efc   :  { %v6249_v1 = vpop.f32.mrb[41].mxu0 }
0x1f8f   :  { %v4143_v2 = vpop.f32.mrb[42].mxu0 }
0x1f90   :  { %v4225_v3 = vmul.f32 0.25, %v4143_v2  ;;  %v6261_v37 = vpop.f32.mrb[43].mxu0 }
0x1f92   :  { %v4227_v4 = vadd.f32 %v4225_v3, %v7466_v39  ;;  %v5796_v3 = vld [vmem:[%s8171_s3 + $0x88] sm:$0xff] }
0x1f94   :  { %v3912_v6 = vpop.f32.mrb[34].mxu1  ;;  %v4229_v7 = vsel %vm908_vm13, %v4227_v4, -inf }
0x1f95   :  { %v3995_v8 = vcombine.low %v3912_v6, %v3989_v35  ;;  %v6244_v10 = vpop.f32.mrb[35].mxu1  ;;  %4230 = vmax.xlane.f32.xlu0 %v4229_v7  ;;  %v5800_v7 = vld [vmem:[%s8171_s3 + $0xa8] sm:$0xff] }
0x1f97   :  { %6255 = vmatmul.mubr.msk.f32.vlgmr.msra.gmra.mrb[36].mxu1 %vm743_vm12, %v3995_v8  ;;  %v5802_v8 = vld [vmem:[%s8171_s3 + $0xb8] sm:$0xff] }
0x1f98   :  { %6263 = vmatpush3.xpose.msk.msra.mxu1 %vm743_vm12, %v4150_v5  ;;  %6264 = vmatprep.mubr.msk.f32.mxu1 %vm7094_vm1, %v7093_v43  ;;  %v5797_v5 = vld [vmem:[%s8171_s3 + $0x90] sm:$0xff]  ;;  %v6484_v10 = vpack.c.bf16 %v5802_v8, %v5800_v7  ;;  %v5822_v7 = vld [vmem:[%s8172_s0 + $0x148] sm:$0xff] }
0x1f99   :  { %6272 = vmatprep.subr.mxu1 %v7093_v43 }
0x1f9b   :  { %6265 = vmatmul.mubr.msk.f32.vlgmr.msra.gmra.mrb[38].mxu1 %vm743_vm12, %v4148_v11  ;;  %v5799_v11 = vld [vmem:[%s8171_s3 + $0xa0] sm:$0xff] }
0x1f9c   :  { %6274 = vmatprep.mubr.msk.f32.mxu1 %vm7094_vm1, %v7093_v43 }
0x2022   :  { %v4231_v39 = vpop.xlane.xlu0 %4230 }
0x2023   :  { %v4235_v12 = vsub.f32 %v4227_v4, %v4231_v39  ;;  %v5795_v4 = vld [vmem:[%s8171_s3 + $0x80] sm:$0xff]  ;;  %v5801_v39 = vld [vmem:[%s8171_s3 + $0xb0] sm:$0xff] }
0x2024   :  { %v6482_v6 = vpack.c.bf16 %v5797_v5, %v5795_v4  ;;  %v5838_v4 = vld [vmem:[%s8172_s0 + $0x1c8] sm:$0xff] }
0x2025   :  { %v4237_v13 = vmul.f32 1.442695, %v4235_v12  ;;  %v6486_v12 = vpack.c.bf16 %v5801_v39, %v5799_v11  ;;  %v5840_v11 = vld [vmem:[%s8172_s0 + $0x1d8] sm:$0xff] }
0x2027   :  { %6731 = vpow2.f32 %v4237_v13  ;;  %v5804_v13 = vld [vmem:[%s8171_s3 + $0xc8] sm:$0xff] }
0x2031   :  { %v6732_v14 = vpop.eup %6731 }
0x2032   :  { %v4241_v15 = vsel %vm908_vm13, %v6732_v14, 0.0 }
0x2033   :  { %4242 = vadd.xlane.f32.xlu0 %v4241_v15 }
0x206a   :  { %v4064_v16 = vpop.f32.mrb[36].mxu1 }
0x206b   :  { %v4068_v18 = vadd.f32 %v4064_v16, %v7856_v31  ;;  %v6256_v19 = vpop.f32.mrb[37].mxu1  ;;  %v5803_v16 = vld [vmem:[%s8171_s3 + $0xc0] sm:$0xff] }
0x206e   :  { %v4221_v20 = vpop.f32.mrb[38].mxu1 }
0x206f   :  { %v4226_v22 = vmul.f32 0.25, %v4221_v20  ;;  %v6266_v25 = vpop.f32.mrb[39].mxu1  ;;  %v5808_v20 = vld [vmem:[%s8171_s3 + $0xe8] sm:$0xff] }
0x2070   :  { %v5807_v25 = vld [vmem:[%s8171_s3 + $0xe0] sm:$0xff] }
0x2071   :  { %v4228_v26 = vadd.f32 %v4226_v22, %v7471_v48  ;;  %v5810_v22 = vld [vmem:[%s8171_s3 + $0xf8] sm:$0xff] }
0x2073   :  { %v4232_v27 = vsel %vm908_vm13, %v4228_v26, -inf }
0x2074   :  { %4233 = vmax.xlane.f32.xlu1 %v4232_v27  ;;  %v5809_v27 = vld [vmem:[%s8171_s3 + $0xf0] sm:$0xff] }
0x2085   :  { %4328 = vrot.lane.b32.xlu1 %v7743_v50, %s7102_s24 }
0x20c0   :  { %v4243_v48 = vpop.xlane.xlu0 %4242 }
0x2101   :  { %v4234_v30 = vpop.xlane.xlu1 %4233 }
0x2102   :  { %v4236_v32 = vsub.f32 %v4228_v26, %v4234_v30  ;;  %v6492_v26 = vpack.c.bf16 %v5810_v22, %v5808_v20  ;;  %v6494_v30 = vpack.c.bf16 %v5809_v27, %v5807_v25  ;;  %v5826_v20 = vld [vmem:[%s8172_s0 + $0x168] sm:$0xff]  ;;  %v5843_v25 = vld [vmem:[%s8172_s0 + $0x1f0] sm:$0xff] }
0x2104   :  { %v4239_v34 = vmul.f32 1.442695, %v4236_v32 }
0x2105   :  { %v4329_v29 = vpop.permute.xlu1 %4328 }
0x2106   :  { %6733 = vpow2.f32 %v4239_v34  ;;  %6273 = vmatpush3.msk.msra.mxu1 %vm326_vm0, %v4329_v29 }
0x2107   :  { %6735 = vrcp.f32 %v4243_v48 }
0x2110   :  { %v6734_v31 = vpop.eup %6733 }
0x2111   :  { %v4244_v23 = vsel %vm908_vm13, %v6734_v31, 0.0  ;;  %v6736_v50 = vpop.eup %6735 }
0x2112   :  { %4245 = vadd.xlane.f32.xlu0 %v4244_v23  ;;  %v4248_v36 = vmul.f32 %v6736_v50, %v6732_v14  ;;  %v5806_v14 = vld [vmem:[%s8171_s3 + $0xd8] sm:$0xff]  ;;  %v5793_v23 = vld [vmem:[#allocation17 + $0x1] ss:$0 sm:$0xff] }
0x2113   :  { %v6488_v15 = vpack.c.bf16 %v5806_v14, %v5804_v13  ;;  %v5824_v13 = vld [vmem:[%s8172_s0 + $0x158] sm:$0xff] }
0x2128   :  { %4251 = vrot.lane.b32.xlu0 %v7731_v40, %s7102_s24 }
0x219f   :  { %v4246_v9 = vpop.xlane.xlu0 %4245 }
0x21a0   :  { %6737 = vrcp.f32 %v4246_v9  ;;  %v5794_v9 = vld [vmem:[#allocation18 + $0x1] ss:$0 sm:$0xff] }
0x21a3   :  { %v4252_v38 = vpop.permute.xlu0 %4251 }
0x21a4   :  { %6268 = vmatpush3.msk.msra.mxu0 %vm326_vm0, %v4252_v38  ;;  %v5829_v38 = vld [vmem:[%s8172_s0 + $0x180] sm:$0xff] }
0x21a5   :  { %6270 = vmatmul.mubr.msk.f32.vlgmr.msra.gmra.mrb[44].mxu0 %vm440_vm9, %v4248_v36  ;;  %6477 = vmatprep.subr.bf16.mxu0 %v7101_v52 }
0x21a6   :  { %6281 = vmatprep.mubr.msk.f32.mxu0 %vm7094_vm1, %v7093_v43  ;;  %6479 = vmatpush3.bf16.msra.mxu0 %v6478_v51  ;;  %v6498_v51 = vpack.c.bf16 %v5814_v47, %v5813_v44 }
0x21aa   :  { %v6738_v28 = vpop.eup %6737 }
0x21ab   :  { %v4250_v40 = vmul.f32 %v6738_v28, %v6734_v31  ;;  %v5830_v28 = vld [vmem:[%s8172_s0 + $0x188] sm:$0xff] }
0x21ad   :  { %6275 = vmatmul.mubr.msk.f32.vlgmr.msra.gmra.mrb[40].mxu1 %vm440_vm9, %v4250_v40  ;;  %v6496_v40 = vpack.c.bf16 %v5830_v28, %v5829_v38  ;;  %vm5513_vm9 = vcmask 3073  }
0x21ae   :  { %4619 = vmatprep.mubr.f32.mxu1 %v7093_v43 }
0x21af   :  { %6497 = vmatprep.subr.bf16.mxu0 %v6496_v40 }
0x2278   :  { %v4324_v41 = vpop.f32.mrb[44].mxu0 }
0x2279   :  { %v6271_v53 = vpop.f32.mrb[45].mxu0 }
0x227a   :  { %v5832_v53 = vld [vmem:[%s8172_s0 + $0x198] sm:$0xff] }
0x2280   :  { %v4401_v54 = vpop.f32.mrb[40].mxu1 }
0x2281   :  { %v4407_v55 = vcombine.low %v4324_v41, %v4401_v54  ;;  %v6276_v56 = vpop.f32.mrb[41].mxu1  ;;  %v5831_v41 = vld [vmem:[%s8172_s0 + $0x190] sm:$0xff] }
0x2282   :  { %v6500_v54 = vpack.c.bf16 %v5832_v53, %v5831_v41  ;;  %v5816_v56 = vld [vmem:[%s8172_s0 + $0x118] sm:$0xff] }
0x2283   :  { %6282 = vmatmul.mubr.msk.f32.vlgmr.msra.gmra.mrb[46].mxu0 %vm743_vm12, %v4407_v55  ;;  %v5815_v55 = vld [vmem:[%s8172_s0 + $0x110] sm:$0xff] }
0x2284   :  { %6499 = vmatpush3.bf16.msra.mxu0 %v6498_v51 }
0x2285   :  { %6501 = vmatprep.subr.bf16.mxu0 %v6500_v54 }
0x2356   :  { %v4476_v57 = vpop.f32.mrb[46].mxu0 }
0x2357   :  { %v4480_v58 = vadd.f32 %v4476_v57, %v4068_v18  ;;  %v6283_v61 = vpop.f32.mrb[47].mxu0  ;;  %v5805_v18 = vld [vmem:[%s8171_s3 + $0xd0] sm:$0xff]  ;;  %v6502_v57 = vpack.c.bf16 %v5816_v56, %v5815_v55 }
0x2358   :  { %v6490_v19 = vpack.c.bf16 %v5805_v18, %v5803_v16  ;;  %v5834_v61 = vld [vmem:[%s8172_s0 + $0x1a8] sm:$0xff] }
0x2359   :  { %v4481_v60 = vadd.f32 %v4480_v58, %v7692_v42  ;;  %v5798_v42 = vld [vmem:[%s8171_s3 + $0x98] sm:$0xff]  ;;  %6503 = vmatpush3.bf16.msra.mxu0 %v6502_v57  ;;  %v5833_v58 = vld [vmem:[%s8172_s0 + $0x1a0] sm:$0xff]  ;;  %v5842_v16 = vld [vmem:[%s8172_s0 + $0x1e8] sm:$0xff] }
0x235a   :  { %v6480_v37 = vpack.c.bf16 %v5798_v42, %v5796_v3  ;;  %v5820_v3 = vld [vmem:[%s8172_s0 + $0x138] sm:$0xff] }
0x235b   :  { %v7913_v62 = vadd.f32 %v5792_v59, %v4481_v60  ;;  %v6504_v59 = vpack.c.bf16 %v5834_v61, %v5833_v58  ;;  %v5817_v60 = vld [vmem:[%s8172_s0 + $0x120] sm:$0xff] }
0x235c   :  { %6481 = vmatprep.subr.bf16.mxu1 %v6480_v37  ;;  %v5837_v37 = vld [vmem:[%s8172_s0 + $0x1c0] sm:$0xff] }
0x235d   :  { %v4495_v21 = vsel %vm518_vm10, %v7913_v62, 0.0  ;;  %6483 = vmatpush1.bf16.msra.mxu1 %v6482_v6  ;;  %6505 = vmatprep.subr.bf16.mxu0 %v6504_v59  ;;  %v6512_v5 = vpack.c.bf16 %v5838_v4, %v5837_v37  ;;  %v5821_v6 = vld [vmem:[%s8172_s0 + $0x140] sm:$0xff] }
0x235e   :  { %4496 = vadd.xlane.f32.xlu1 %v4495_v21  ;;  %6485 = vmatprep.subr.bf16.mxu1 %v6484_v10  ;;  %v5818_v21 = vld [vmem:[%s8172_s0 + $0x128] sm:$0xff]  ;;  %v6514_v8 = vpack.c.bf16 %v5822_v7, %v5821_v6  ;;  %v5839_v10 = vld [vmem:[%s8172_s0 + $0x1d0] sm:$0xff] }
0x235f   :  { %v6516_v39 = vpack.c.bf16 %v5840_v11, %v5839_v10 }
0x2361   :  { %6487 = vmatpush1.bf16.msra.mxu1 %v6486_v12  ;;  %v5823_v12 = vld [vmem:[%s8172_s0 + $0x150] sm:$0xff] }
0x2362   :  { %6489 = vmatprep.subr.bf16.mxu1 %v6488_v15  ;;  %v6518_v14 = vpack.c.bf16 %v5824_v13, %v5823_v12  ;;  %v5841_v15 = vld [vmem:[%s8172_s0 + $0x1e0] sm:$0xff] }
0x2363   :  { %v6520_v18 = vpack.c.bf16 %v5842_v16, %v5841_v15 }
0x2365   :  { %6491 = vmatpush1.bf16.msra.mxu1 %v6490_v19  ;;  %v5825_v19 = vld [vmem:[%s8172_s0 + $0x160] sm:$0xff] }
0x2366   :  { %6493 = vmatprep.subr.bf16.mxu1 %v6492_v26  ;;  %v6522_v22 = vpack.c.bf16 %v5826_v20, %v5825_v19  ;;  %v5844_v26 = vld [vmem:[%s8172_s0 + $0x1f8] sm:$0xff] }
0x2367   :  { %v6524_v27 = vpack.c.bf16 %v5844_v26, %v5843_v25 }
0x2369   :  { %6495 = vmatpush1.bf16.msra.mxu1 %v6494_v30  ;;  %v5827_v30 = vld [vmem:[%s8172_s0 + $0x170] sm:$0xff] }
0x236a   :  { %6528 = vmatprep.subr.bf16.mxu1 %v7101_v52 }
0x23eb   :  { %v4497_v63 = vpop.xlane.xlu1 %4496 }
0x23ec   :  { %v4498_v0 = vmul.f32 0.015625, %v4497_v63  ;;  %v6506_v63 = vpack.c.bf16 %v5818_v21, %v5817_v60 }
0x23ee   :  { %v4499_v35 = vsub.f32 %v7913_v62, %v4498_v0  ;;  %6507 = vmatpush3.bf16.msra.mxu0 %v6506_v63  ;;  %v5835_v0 = vld [vmem:[%s8172_s0 + $0x1b0] sm:$0xff] }
0x23f0   :  { %v4500_v1 = vmul.f32 %v4499_v35, %v4499_v35 }
0x23f2   :  { %v4501_v2 = vsel %vm518_vm10, %v4500_v1, 0.0 }
0x23f3   :  { %4502 = vadd.xlane.f32.xlu0 %v4501_v2  ;;  %v5819_v2 = vld [vmem:[%s8172_s0 + $0x130] sm:$0xff] }
0x23f4   :  { %v6510_v42 = vpack.c.bf16 %v5820_v3, %v5819_v2 }
0x2480   :  { %v4503_v32 = vpop.xlane.xlu0 %4502 }
0x2481   :  { %v4504_v34 = vmul.f32 0.015625, %v4503_v32  ;;  %v5828_v32 = vld [vmem:[%s8172_s0 + $0x178] sm:$0xff] }
0x2483   :  { %v4505_v29 = vadd.f32 1e-05, %v4504_v34  ;;  %v6526_v34 = vpack.c.bf16 %v5828_v32, %v5827_v30 }
0x2485   :  { %6739 = vrsqrt.f32 %v4505_v29  ;;  %v4796_v29 = vld [vmem:[%s8175_s11] sm:$0xff] }
0x248f   :  { %v6740_v31 = vpop.eup %6739 }
0x2490   :  { %v4507_v48 = vmul.f32 %v6740_v31, %v4499_v35  ;;  %v5836_v35 = vld [vmem:[%s8172_s0 + $0x1b8] sm:$0xff]  ;;  %v4797_v31 = vld [vmem:[%s8175_s11 + $0x8] sm:$0xff] }
0x2491   :  { %v6508_v1 = vpack.c.bf16 %v5836_v35, %v5835_v0 }
0x2492   :  { %v4514_v50 = vmul.f32 %v5793_v23, %v4507_v48  ;;  %v6529_v23 = vpack.c.bf16 %v4797_v31, %v4796_v29  ;;  %v5811_v48 = vld [vmem:[%s8173_s6 + $0x2] sm:$0x3] }
0x2493   :  { %6509 = vmatprep.subr.bf16.mxu0 %v6508_v1 }
0x2494   :  { %v4521_v36 = vadd.f32 %v5794_v9, %v4514_v50  ;;  %6511 = vmatpush3.bf16.msra.mxu0 %v6510_v42  ;;  %v4545_v9 = vrot.slane %v5811_v48, %v7425_v17  ;;  %v4549_v50 = vrot.slane %v5811_v48, %v7440_v24 }
0x2495   :  { %6513 = vmatprep.subr.bf16.mxu0 %v6512_v5 }
0x2496   :  { %5812 = vmatmul.mubr.msk.f32.vlgmr.msra.gmra.mrb[42].mxu1 %vm518_vm10, %v4521_v36 }
0x2497   :  { %6300 = vmatprep.mubr.msk.f32.mxu1 %vm7094_vm1, %v7093_v43  ;;  %6530 = vmatpush3.bf16.msra.mxu1 %v6529_v23 }
0x2498   :  { %6515 = vmatpush3.bf16.msra.mxu0 %v6514_v8  ;;  %6531 = vmatprep.subr.bf16.mxu1 %v7101_v52 }
0x2499   :  { %6517 = vmatprep.subr.bf16.mxu0 %v6516_v39 }
0x249c   :  { %6519 = vmatpush3.bf16.msra.mxu0 %v6518_v14 }
0x249d   :  { %6521 = vmatprep.subr.bf16.mxu0 %v6520_v18 }
0x24a0   :  { %6523 = vmatpush3.bf16.msra.mxu0 %v6522_v22 }
0x24a1   :  { %6525 = vmatprep.subr.bf16.mxu0 %v6524_v27 }
0x24a4   :  { %6527 = vmatpush3.bf16.msra.mxu0 %v6526_v34 }
0x24a5   :  { %6564 = vmatprep.subr.bf16.mxu0 %v7101_v52 }
0x2569   :  { %v4621_v36 = vpop.f32.mrb[42].mxu1 }
0x256a   :  { %v4622_v38 = vadd.f32 %v4621_v36, %v4545_v9  ;;  %v4623_v28 = vpop.f32.mrb[43].mxu1  ;;  %v4799_v36 = vld [vmem:[%s8175_s11 + $0x18] sm:$0xff] }
0x256b   :  { %v4624_v40 = vadd.f32 %v4623_v28, %v4549_v50  ;;  %v4798_v50 = vld [vmem:[%s8175_s11 + $0x10] sm:$0xff] }
0x256c   :  { %v4628_v44 = vmul.f32 0.70710677, %v4622_v38  ;;  %v4626_v23 = vmul.f32 0.5, %v4622_v38  ;;  %v6532_v28 = vpack.c.bf16 %v4799_v36, %v4798_v50  ;;  %v4802_v38 = vld [vmem:[%s8175_s11 + $0x30] sm:$0xff] }
0x256d   :  { %v4629_v47 = vmul.f32 0.70710677, %v4624_v40  ;;  %v4627_v29 = vmul.f32 0.5, %v4624_v40 }
0x256e   :  { %v4630_v51 = vand.u32 2147483647, %v4628_v44  ;;  %vm4670_vm0 = vcmp.ge.f32.partialorder %v4628_v44, 0.0  ;;  %6533 = vmatpush3.bf16.msra.mxu1 %v6532_v28  ;;  %v4800_v44 = vld [vmem:[%s8175_s11 + $0x20] sm:$0xff] }
0x256f   :  { %v4631_v41 = vand.u32 2147483647, %v4629_v47  ;;  %vm4671_vm3 = vcmp.ge.f32.partialorder %v4629_v47, 0.0  ;;  %6534 = vmatprep.subr.bf16.mxu1 %v7101_v52  ;;  %v4801_v47 = vld [vmem:[%s8175_s11 + $0x28] sm:$0xff] }
0x2570   :  { %v4632_v53 = vmul.f32 0.3275911, %v4630_v51  ;;  %v4658_v57 = vsub.f32 0.0, %v4630_v51  ;;  %v6535_v40 = vpack.c.bf16 %v4801_v47, %v4800_v44 }
0x2571   :  { %v4633_v54 = vmul.f32 0.3275911, %v4631_v41  ;;  %v4659_v58 = vsub.f32 0.0, %v4631_v41 }
0x2572   :  { %v4634_v55 = vadd.f32 1.0, %v4632_v53  ;;  %v4660_v59 = vmul.f32 %v4658_v57, %v4630_v51  ;;  %6536 = vmatpush3.bf16.msra.mxu1 %v6535_v40  ;;  %v4803_v51 = vld [vmem:[%s8175_s11 + $0x38] sm:$0xff]  ;;  %v5070_v57 = vld [vmem:[#allocation21 + $0x18] sm:$0xff]  ;;  %v7103_v40 = vmov 0  }
0x2573   :  { %v4635_v56 = vadd.f32 1.0, %v4633_v54  ;;  %v4661_v63 = vmul.f32 %v4659_v58, %v4631_v41  ;;  %6537 = vmatprep.subr.bf16.mxu1 %v7101_v52  ;;  %v6538_v41 = vpack.c.bf16 %v4803_v51, %v4802_v38  ;;  %v5067_v53 = vld [vmem:[#allocation21] sm:$0xff]  ;;  %v5068_v54 = vld [vmem:[#allocation21 + $0x8] sm:$0xff]  ;;  %6649 = vset.pattern.permute.xlu0 %v7103_v40 }
0x2574   :  { %6741 = vrcp.f32 %v4634_v55  ;;  %v4662_v1 = vmul.f32 1.442695, %v4660_v59  ;;  %v6565_v55 = vpack.c.bf16 %v5068_v54, %v5067_v53  ;;  %v5072_v59 = vld [vmem:[#allocation21 + $0x28] sm:$0xff]  ;;  %6650 = vset.pattern.permute.xlu1 %v7103_v40  ;;  %v5847_v53 = vld [vmem:[#allocation20] ss:$0 sm:$0xff]  ;;  %v4933_v40 = vld [vmem:[%s8177_s26 + $0x48] sm:$0xff] }
0x2575   :  { %6743 = vrcp.f32 %v4635_v56  ;;  %v4664_v42 = vmul.f32 1.442695, %v4661_v63  ;;  %v5069_v56 = vld [vmem:[#allocation21 + $0x10] sm:$0xff]  ;;  %v5074_v63 = vld [vmem:[#allocation21 + $0x38] sm:$0xff] }
0x2576   :  { %6745 = vpow2.f32 %v4662_v1  ;;  %6539 = vmatpush3.bf16.msra.mxu1 %v6538_v41  ;;  %v6568_v58 = vpack.c.bf16 %v5070_v57, %v5069_v56  ;;  %v5846_v1 = vld [vmem:[%s8174_s23 + $0x1] ss:$0 sm:$0xff]  ;;  %v5852_v41 = vld [vmem:[%s8176_s22] ss:$0 sm:$0xff] }
0x2577   :  { %6747 = vpow2.f32 %v4664_v42  ;;  %6540 = vmatprep.subr.bf16.mxu1 %v7101_v52 }
0x257e   :  { %v6742_v61 = vpop.eup %6741 }
0x257f   :  { %v6744_v60 = vpop.eup %6743  ;;  %v4640_v21 = vmul.f32 1.0614054, %v6742_v61 }
0x2580   :  { %v4641_v0 = vmul.f32 1.0614054, %v6744_v60  ;;  %v6746_v15 = vpop.eup %6745 }
0x2581   :  { %v4642_v35 = vadd.f32 -1.4531521, %v4640_v21  ;;  %v6748_v18 = vpop.eup %6747  ;;  %v5073_v21 = vld [vmem:[#allocation21 + $0x30] sm:$0xff] }
0x2582   :  { %v4643_v2 = vadd.f32 -1.4531521, %v4641_v0  ;;  %v6574_v0 = vpack.c.bf16 %v5074_v63, %v5073_v21 }
0x2583   :  { %v4644_v3 = vmul.f32 %v6742_v61, %v4642_v35 }
0x2584   :  { %v4645_v37 = vmul.f32 %v6744_v60, %v4643_v2 }
0x2585   :  { %v4646_v4 = vadd.f32 1.4214138, %v4644_v3 }
0x2586   :  { %v4647_v5 = vadd.f32 1.4214138, %v4645_v37 }
0x2587   :  { %v4648_v6 = vmul.f32 %v6742_v61, %v4646_v4 }
0x2588   :  { %v4649_v7 = vmul.f32 %v6744_v60, %v4647_v5 }
0x2589   :  { %v4650_v8 = vadd.f32 -0.28449672, %v4648_v6 }
0x258a   :  { %v4651_v10 = vadd.f32 -0.28449672, %v4649_v7 }
0x258b   :  { %v4652_v11 = vmul.f32 %v6742_v61, %v4650_v8 }
0x258c   :  { %v4653_v39 = vmul.f32 %v6744_v60, %v4651_v10 }
0x258d   :  { %v4654_v12 = vadd.f32 0.2548296, %v4652_v11 }
0x258e   :  { %v4655_v13 = vadd.f32 0.2548296, %v4653_v39 }
0x258f   :  { %v4656_v14 = vmul.f32 %v6742_v61, %v4654_v12  ;;  %v5071_v61 = vld [vmem:[#allocation21 + $0x20] sm:$0xff] }
0x2590   :  { %v4657_v16 = vmul.f32 %v6744_v60, %v4655_v13  ;;  %v6571_v60 = vpack.c.bf16 %v5072_v59, %v5071_v61 }
0x2591   :  { %v4666_v19 = vmul.f32 %v6746_v15, %v4656_v14 }
0x2592   :  { %v4667_v20 = vmul.f32 %v6748_v18, %v4657_v16 }
0x2593   :  { %v4668_v22 = vsub.f32 1.0, %v4666_v19 }
0x2594   :  { %v4669_v25 = vsub.f32 1.0, %v4667_v20 }
0x2595   :  { %v4672_v26 = vsub.f32 0.0, %v4668_v22 }
0x2596   :  { %v4673_v27 = vsub.f32 0.0, %v4669_v25 }
0x2597   :  { %v4674_v30 = vsel %vm4670_vm0, %v4668_v22, %v4672_v26 }
0x2598   :  { %v4676_v32 = vadd.f32 1.0, %v4674_v30  ;;  %v4675_v34 = vsel %vm4671_vm3, %v4669_v25, %v4673_v27 }
0x2599   :  { %v4677_v31 = vadd.f32 1.0, %v4675_v34 }
0x259a   :  { %v4678_v9 = vmul.f32 %v4676_v32, %v4626_v23 }
0x259b   :  { %v4679_v48 = vmul.f32 %v4677_v31, %v4627_v29 }
0x259d   :  { %4785 = vmatprep.mubr.f32.mxu0 %v4679_v48 }
0x259e   :  { %4786 = vmatmul.mubr.f32.vlgmr.msra.gmra.mrb[48].mxu0 %v4678_v9 }
0x259f   :  { %6354 = vmatprep.mubr.msk.f32.mxu0 %vm7094_vm1, %v7093_v43  ;;  %6566 = vmatpush3.bf16.msra.mxu0 %v6565_v55 }
0x25a0   :  { %6567 = vmatprep.subr.bf16.mxu0 %v7101_v52 }
0x25a3   :  { %6569 = vmatpush3.bf16.msra.mxu0 %v6568_v58 }
0x25a4   :  { %6570 = vmatprep.subr.bf16.mxu0 %v7101_v52 }
0x25a7   :  { %6572 = vmatpush3.bf16.msra.mxu0 %v6571_v60 }
0x25a8   :  { %6573 = vmatprep.subr.bf16.mxu0 %v7101_v52 }
0x25ab   :  { %6575 = vmatpush3.bf16.msra.mxu0 %v6574_v0 }
0x25ac   :  { %6576 = vmatprep.subr.bf16.mxu0 %v7101_v52 }
0x2671   :  { %v6016_v35 = vpop.f32.mrb[48].mxu0 }
0x2672   :  { %v6017_v2 = vpop.f32.mrb[49].mxu0 }
0x2673   :  { %v6018_v3 = vadd.f32 %v6017_v2, %v6016_v35 }
0x2675   :  { %v4788_v42 = vadd.f32 %v6018_v3, %v5846_v1 }
0x2677   :  { %v4791_v37 = vadd.f32 %v4788_v42, %v7913_v62 }
0x2679   :  { %v4793_v4 = vcombine.high %v4791_v37, %v4791_v37  ;;  %v5025_v5 = vrot.slane %v4791_v37, %v7461_v33  ;;  %v4814_v6 = vrot.slane %v4791_v37, %v7425_v17 }
0x267b   :  { %v5026_v7 = vcombine.high %v5025_v5, %v5025_v5  ;;  %v5033_v8 = vrot.slane %v5025_v5, %v7461_v33  ;;  %v5049_v10 = vrot.slane %v4793_v4, %v7461_v33  ;;  %v5375_v11 = vmul.f32 %v4814_v6, %v4791_v37  ;;  %v5225_v5 = vld [vmem:[%s7260_s17] sm:$0xff] }
0x267c   :  { %v4818_v39 = vrot.slane %v4793_v4, %v7425_v17 }
0x267d   :  { %v5040_v12 = vrot.slane %v5026_v7, %v7461_v33  ;;  %v5041_v13 = vcombine.high %v5033_v8, %v5033_v8  ;;  %v5050_v14 = vcombine.high %v5049_v10, %v5049_v10  ;;  %v5057_v62 = vrot.slane %v5049_v10, %v7461_v33  ;;  %v5227_v8 = vld [vmem:[%s7260_s17 + $0x10] sm:$0xff]  ;;  %v5228_v10 = vld [vmem:[%s7260_s17 + $0x18] sm:$0xff] }
0x267e   :  { %v5378_v15 = vsel %vm5377_vm4, %v5375_v11, 0.0  ;;  %v4819_v16 = vsel %vm426_vm2, %v4818_v39, %v4814_v6  ;;  %v5376_v18 = vmul.f32 %v4818_v39, %v4793_v4  ;;  %v5226_v6 = vld [vmem:[%s7260_s17 + $0x8] sm:$0xff]  ;;  %v6580_v11 = vpack.c.bf16 %v5228_v10, %v5227_v8  ;;  %v5229_v39 = vld [vmem:[%s7260_s17 + $0x20] sm:$0xff] }
0x267f   :  { %v5042_v19 = vcombine.high %v5040_v12, %v5040_v12  ;;  %v5082_v20 = vcombine.low %v5040_v12, %v5041_v13  ;;  %5379 = vadd.xlane.f32.xlu0 %v5378_v15  ;;  %6301 = vmatmul.mubr.msk.f32.vlgmr.msra.gmra.mrb[44].mxu1 %vm518_vm10, %v4819_v16  ;;  %v5064_v22 = vrot.slane %v5050_v14, %v7461_v33  ;;  %v5230_v12 = vld [vmem:[%s7260_s17 + $0x28] sm:$0xff]  ;;  %v5231_v13 = vld [vmem:[%s7260_s17 + $0x30] sm:$0xff] }
0x2680   :  { %v5381_v25 = vsel %vm5377_vm4, %v5376_v18, 0.0  ;;  %6335 = vmatprep.mubr.msk.f32.mxu1 %vm7094_vm1, %v7093_v43  ;;  %v6577_v7 = vpack.c.bf16 %v5226_v6, %v5225_v5  ;;  %v6583_v14 = vpack.c.bf16 %v5230_v12, %v5229_v39  ;;  %v4924_v18 = vld [vmem:[%s8177_s26] sm:$0xff] }
0x2681   :  { %5382 = vadd.xlane.f32.xlu1 %v5381_v25  ;;  %v5083_v26 = vcombine.low %v5042_v19, %v5064_v22  ;;  %v5853_v27 = vcombine.high %v5057_v62, %v5064_v22  ;;  %v5091_v30 = vrot.slane %v5082_v20, %v7461_v33  ;;  %v5232_v62 = vld [vmem:[%s7260_s17 + $0x38] sm:$0xff]  ;;  %v4925_v19 = vld [vmem:[%s8177_s26 + $0x8] sm:$0xff]  ;;  %v4926_v22 = vld [vmem:[%s8177_s26 + $0x10] sm:$0xff]  ;;  %s8178_s17 = sld [smem:[#allocation44_spill]] }
0x2682   :  { %v6586_v15 = vpack.c.bf16 %v5232_v62, %v5231_v13  ;;  %v6541_v20 = vpack.c.bf16 %v4925_v19, %v4924_v18  ;;  %v4927_v25 = vld [vmem:[%s8177_s26 + $0x18] sm:$0xff]  ;;  %v5856_v6 = vld [vmem:[%s8179_s30] ss:$0 sm:$0xff] }
0x2683   :  { %v5098_v32 = vrot.slane %v5083_v26, %v7461_v33  ;;  %v5105_v34 = vrot.slane %v5853_v27, %v7461_v33  ;;  %v6544_v27 = vpack.c.bf16 %v4927_v25, %v4926_v22 }
0x2684   :  { %6542 = vmatpush3.bf16.msra.mxu1 %v6541_v20 }
0x2685   :  { %v5106_v29 = vcombine.low %v5091_v30, %v5098_v32  ;;  %v5120_v23 = vrot.slane %v5105_v34, %v7461_v33  ;;  %6543 = vmatprep.subr.bf16.mxu1 %v7101_v52 }
0x2687   :  { %v5113_v31 = vrot.slane %v5106_v29, %v7461_v33  ;;  %v4795_v29 = vld [vmem:[#allocation6] sm:$0x3] }
0x2688   :  { %6545 = vmatpush3.bf16.msra.mxu1 %v6544_v27 }
0x2689   :  { %v5121_v48 = vcombine.low %v5113_v31, %v5120_v23  ;;  %6546 = vmatprep.subr.bf16.mxu1 %v7101_v52  ;;  %v8059_v31 = vrot.slane %v4795_v29, %v7425_v17  ;;  %v4928_v23 = vld [vmem:[%s8177_s26 + $0x20] sm:$0xff] }
0x268b   :  { %6355 = vmatmul.mubr.msk.f32.vlgmr.msra.gmra.mrb[50].mxu0 %vm518_vm10, %v5121_v48  ;;  %v4929_v48 = vld [vmem:[%s8177_s26 + $0x28] sm:$0xff] }
0x268c   :  { %6373 = vmatprep.mubr.msk.f32.mxu0 %vm7094_vm1, %v7093_v43  ;;  %vm5196_vm1 = vcmask 521216   ;;  %6578 = vmatpush3.bf16.msra.mxu0 %v6577_v7 }
0x268d   :  { %6579 = vmatprep.subr.bf16.mxu0 %v7101_v52 }
0x2690   :  { %6581 = vmatpush3.bf16.msra.mxu0 %v6580_v11 }
0x2691   :  { %6582 = vmatprep.subr.bf16.mxu0 %v7101_v52 }
0x2694   :  { %6584 = vmatpush3.bf16.msra.mxu0 %v6583_v14  ;;  %v5849_v14 = vld [vmem:[%s8180_s1] ss:$0 sm:$0xff] }
0x2695   :  { %6585 = vmatprep.subr.bf16.mxu0 %v7101_v52 }
0x2698   :  { %6587 = vmatpush3.bf16.msra.mxu0 %v6586_v15  ;;  %v5850_v15 = vld [vmem:[%s8181_s13] ss:$0 sm:$0xff] }
0x270c   :  { %v5380_v9 = vpop.xlane.xlu0 %5379 }
0x270d   :  { %v5389_v36 = vrot.slane %v5380_v9, %v7380_v49 }
0x270e   :  { %v5383_v50 = vpop.xlane.xlu1 %5382 }
0x270f   :  { %v5393_v28 = vrot.slane %v5383_v50, %v7380_v49 }
0x2711   :  { %v5394_v44 = vsel %vm426_vm2, %v5393_v28, %v5389_v36  ;;  %v4930_v36 = vld [vmem:[%s8177_s26 + $0x30] sm:$0xff]  ;;  %v4931_v28 = vld [vmem:[%s8177_s26 + $0x38] sm:$0xff] }
0x2712   :  { %v5397_v47 = vsel %vm5396_vm5, %v5394_v44, -inf  ;;  %v6550_v44 = vpack.c.bf16 %v4931_v28, %v4930_v36  ;;  %v5857_v36 = vld [vmem:[#allocation3] ss:$0 sm:$0xff] }
0x2713   :  { %5398 = vmax.xlane.f32.xlu1 %v5397_v47  ;;  %v4932_v47 = vld [vmem:[%s8177_s26 + $0x40] sm:$0xff] }
0x2752   :  { %v4888_v38 = vpop.f32.mrb[44].mxu1 }
0x2753   :  { %v6302_v51 = vpop.f32.mrb[45].mxu1  ;;  %v4889_v56 = vadd.f32 %v5847_v53, %v4888_v38  ;;  %v6553_v38 = vpack.c.bf16 %v4933_v40, %v4932_v47 }
0x2754   :  { %v4934_v51 = vld [vmem:[%s8177_s26 + $0x50] sm:$0xff] }
0x2755   :  { %v4895_v49 = vsel %vm4894_vm6, %v4889_v56, 0.0 }
0x275e   :  { %v5190_v54 = vpop.f32.mrb[50].mxu0 }
0x275f   :  { %v5191_v43 = vadd.f32 %v5852_v41, %v5190_v54  ;;  %v6356_v55 = vpop.f32.mrb[51].mxu0  ;;  %v4935_v41 = vld [vmem:[%s8177_s26 + $0x58] sm:$0xff]  ;;  %v4936_v54 = vld [vmem:[%s8177_s26 + $0x60] sm:$0xff] }
0x2760   :  { %v6556_v53 = vpack.c.bf16 %v4935_v41, %v4934_v51 }
0x2761   :  { %v5197_v57 = vsel %vm5196_vm1, %v5191_v43, 0.0 }
0x2762   :  { %5198 = vadd.xlane.f32.xlu0 %v5197_v57  ;;  %v4939_v57 = vld [vmem:[%s8177_s26 + $0x78] sm:$0xff] }
0x2766   :  { %4896 = vadd.xlane.f32.xlu0 %v4895_v49 }
0x27a0   :  { %v5399_v58 = vpop.xlane.xlu1 %5398 }
0x27a1   :  { %v5404_v61 = vrot.slane %v5399_v58, %v7425_v17  ;;  %v5408_v35 = vrot.slane %v5399_v58, %v7440_v24  ;;  %v5425_v58 = vadd.s32 1, %v7374_v45 }
0x27a3   :  { %v5411_v59 = vsub.f32 %v5380_v9, %v5404_v61  ;;  %v5412_v3 = vsub.f32 %v5383_v50, %v5408_v35  ;;  %v6547_v9 = vpack.c.bf16 %v4929_v48, %v4928_v23  ;;  %v8065_v50 = vrot.slane %v4795_v29, %v7440_v24 }
0x27a5   :  { %v5413_v60 = vmul.f32 1.442695, %v5411_v59  ;;  %v5415_v37 = vmul.f32 1.442695, %v5412_v3  ;;  %6548 = vmatpush3.bf16.msra.mxu1 %v6547_v9  ;;  %v8085_v59 = vsub.s32 %v5425_v58, %v7376_v46 }
0x27a6   :  { %6549 = vmatprep.subr.bf16.mxu1 %v7101_v52 }
0x27a7   :  { %6749 = vpow2.f32 %v5413_v60 }
0x27a8   :  { %6751 = vpow2.f32 %v5415_v37  ;;  %v5855_v37 = vld [vmem:[%s8178_s17] ss:$0 sm:$0xff] }
0x27a9   :  { %6551 = vmatpush3.bf16.msra.mxu1 %v6550_v44 }
0x27aa   :  { %6552 = vmatprep.subr.bf16.mxu1 %v7101_v52 }
0x27ad   :  { %6554 = vmatpush3.bf16.msra.mxu1 %v6553_v38 }
0x27ae   :  { %6555 = vmatprep.subr.bf16.mxu1 %v7101_v52 }
0x27b1   :  { %v8024_v21 = vpop.eup %6749  ;;  %6557 = vmatpush3.bf16.msra.mxu1 %v6556_v53 }
0x27b2   :  { %5420 = vperm.xlu0 %6649, %v8024_v21   ;;  %v8033_v4 = vpop.eup %6751  ;;  %6558 = vmatprep.subr.bf16.mxu1 %v7101_v52 }
0x27ef   :  { %v5199_v63 = vpop.xlane.xlu0 %5198 }
0x27f0   :  { %v5200_v0 = vmul.f32 0.015625, %v5199_v63 }
0x27f2   :  { %v8028_v1 = vsub.f32 %v5191_v43, %v5200_v0  ;;  %v4937_v43 = vld [vmem:[%s8177_s26 + $0x68] sm:$0xff] }
0x27f3   :  { %v4897_v16 = vpop.xlane.xlu0 %4896  ;;  %v6559_v55 = vpack.c.bf16 %v4937_v43, %v4936_v54  ;;  %v5542_v43 = vsub.s32 2, %v7376_v46 }
0x27f4   :  { %v5202_v2 = vmul.f32 %v8028_v1, %v8028_v1  ;;  %v4899_v26 = vmul.f32 0.0078125, %v4897_v16 }
0x27f5   :  { %6560 = vmatpush3.bf16.msra.mxu1 %v6559_v55 }
0x27f6   :  { %v5203_v42 = vsel %vm5196_vm1, %v5202_v2, 0.0  ;;  %v8052_v30 = vsub.f32 %v4889_v56, %v4899_v26  ;;  %v4938_v56 = vld [vmem:[%s8177_s26 + $0x70] sm:$0xff]  ;;  %6561 = vmatprep.subr.bf16.mxu1 %v7101_v52 }
0x27f7   :  { %5204 = vadd.xlane.f32.xlu1 %v5203_v42  ;;  %v6562_v49 = vpack.c.bf16 %v4939_v57, %v4938_v56 }
0x27f8   :  { %v4901_v32 = vmul.f32 %v8052_v30, %v8052_v30 }
0x27f9   :  { %6563 = vmatpush3.bf16.msra.mxu1 %v6562_v49 }
0x27fa   :  { %v4902_v34 = vsel %vm4894_vm6, %v4901_v32, 0.0 }
0x2808   :  { %5423 = vperm.xlu1 %6650, %v8033_v4  }
0x282c   :  { %4903 = vadd.xlane.f32.xlu1 %v4902_v34 }
0x2831   :  { %v5421_v63 = vpop.permute.xlu0 %5420 }
0x2832   :  { %v5429_v2 = vrot.slane %v5421_v63, %v8085_v59 }
0x283d   :  { %5462 = vbcast.lane.b32.xlu1 %v8059_v31, 511 }
0x2841   :  { %5470 = vbcast.lane.b32.xlu1 %v8065_v50, 511 }
0x2884   :  { %v5205_v61 = vpop.xlane.xlu1 %5204 }
0x2885   :  { %v5206_v60 = vmul.f32 0.015625, %v5205_v61 }
0x2887   :  { %v5207_v0 = vadd.f32 1e-05, %v5206_v60 }
0x2888   :  { %v5424_v35 = vpop.permute.xlu1 %5423 }
0x2889   :  { %6753 = vrsqrt.f32 %v5207_v0  ;;  %v5433_v3 = vrot.slane %v5424_v35, %v8085_v59 }
0x288b   :  { %v5434_v52 = vsel %vm426_vm2, %v5433_v3, %v5429_v2 }
0x288c   :  { %v5437_v45 = vsel %vm5436_vm7, %v5434_v52, 0.0 }
0x288d   :  { %5438 = vadd.xlane.f32.xlu0 %v5437_v45 }
0x2893   :  { %v6754_v42 = vpop.eup %6753 }
0x2894   :  { %v5209_v5 = vmul.f32 %v6754_v42, %v8028_v1 }
0x2896   :  { %v5216_v7 = vmul.f32 %v5855_v37, %v5209_v5 }
0x2898   :  { %v5223_v8 = vadd.f32 %v5856_v6, %v5216_v7 }
0x289a   :  { %v5224_v10 = vmax.f32 %v5223_v8, 0.0 }
0x289c   :  { %6374 = vmatmul.mubr.msk.f32.vlgmr.msra.gmra.mrb[52].mxu0 %vm518_vm10, %v5224_v10 }
0x28b9   :  { %v4904_v11 = vpop.xlane.xlu1 %4903 }
0x28ba   :  { %v4905_v39 = vmul.f32 0.0078125, %v4904_v11 }
0x28bc   :  { %v4906_v12 = vadd.f32 1e-05, %v4905_v39 }
0x28bd   :  { %v5463_v25 = vpop.permute.xlu1 %5462 }
0x28be   :  { %6755 = vrsqrt.f32 %v4906_v12 }
0x28c1   :  { %v5471_v34 = vpop.permute.xlu1 %5470 }
0x28c8   :  { %v6756_v13 = vpop.eup %6755 }
0x28c9   :  { %v4908_v62 = vmul.f32 %v6756_v13, %v8052_v30 }
0x28cb   :  { %v4915_v16 = vmul.f32 %v5849_v14, %v4908_v62 }
0x28cd   :  { %v4922_v18 = vadd.f32 %v5850_v15, %v4915_v16 }
0x28cf   :  { %v4923_v19 = vmax.f32 %v4922_v18, 0.0 }
0x28d1   :  { %6336 = vmatmul.mubr.f32.vlgmr.msra.gmra.mrb[46].mxu1 %v4923_v19 }
0x291a   :  { %v5439_v1 = vpop.xlane.xlu0 %5438 }
0x291b   :  { %v5444_v20 = vrot.slane %v5439_v1, %v7425_v17  ;;  %v5448_v22 = vrot.slane %v5439_v1, %v7440_v24 }
0x291d   :  { %6757 = vrcp.f32 %v5444_v20 }
0x291e   :  { %6759 = vrcp.f32 %v5448_v22 }
0x2927   :  { %v6758_v26 = vpop.eup %6757 }
0x2928   :  { %v6760_v27 = vpop.eup %6759  ;;  %v5452_v32 = vmul.f32 %v6758_v26, %v8024_v21  ;;  %v5851_v21 = vld [vmem:[#allocation2] ss:$0 sm:$0xff] }
0x2929   :  { %v5454_v30 = vmul.f32 %v6760_v27, %v8033_v4 }
0x292a   :  { %v8102_v29 = vmul.f32 %v5463_v25, %v5452_v32 }
0x292b   :  { %v8104_v23 = vmul.f32 %v5471_v34, %v5454_v30 }
0x292c   :  { %5479 = vperm.xlu1 %6650, %v8102_v29  }
0x292d   :  { %5482 = vperm.xlu0 %6649, %v8104_v23  }
0x2931   :  { %5521 = vbcast.lane.b32.xlu0 %v8059_v31, 256 }
0x2935   :  { %5528 = vbcast.lane.b32.xlu0 %v8065_v50, 256 }
0x296f   :  { %v5309_v48 = vpop.f32.mrb[52].mxu0 }
0x2970   :  { %v6375_v9 = vpop.f32.mrb[53].mxu0  ;;  %v5310_v28 = vadd.f32 %v5857_v36, %v5309_v48 }
0x2972   :  { %v5321_v40 = vrot.slane %v5310_v28, %v7461_v33  ;;  %v5314_v38 = vcombine.high %v5310_v28, %v5310_v28 }
0x2974   :  { %v5329_v41 = vcombine.high %v5321_v40, %v5321_v40  ;;  %v5337_v50 = vrot.slane %v5321_v40, %v7461_v33  ;;  %v5328_v55 = vrot.slane %v5314_v38, %v7461_v33 }
0x2976   :  { %v5351_v57 = vrot.slane %v5329_v41, %v7461_v33  ;;  %v5359_v61 = vcombine.high %v5337_v50, %v5337_v50  ;;  %v5330_v35 = vcombine.high %v5328_v55, %v5328_v55  ;;  %v5344_v3 = vrot.slane %v5328_v55, %v7461_v33 }
0x2978   :  { %v5360_v42 = vcombine.high %v5351_v57, %v5351_v57  ;;  %v5358_v6 = vrot.slane %v5330_v35, %v7461_v33 }
0x29a4   :  { %v5013_v44 = vpop.f32.mrb[46].mxu1 }
0x29a5   :  { %v5014_v4 = vadd.f32 %v5851_v21, %v5013_v44  ;;  %v6337_v47 = vpop.f32.mrb[47].mxu1 }
0x29a7   :  { %5018 = vst.msk [vmem:[%s7265_s14] sm:$0x3] %vm5017_vm8, %v5014_v4 }
0x29ab   :  { %v5480_v51 = vpop.permute.xlu1 %5479 }
0x29ac   :  { %v5483_v53 = vpop.permute.xlu0 %5482  ;;  %v5487_v31 = vrot.slane %v5480_v51, %v8085_v59 }
0x29ad   :  { %v5491_v54 = vrot.slane %v5483_v53, %v8085_v59 }
0x29af   :  { %v5492_v56 = vsel %vm426_vm2, %v5491_v54, %v5487_v31  ;;  %vm5622_vm2 = vcmask 2048  }
0x29b0   :  { %v5522_v49 = vpop.permute.xlu0 %5521  ;;  %v5494_v58 = vsel %vm5436_vm7, %v5492_v56, 0.0 }
0x29b1   :  { %v5535_v60 = vrot.slane %v5522_v49, %v7425_v17  ;;  %v5539_v63 = vrot.slane %v5522_v49, %v7440_v24  ;;  %v5543_v0 = vrot.slane %v5522_v49, %v5542_v43  ;;  %5495 = vadd.xlane.f32.xlu1 %v5494_v58 }
0x29b3   :  { %v5562_v59 = vmul.f32 %v5535_v60, %v5337_v50  ;;  %v5563_v2 = vmul.f32 %v5539_v63, %v5351_v57  ;;  %v5564_v46 = vmul.f32 %v5543_v0, %v5359_v61 }
0x29b4   :  { %v5529_v52 = vpop.permute.xlu0 %5528 }
0x29b5   :  { %v5574_v45 = vcombine.low %v5562_v59, %v5563_v2  ;;  %v5547_v37 = vrot.slane %v5529_v52, %v7425_v17  ;;  %v5551_v5 = vrot.slane %v5529_v52, %v7440_v24  ;;  %v5555_v7 = vrot.slane %v5529_v52, %v5542_v43 }
0x29b6   :  { %v5588_v10 = vrot.slane %v5564_v46, %v7461_v33 }
0x29b7   :  { %v5581_v8 = vrot.slane %v5574_v45, %v7461_v33  ;;  %v5565_v11 = vmul.f32 %v5547_v37, %v5360_v42  ;;  %v5566_v39 = vmul.f32 %v5551_v5, %v5344_v3  ;;  %v5567_v12 = vmul.f32 %v5555_v7, %v5358_v6 }
0x29b9   :  { %v5589_v13 = vcombine.low %v5581_v8, %v5588_v10  ;;  %v5597_v14 = vcombine.low %v5565_v11, %v5566_v39  ;;  %v5611_v16 = vrot.slane %v5567_v12, %v7461_v33 }
0x29bb   :  { %v5596_v62 = vrot.slane %v5589_v13, %v7461_v33  ;;  %v5604_v15 = vrot.slane %v5597_v14, %v7461_v33 }
0x29bd   :  { %5623 = vst.msk [vmem:[%s7270_s28] sm:$0x7] %vm5622_vm2, %v5596_v62  ;;  %v5612_v18 = vcombine.low %v5604_v15, %v5611_v16 }
0x29bf   :  { %v5619_v19 = vrot.slane %v5612_v18, %v7461_v33 }
0x29c1   :  { %5624 = vst.msk [vmem:[%s7270_s28 + $0x4] sm:$0x7] %vm5622_vm2, %v5619_v19 }
0x2a3e   :  { %v5496_v1 = vpop.xlane.xlu1 %5495 }
0x2a3f   :  { %v5497_v20 = vmax.f32 %v5496_v1, 1e-06 }
0x2a41   :  { %v5502_v22 = vrot.slane %v5497_v20, %v7425_v17  ;;  %v5506_v25 = vrot.slane %v5497_v20, %v7440_v24 }
0x2a43   :  { %6761 = vrcp.f32 %v5502_v22 }
0x2a44   :  { %6763 = vrcp.f32 %v5506_v25 }
0x2a4d   :  { %v6762_v26 = vpop.eup %6761 }
0x2a4e   :  { %v6764_v27 = vpop.eup %6763  ;;  %v5510_v32 = vmul.f32 %v6762_v26, %v8102_v29 }
0x2a4f   :  { %v5512_v34 = vmul.f32 %v6764_v27, %v8104_v23 }
0x2a50   :  { %5514 = vst.msk [vmem:[%s7275_s10 - $0x1] sm:$0xe] %vm5513_vm9, %v5510_v32 }
0x2a51   :  { %5515 = vst.msk [vmem:[%s7275_s10 + $0x3] sm:$0xe] %vm5513_vm9, %v5512_v34 }
0x2a52   :  { %5637 = vsyncpa [#allocation5], 1 }
0x2a53   :  { %5638 = vsyncpa [#allocation7], 1 }
0x2a54   :  { %5639 = vsyncpa [#allocation10], 1 }
0x2a55   :  { %5640 = vsyncpa [#allocation13], 1 }
0x2a56   :  { %5641 = vsyncpa [#allocation16], 1 }
0x2a57   :  { %5642 = vsyncpa [#allocation19], 1 }
0x2a58   :  { %5643 = vsyncpa [#allocation22], 1 }

</bundles_post_ra>
